<compile_context>
chip_gen: v7x
topology: tpu7x:2x2x1
jax: 0.10.0
libtpu: 0.0.40
codegen_flags: <defaults>
</compile_context>

<pallas_src>
import numpy as np
import jax
import jax.numpy as jnp
from jax.experimental import pallas as pl
from jax.experimental.pallas import tpu as pltpu


# ---------------------------------------------------------------------------
# Fused kernel: conv1+pool1 -> conv2+pool2 -> 4-layer MLP, everything in VMEM.
# ---------------------------------------------------------------------------
def net_kernel(x_ref, w1b_ref, b1b_ref, w2b_ref, b2b_ref,
               w1blk_ref, b1l_ref, w2l_ref, b2l_ref, w3l_ref, b3l_ref,
               w4l_ref, b4l_ref, o_ref, xp1_ref, xp2_ref):
    f32 = jnp.float32
    NB, H, W = x_ref.shape
    H1, H3 = H // 2, H // 4
    K2 = xp2_ref.shape[2]             # (W//2)*16 lanes: (pooled x, channel)
    L1 = w1b_ref.shape[1]             # 2*(W//2)*16 output lanes: (x parity | pooled x | ch)
    L2 = w2b_ref.shape[1]             # 2*(W//4)*32 output lanes

    # ---- stage 1: conv1 (3x3, pad=1) + ReLU + 2x2 max-pool -------------------------------
    # Only the two y-pad rows are zeroed; the interior is written exactly once.
    xp1_ref[:, 0:1, :] = jnp.zeros((NB, 1, W), f32)
    xp1_ref[:, H + 1:H + 2, :] = jnp.zeros((NB, 1, W), f32)
    xp1_ref[:, 1:H + 1, :] = x_ref[...]

    # Stack the 3 y-shifted rows along lanes -> one K=3W matmul against the banded weight
    # (x zero-padding is encoded as absent taps in the weight).
    up1 = xp1_ref[:, 0:H, :].reshape(NB * H, W)
    md1 = xp1_ref[:, 1:H + 1, :].reshape(NB * H, W)
    dn1 = xp1_ref[:, 2:H + 2, :].reshape(NB * H, W)
    slab1 = jnp.concatenate([up1, md1, dn1], axis=-1)              # (NB*H, 3W)
    c1 = jnp.maximum(
        jnp.dot(slab1, w1b_ref[...], preferred_element_type=f32) + b1b_ref[...], 0.0)

    half1 = L1 // 2
    p1w = jnp.maximum(c1[:, :half1], c1[:, half1:])                # W pooling (even|odd lanes)
    r1 = p1w.reshape(NB, H1, 2, half1)
    p1 = jnp.maximum(r1[:, :, 0, :], r1[:, :, 1, :])               # H pooling -> (NB,H1,K2)

    # ---- stage 2: conv2 (3x3, pad=1) + ReLU + 2x2 max-pool -------------------------------
    xp2_ref[:, 0:1, :] = jnp.zeros((NB, 1, K2), f32)
    xp2_ref[:, H1 + 1:H1 + 2, :] = jnp.zeros((NB, 1, K2), f32)
    xp2_ref[:, 1:H1 + 1, :] = p1

    up2 = xp2_ref[:, 0:H1, :].reshape(NB * H1, K2)
    md2 = xp2_ref[:, 1:H1 + 1, :].reshape(NB * H1, K2)
    dn2 = xp2_ref[:, 2:H1 + 2, :].reshape(NB * H1, K2)
    slab2 = jnp.concatenate([up2, md2, dn2], axis=-1)              # (NB*H1, 3*K2)
    c2 = jnp.maximum(
        jnp.dot(slab2, w2b_ref[...], preferred_element_type=f32) + b2b_ref[...], 0.0)

    half2 = L2 // 2
    p2w = jnp.maximum(c2[:, :half2], c2[:, half2:])                # W pooling
    r2 = p2w.reshape(NB, H3, 2, half2)
    p2 = jnp.maximum(r2[:, :, 0, :], r2[:, :, 1, :])               # (NB, H3, (W/4)*32)

    # ---- classifier (Dropout layers are identity at inference) ---------------------------
    # Linear(flat,256): PyTorch's NCHW flatten order is folded into w1blk's packing; contract
    # the (w, c)-lane blocks per pooled row h3 and sum — no activation transpose.
    # TODO(synk): for the full-size (1,128,256) config turn this unrolled loop into a grid
    # axis that streams (1, W3*C2, 256) K-tiles of w1blk from HBM with a pl.when-guarded
    # accumulator (w1blk is 64 MiB f32 there and cannot stay VMEM-resident on v7x / v5e).
    d1 = w1blk_ref.shape[2]
    acc = jnp.zeros((NB, d1), f32)
    for h3 in range(H3):
        acc = acc + jnp.dot(p2[:, h3, :], w1blk_ref[h3], preferred_element_type=f32)
    h = jnp.maximum(acc + b1l_ref[...], 0.0)
    h = jnp.maximum(jnp.dot(h, w2l_ref[...], preferred_element_type=f32) + b2l_ref[...], 0.0)
    h = jnp.maximum(jnp.dot(h, w3l_ref[...], preferred_element_type=f32) + b3l_ref[...], 0.0)
    o_ref[...] = jnp.dot(h, w4l_ref[...], preferred_element_type=f32) + b4l_ref[...]


# ---------------------------------------------------------------------------
# One-time parameter re-packing (host side, NOT in the forward path).
# ---------------------------------------------------------------------------
def prepare_params(params, H, W, n_classes):
    assert H % 4 == 0 and W % 4 == 0, "spatial dims must be divisible by 4"
    f32 = np.float32
    C1, C2 = 16, 32
    Wh, W3, H3 = W // 2, W // 4, H // 4

    cw1 = np.asarray(params["cw1"], f32)          # (16, 1, 3, 3)
    cb1 = np.asarray(params["cb1"], f32)
    cw2 = np.asarray(params["cw2"], f32)          # (32, 16, 3, 3)
    cb2 = np.asarray(params["cb2"], f32)

    # conv1 banded weight with dy folded into the rows: rows = (dy, input x),
    # cols = (j, xo, c) with output x = 2*xo + j.  Out-of-range x taps are simply absent,
    # which implements the x zero-padding.
    w1b = np.zeros((3, W, 2, Wh, C1), f32)
    for dy in range(3):
        for dx in range(3):
            for x_out in range(W):
                x_in = x_out - 1 + dx
                if 0 <= x_in < W:
                    w1b[dy, x_in, x_out % 2, x_out // 2, :] = cw1[:, 0, dy, dx]
    w1b = w1b.reshape(3 * W, 2 * Wh * C1)
    b1b = np.broadcast_to(cb1, (2, Wh, C1)).reshape(1, -1).astype(f32)

    # conv2 banded weight: rows = (dy, pooled x_in, c_in), cols = (j, xo2, c2),
    # output x = 2*xo2 + j.
    w2b = np.zeros((3, Wh, C1, 2, W3, C2), f32)
    for dy in range(3):
        for dx in range(3):
            for x_out in range(Wh):
                x_in = x_out - 1 + dx
                if 0 <= x_in < Wh:
                    w2b[dy, x_in, :, x_out % 2, x_out // 2, :] = cw2[:, :, dy, dx].T
    w2b = w2b.reshape(3 * Wh * C1, 2 * W3 * C2)
    b2b = np.broadcast_to(cb2, (2, W3, C2)).reshape(1, -1).astype(f32)

    # Linear(flat,256): permute columns into the kernel's (h3, w3*C2 + c) layout once.
    lw1 = np.asarray(params["lw1"], f32)          # (256, flat), flat = c*H3*W3 + h3*W3 + w3
    d1 = lw1.shape[0]
    assert lw1.shape[1] == C2 * H3 * W3
    w1blk = lw1.reshape(d1, C2, H3, W3).transpose(2, 3, 1, 0).reshape(H3, W3 * C2, d1)
    b1l = np.asarray(params["lb1"], f32).reshape(1, d1)

    lw2 = np.asarray(params["lw2"], f32)          # (128, 256)
    d2 = lw2.shape[0]
    w2l = lw2.T.copy()
    b2l = np.asarray(params["lb2"], f32).reshape(1, d2)

    lw3 = np.asarray(params["lw3"], f32)          # (64, 128) -> pad out-dim to 128 lanes
    d3 = lw3.shape[0]
    assert d3 <= 128 and n_classes <= 128
    w3l = np.zeros((d2, 128), f32); w3l[:, :d3] = lw3.T
    b3l = np.zeros((1, 128), f32);  b3l[0, :d3] = np.asarray(params["lb3"], f32)

    lw4 = np.asarray(params["lw4"], f32)          # (n_classes, 64) -> pad both dims to 128
    w4l = np.zeros((128, 128), f32); w4l[:d3, :n_classes] = lw4.T
    b4l = np.zeros((1, 128), f32);   b4l[0, :n_classes] = np.asarray(params["lb4"], f32)

    prep = dict(w1b=w1b, b1b=b1b, w2b=w2b, b2b=b2b,
                w1blk=w1blk, b1l=b1l, w2l=w2l, b2l=b2l, w3l=w3l, b3l=b3l,
                w4l=w4l, b4l=b4l)
    return {k: jnp.asarray(v) for k, v in prep.items()}


# ---------------------------------------------------------------------------
# Forward pass: one fused pallas_call with a "parallel" batch grid axis.
# ---------------------------------------------------------------------------
def net_forward(x, prep, n_classes, batch_block=8):
    N, Cin, H, W = x.shape
    assert Cin == 1
    NB = min(batch_block, N)
    assert N % NB == 0 and (NB % 8 == 0 or NB == N)
    G = N // NB
    x3 = x.reshape(N, H, W)                       # NCHW with C=1 -> (N, H, W), no copy

    C1, C2 = 16, 32
    Wh, W3 = W // 2, W // 4
    H1, H3 = H // 2, H // 4
    K2, F2 = Wh * C1, W3 * C2
    L1, L2 = 2 * Wh * C1, 2 * W3 * C2
    d1, d2 = 256, 128

    weight_order = ("w1b", "b1b", "w2b", "b2b", "w1blk", "b1l",
                    "w2l", "b2l", "w3l", "b3l", "w4l", "b4l")
    weights = [prep[k] for k in weight_order]

    def _full_spec(a):
        zeros = (0,) * a.ndim
        return pl.BlockSpec(a.shape, lambda g: zeros,
                            memory_space=pltpu.MemorySpace.VMEM)

    in_specs = [pl.BlockSpec((NB, H, W), lambda g: (g, 0, 0),
                             memory_space=pltpu.MemorySpace.VMEM)]
    in_specs += [_full_spec(a) for a in weights]
    out_specs = pl.BlockSpec((NB, 128), lambda g: (g, 0),
                             memory_space=pltpu.MemorySpace.VMEM)

    # Advisory cost estimate + an explicit VMEM budget sized from the actual footprint.
    flops = 2 * N * (H * (3 * W) * L1 + H1 * (3 * K2) * L2
                     + H3 * F2 * d1 + d1 * d2 + d2 * 128 + 128 * 128)
    bytes_accessed = (int(x3.size) * 4
                      + sum(int(a.size) * a.dtype.itemsize for a in weights)
                      + N * 128 * 4)
    cost = pl.CostEstimate(flops=int(flops), transcendentals=0,
                           bytes_accessed=int(bytes_accessed))
    vmem_limit = int(max(16 * 1024 * 1024, 3 * bytes_accessed))

    out = pl.pallas_call(
        net_kernel,
        out_shape=jax.ShapeDtypeStruct((N, 128), jnp.float32),   # lane-dense padded logits
        grid=(G,),
        in_specs=in_specs,
        out_specs=out_specs,
        scratch_shapes=[
            pltpu.VMEM((NB, H + 2, W), jnp.float32),             # y-padded conv1 input
            pltpu.VMEM((NB, H1 + 2, K2), jnp.float32),           # y-padded conv2 input
        ],
        compiler_params=pltpu.CompilerParams(
            dimension_semantics=("parallel",),                   # megacore split on v7x
            vmem_limit_bytes=vmem_limit),
        cost_estimate=cost,
    )(x3, *weights)
    return out[:, :n_classes]


# ---------------------------------------------------------------------------
# Pure-JAX reference (PyTorch semantics) for a numerical sanity check.
# ---------------------------------------------------------------------------
def reference_forward(x, params):
    hi = jax.lax.Precision.HIGHEST
    y = jax.lax.conv_general_dilated(x, params["cw1"], (1, 1), ((1, 1), (1, 1)),
                                     dimension_numbers=("NCHW", "OIHW", "NCHW"), precision=hi)
    y = jnp.maximum(y + params["cb1"][None, :, None, None], 0.0)
    y = jax.lax.reduce_window(y, -jnp.inf, jax.lax.max, (1, 1, 2, 2), (1, 1, 2, 2), "VALID")
    y = jax.lax.conv_general_dilated(y, params["cw2"], (1, 1), ((1, 1), (1, 1)),
                                     dimension_numbers=("NCHW", "OIHW", "NCHW"), precision=hi)
    y = jnp.maximum(y + params["cb2"][None, :, None, None], 0.0)
    y = jax.lax.reduce_window(y, -jnp.inf, jax.lax.max, (1, 1, 2, 2), (1, 1, 2, 2), "VALID")
    y = y.reshape(y.shape[0], -1)
    y = jnp.maximum(jnp.dot(y, params["lw1"].T, precision=hi) + params["lb1"], 0.0)
    y = jnp.maximum(jnp.dot(y, params["lw2"].T, precision=hi) + params["lb2"], 0.0)
    y = jnp.maximum(jnp.dot(y, params["lw3"].T, precision=hi) + params["lb3"], 0.0)
    return jnp.dot(y, params["lw4"].T, precision=hi) + params["lb4"]


def init_params(key, n_classes, flat_dim):
    ks = jax.random.split(key, 12)
    f32 = jnp.float32
    return {
        "cw1": 0.1 * jax.random.normal(ks[0], (16, 1, 3, 3), f32),
        "cb1": 0.1 * jax.random.normal(ks[1], (16,), f32),
        "cw2": 0.05 * jax.random.normal(ks[2], (32, 16, 3, 3), f32),
        "cb2": 0.05 * jax.random.normal(ks[3], (32,), f32),
        "lw1": 0.02 * jax.random.normal(ks[4], (256, flat_dim), f32),
        "lb1": 0.02 * jax.random.normal(ks[5], (256,), f32),
        "lw2": 0.02 * jax.random.normal(ks[6], (128, 256), f32),
        "lb2": 0.02 * jax.random.normal(ks[7], (128,), f32),
        "lw3": 0.05 * jax.random.normal(ks[8], (64, 128), f32),
        "lb3": 0.05 * jax.random.normal(ks[9], (64,), f32),
        "lw4": 0.05 * jax.random.normal(ks[10], (n_classes, 64), f32),
        "lb4": 0.05 * jax.random.normal(ks[11], (n_classes,), f32),
    }


if __name__ == "__main__":
    key = jax.random.PRNGKey(0)
    kx, kp = jax.random.split(key)

    # small shapes consistent with the module; batch raised to 16 so the conv matmuls run
    # with M=128 per grid step (per the perf review) while staying tiny overall.
    N, Cin, H, W = 16, 1, 16, 32
    n_classes = 10
    flat_dim = 32 * (H // 4) * (W // 4)           # same formula as the torch dummy pass

    x = jax.random.normal(kx, (N, Cin, H, W), jnp.float32)
    params = init_params(kp, n_classes, flat_dim)
    prep = prepare_params(params, H, W, n_classes)   # one-time weight re-packing

    out = jax.block_until_ready(net_forward(x, prep, n_classes, batch_block=8))

    assert out.shape == (N, n_classes), out.shape
    assert out.dtype == jnp.float32
    assert bool(jnp.all(jnp.isfinite(out)))

    ref = jax.block_until_ready(reference_forward(x, params))
    assert bool(jnp.allclose(out, ref, atol=1e-3, rtol=1e-3)), (
        "max abs err", float(jnp.max(jnp.abs(out - ref))))

    print("KERNEL_OK")
</pallas_src>

<mosaic_0001>
module attributes {stable_mosaic.version = 11 : i64} {
  func.func @net_kernel(%arg0: i32, %arg1: memref<8x16x32xf32, #tpu.memory_space<vmem>>, %arg2: memref<96x512xf32, #tpu.memory_space<vmem>>, %arg3: memref<1x512xf32, #tpu.memory_space<vmem>>, %arg4: memref<768x512xf32, #tpu.memory_space<vmem>>, %arg5: memref<1x512xf32, #tpu.memory_space<vmem>>, %arg6: memref<4x256x256xf32, #tpu.memory_space<vmem>>, %arg7: memref<1x256xf32, #tpu.memory_space<vmem>>, %arg8: memref<256x128xf32, #tpu.memory_space<vmem>>, %arg9: memref<1x128xf32, #tpu.memory_space<vmem>>, %arg10: memref<128x128xf32, #tpu.memory_space<vmem>>, %arg11: memref<1x128xf32, #tpu.memory_space<vmem>>, %arg12: memref<128x128xf32, #tpu.memory_space<vmem>>, %arg13: memref<1x128xf32, #tpu.memory_space<vmem>>, %arg14: memref<8x128xf32, #tpu.memory_space<vmem>>, %arg15: memref<8x18x32xf32, #tpu.memory_space<vmem>>, %arg16: memref<8x10x256xf32, #tpu.memory_space<vmem>>) attributes {dimension_semantics = [#tpu.dimension_semantics<parallel>], iteration_bounds = array<i64: 2>, scalar_prefetch = 0 : i64, scratch_operands = 2 : i64, tpu.core_type = #tpu.core_type<tc>, window_params = [{transform_indices = @transform_0, window_bounds = array<i64: 8, 16, 32>}, {pipeline_mode = #tpu.pipeline_mode<synchronous>, transform_indices = @transform_1, window_bounds = array<i64: 96, 512>}, {pipeline_mode = #tpu.pipeline_mode<synchronous>, transform_indices = @transform_2, window_bounds = array<i64: 1, 512>}, {pipeline_mode = #tpu.pipeline_mode<synchronous>, transform_indices = @transform_3, window_bounds = array<i64: 768, 512>}, {pipeline_mode = #tpu.pipeline_mode<synchronous>, transform_indices = @transform_4, window_bounds = array<i64: 1, 512>}, {pipeline_mode = #tpu.pipeline_mode<synchronous>, transform_indices = @transform_5, window_bounds = array<i64: 4, 256, 256>}, {pipeline_mode = #tpu.pipeline_mode<synchronous>, transform_indices = @transform_6, window_bounds = array<i64: 1, 256>}, {pipeline_mode = #tpu.pipeline_mode<synchronous>, transform_indices = @transform_7, window_bounds = array<i64: 256, 128>}, {pipeline_mode = #tpu.pipeline_mode<synchronous>, transform_indices = @transform_8, window_bounds = array<i64: 1, 128>}, {pipeline_mode = #tpu.pipeline_mode<synchronous>, transform_indices = @transform_9, window_bounds = array<i64: 128, 128>}, {pipeline_mode = #tpu.pipeline_mode<synchronous>, transform_indices = @transform_10, window_bounds = array<i64: 1, 128>}, {pipeline_mode = #tpu.pipeline_mode<synchronous>, transform_indices = @transform_11, window_bounds = array<i64: 128, 128>}, {pipeline_mode = #tpu.pipeline_mode<synchronous>, transform_indices = @transform_12, window_bounds = array<i64: 1, 128>}, {transform_indices = @transform_13, window_bounds = array<i64: 8, 128>}]} {
    %cst = arith.constant 0.000000e+00 : f32
    %0 = vector.broadcast %cst : f32 to vector<8x1x32xf32>
    %c0 = arith.constant 0 : index
    %c0_0 = arith.constant 0 : index
    %c0_1 = arith.constant 0 : index
    %1 = vector.load %arg15[%c0, %c0_0, %c0_1] : memref<8x18x32xf32, #tpu.memory_space<vmem>>, vector<8x1x32xf32>
    tpu.vector_store %arg15[%c0, %c0_0, %c0_1], %0 {strides = array<i32>} : memref<8x18x32xf32, #tpu.memory_space<vmem>>, vector<8x1x32xf32>,
    %cst_2 = arith.constant 0.000000e+00 : f32
    %2 = vector.broadcast %cst_2 : f32 to vector<8x1x32xf32>
    %c0_3 = arith.constant 0 : index
    %c17 = arith.constant 17 : index
    %c0_4 = arith.constant 0 : index
    %3 = vector.load %arg15[%c0_3, %c17, %c0_4] : memref<8x18x32xf32, #tpu.memory_space<vmem>>, vector<8x1x32xf32>
    tpu.vector_store %arg15[%c0_3, %c17, %c0_4], %2 {strides = array<i32>} : memref<8x18x32xf32, #tpu.memory_space<vmem>>, vector<8x1x32xf32>,
    %c0_5 = arith.constant 0 : index
    %c0_6 = arith.constant 0 : index
    %c0_7 = arith.constant 0 : index
    %4 = vector.load %arg1[%c0_5, %c0_6, %c0_7] : memref<8x16x32xf32, #tpu.memory_space<vmem>>, vector<8x16x32xf32>
    %c0_8 = arith.constant 0 : index
    %c1 = arith.constant 1 : index
    %c0_9 = arith.constant 0 : index
    %5 = vector.load %arg15[%c0_8, %c1, %c0_9] : memref<8x18x32xf32, #tpu.memory_space<vmem>>, vector<8x16x32xf32>
    tpu.vector_store %arg15[%c0_8, %c1, %c0_9], %4 {strides = array<i32>} : memref<8x18x32xf32, #tpu.memory_space<vmem>>, vector<8x16x32xf32>,
    %c0_10 = arith.constant 0 : index
    %c0_11 = arith.constant 0 : index
    %c0_12 = arith.constant 0 : index
    %6 = vector.load %arg15[%c0_10, %c0_11, %c0_12] : memref<8x18x32xf32, #tpu.memory_space<vmem>>, vector<8x16x32xf32>
    %7 = vector.shape_cast %6 : vector<8x16x32xf32> to vector<128x32xf32>
    %c0_13 = arith.constant 0 : index
    %c1_14 = arith.constant 1 : index
    %c0_15 = arith.constant 0 : index
    %8 = vector.load %arg15[%c0_13, %c1_14, %c0_15] : memref<8x18x32xf32, #tpu.memory_space<vmem>>, vector<8x16x32xf32>
    %9 = vector.shape_cast %8 : vector<8x16x32xf32> to vector<128x32xf32>
    %c0_16 = arith.constant 0 : index
    %c2 = arith.constant 2 : index
    %c0_17 = arith.constant 0 : index
    %10 = vector.load %arg15[%c0_16, %c2, %c0_17] : memref<8x18x32xf32, #tpu.memory_space<vmem>>, vector<8x16x32xf32>
    %11 = vector.shape_cast %10 : vector<8x16x32xf32> to vector<128x32xf32>
    %12 = tpu.concatenate %7, %9, %11 in 1 : vector<128x32xf32>, vector<128x32xf32>, vector<128x32xf32> -> vector<128x96xf32>
    %c0_18 = arith.constant 0 : index
    %c0_19 = arith.constant 0 : index
    %13 = vector.load %arg2[%c0_18, %c0_19] : memref<96x512xf32, #tpu.memory_space<vmem>>, vector<96x512xf32>
    %cst_20 = arith.constant dense<0.000000e+00> : vector<128x512xf32>
    %14 = tpu.matmul %12, %13, %cst_20 {dimension_numbers = #tpu.dot_dimension_numbers<[1], [0], [0], [1], [0, 0, 1, 1], [], []>} : vector<128x96xf32>, vector<96x512xf32>, vector<128x512xf32> -> vector<128x512xf32>
    %c0_21 = arith.constant 0 : index
    %c0_22 = arith.constant 0 : index
    %15 = vector.load %arg3[%c0_21, %c0_22] : memref<1x512xf32, #tpu.memory_space<vmem>>, vector<1x512xf32>
    %16 = vector.broadcast %15 : vector<1x512xf32> to vector<128x512xf32>
    %17 = arith.addf %14, %16 : vector<128x512xf32>
    %cst_23 = arith.constant 0.000000e+00 : f32
    %18 = vector.broadcast %cst_23 : f32 to vector<128x512xf32>
    %19 = arith.maximumf %17, %18 : vector<128x512xf32>
    %20 = vector.extract_strided_slice %19 {offsets = [0, 0], sizes = [128, 256], strides = [1, 1]} : vector<128x512xf32> to vector<128x256xf32>
    %21 = vector.extract_strided_slice %19 {offsets = [0, 256], sizes = [128, 256], strides = [1, 1]} : vector<128x512xf32> to vector<128x256xf32>
    %22 = arith.maximumf %20, %21 : vector<128x256xf32>
    %23 = vector.shape_cast %22 : vector<128x256xf32> to vector<8x8x2x256xf32>
    %24 = vector.extract_strided_slice %23 {offsets = [0, 0, 0, 0], sizes = [8, 8, 1, 256], strides = [1, 1, 1, 1]} : vector<8x8x2x256xf32> to vector<8x8x1x256xf32>
    %25 = vector.shape_cast %24 : vector<8x8x1x256xf32> to vector<8x8x256xf32>
    %26 = vector.extract_strided_slice %23 {offsets = [0, 0, 1, 0], sizes = [8, 8, 1, 256], strides = [1, 1, 1, 1]} : vector<8x8x2x256xf32> to vector<8x8x1x256xf32>
    %27 = vector.shape_cast %26 : vector<8x8x1x256xf32> to vector<8x8x256xf32>
    %28 = arith.maximumf %25, %27 : vector<8x8x256xf32>
    %cst_24 = arith.constant 0.000000e+00 : f32
    %29 = vector.broadcast %cst_24 : f32 to vector<8x1x256xf32>
    %c0_25 = arith.constant 0 : index
    %c0_26 = arith.constant 0 : index
    %c0_27 = arith.constant 0 : index
    %30 = vector.load %arg16[%c0_25, %c0_26, %c0_27] : memref<8x10x256xf32, #tpu.memory_space<vmem>>, vector<8x1x256xf32>
    tpu.vector_store %arg16[%c0_25, %c0_26, %c0_27], %29 {strides = array<i32>} : memref<8x10x256xf32, #tpu.memory_space<vmem>>, vector<8x1x256xf32>,
    %cst_28 = arith.constant 0.000000e+00 : f32
    %31 = vector.broadcast %cst_28 : f32 to vector<8x1x256xf32>
    %c0_29 = arith.constant 0 : index
    %c9 = arith.constant 9 : index
    %c0_30 = arith.constant 0 : index
    %32 = vector.load %arg16[%c0_29, %c9, %c0_30] : memref<8x10x256xf32, #tpu.memory_space<vmem>>, vector<8x1x256xf32>
    tpu.vector_store %arg16[%c0_29, %c9, %c0_30], %31 {strides = array<i32>} : memref<8x10x256xf32, #tpu.memory_space<vmem>>, vector<8x1x256xf32>,
    %c0_31 = arith.constant 0 : index
    %c1_32 = arith.constant 1 : index
    %c0_33 = arith.constant 0 : index
    %33 = vector.load %arg16[%c0_31, %c1_32, %c0_33] : memref<8x10x256xf32, #tpu.memory_space<vmem>>, vector<8x8x256xf32>
    tpu.vector_store %arg16[%c0_31, %c1_32, %c0_33], %28 {strides = array<i32>} : memref<8x10x256xf32, #tpu.memory_space<vmem>>, vector<8x8x256xf32>,
    %c0_34 = arith.constant 0 : index
    %c0_35 = arith.constant 0 : index
    %c0_36 = arith.constant 0 : index
    %34 = vector.load %arg16[%c0_34, %c0_35, %c0_36] : memref<8x10x256xf32, #tpu.memory_space<vmem>>, vector<8x8x256xf32>
    %35 = vector.shape_cast %34 : vector<8x8x256xf32> to vector<64x256xf32>
    %c0_37 = arith.constant 0 : index
    %c1_38 = arith.constant 1 : index
    %c0_39 = arith.constant 0 : index
    %36 = vector.load %arg16[%c0_37, %c1_38, %c0_39] : memref<8x10x256xf32, #tpu.memory_space<vmem>>, vector<8x8x256xf32>
    %37 = vector.shape_cast %36 : vector<8x8x256xf32> to vector<64x256xf32>
    %c0_40 = arith.constant 0 : index
    %c2_41 = arith.constant 2 : index
    %c0_42 = arith.constant 0 : index
    %38 = vector.load %arg16[%c0_40, %c2_41, %c0_42] : memref<8x10x256xf32, #tpu.memory_space<vmem>>, vector<8x8x256xf32>
    %39 = vector.shape_cast %38 : vector<8x8x256xf32> to vector<64x256xf32>
    %40 = tpu.concatenate %35, %37, %39 in 1 : vector<64x256xf32>, vector<64x256xf32>, vector<64x256xf32> -> vector<64x768xf32>
    %c0_43 = arith.constant 0 : index
    %c0_44 = arith.constant 0 : index
    %41 = vector.load %arg4[%c0_43, %c0_44] : memref<768x512xf32, #tpu.memory_space<vmem>>, vector<768x512xf32>
    %cst_45 = arith.constant dense<0.000000e+00> : vector<64x512xf32>
    %42 = tpu.matmul %40, %41, %cst_45 {dimension_numbers = #tpu.dot_dimension_numbers<[1], [0], [0], [1], [0, 0, 1, 1], [], []>} : vector<64x768xf32>, vector<768x512xf32>, vector<64x512xf32> -> vector<64x512xf32>
    %c0_46 = arith.constant 0 : index
    %c0_47 = arith.constant 0 : index
    %43 = vector.load %arg5[%c0_46, %c0_47] : memref<1x512xf32, #tpu.memory_space<vmem>>, vector<1x512xf32>
    %44 = vector.broadcast %43 : vector<1x512xf32> to vector<64x512xf32>
    %45 = arith.addf %42, %44 : vector<64x512xf32>
    %cst_48 = arith.constant 0.000000e+00 : f32
    %46 = vector.broadcast %cst_48 : f32 to vector<64x512xf32>
    %47 = arith.maximumf %45, %46 : vector<64x512xf32>
    %48 = vector.extract_strided_slice %47 {offsets = [0, 0], sizes = [64, 256], strides = [1, 1]} : vector<64x512xf32> to vector<64x256xf32>
    %49 = vector.extract_strided_slice %47 {offsets = [0, 256], sizes = [64, 256], strides = [1, 1]} : vector<64x512xf32> to vector<64x256xf32>
    %50 = arith.maximumf %48, %49 : vector<64x256xf32>
    %51 = vector.shape_cast %50 : vector<64x256xf32> to vector<8x4x2x256xf32>
    %52 = vector.extract_strided_slice %51 {offsets = [0, 0, 0, 0], sizes = [8, 4, 1, 256], strides = [1, 1, 1, 1]} : vector<8x4x2x256xf32> to vector<8x4x1x256xf32>
    %53 = vector.shape_cast %52 : vector<8x4x1x256xf32> to vector<8x4x256xf32>
    %54 = vector.extract_strided_slice %51 {offsets = [0, 0, 1, 0], sizes = [8, 4, 1, 256], strides = [1, 1, 1, 1]} : vector<8x4x2x256xf32> to vector<8x4x1x256xf32>
    %55 = vector.shape_cast %54 : vector<8x4x1x256xf32> to vector<8x4x256xf32>
    %56 = arith.maximumf %53, %55 : vector<8x4x256xf32>
    %cst_49 = arith.constant 0.000000e+00 : f32
    %57 = vector.broadcast %cst_49 : f32 to vector<8x256xf32>
    %58 = vector.extract_strided_slice %56 {offsets = [0, 0, 0], sizes = [8, 1, 256], strides = [1, 1, 1]} : vector<8x4x256xf32> to vector<8x1x256xf32>
    %59 = vector.shape_cast %58 : vector<8x1x256xf32> to vector<8x256xf32>
    %c0_50 = arith.constant 0 : index
    %c0_51 = arith.constant 0 : index
    %c0_52 = arith.constant 0 : index
    %60 = vector.load %arg6[%c0_50, %c0_51, %c0_52] : memref<4x256x256xf32, #tpu.memory_space<vmem>>, vector<1x256x256xf32>
    %61 = vector.shape_cast %60 : vector<1x256x256xf32> to vector<256x256xf32>
    %cst_53 = arith.constant dense<0.000000e+00> : vector<8x256xf32>
    %62 = tpu.matmul %59, %61, %cst_53 {dimension_numbers = #tpu.dot_dimension_numbers<[1], [0], [0], [1], [0, 0, 1, 1], [], []>} : vector<8x256xf32>, vector<256x256xf32>, vector<8x256xf32> -> vector<8x256xf32>
    %63 = arith.addf %57, %62 : vector<8x256xf32>
    %64 = vector.extract_strided_slice %56 {offsets = [0, 1, 0], sizes = [8, 1, 256], strides = [1, 1, 1]} : vector<8x4x256xf32> to vector<8x1x256xf32>
    %65 = vector.shape_cast %64 : vector<8x1x256xf32> to vector<8x256xf32>
    %c1_54 = arith.constant 1 : index
    %c0_55 = arith.constant 0 : index
    %c0_56 = arith.constant 0 : index
    %66 = vector.load %arg6[%c1_54, %c0_55, %c0_56] : memref<4x256x256xf32, #tpu.memory_space<vmem>>, vector<1x256x256xf32>
    %67 = vector.shape_cast %66 : vector<1x256x256xf32> to vector<256x256xf32>
    %cst_57 = arith.constant dense<0.000000e+00> : vector<8x256xf32>
    %68 = tpu.matmul %65, %67, %cst_57 {dimension_numbers = #tpu.dot_dimension_numbers<[1], [0], [0], [1], [0, 0, 1, 1], [], []>} : vector<8x256xf32>, vector<256x256xf32>, vector<8x256xf32> -> vector<8x256xf32>
    %69 = arith.addf %63, %68 : vector<8x256xf32>
    %70 = vector.extract_strided_slice %56 {offsets = [0, 2, 0], sizes = [8, 1, 256], strides = [1, 1, 1]} : vector<8x4x256xf32> to vector<8x1x256xf32>
    %71 = vector.shape_cast %70 : vector<8x1x256xf32> to vector<8x256xf32>
    %c2_58 = arith.constant 2 : index
    %c0_59 = arith.constant 0 : index
    %c0_60 = arith.constant 0 : index
    %72 = vector.load %arg6[%c2_58, %c0_59, %c0_60] : memref<4x256x256xf32, #tpu.memory_space<vmem>>, vector<1x256x256xf32>
    %73 = vector.shape_cast %72 : vector<1x256x256xf32> to vector<256x256xf32>
    %cst_61 = arith.constant dense<0.000000e+00> : vector<8x256xf32>
    %74 = tpu.matmul %71, %73, %cst_61 {dimension_numbers = #tpu.dot_dimension_numbers<[1], [0], [0], [1], [0, 0, 1, 1], [], []>} : vector<8x256xf32>, vector<256x256xf32>, vector<8x256xf32> -> vector<8x256xf32>
    %75 = arith.addf %69, %74 : vector<8x256xf32>
    %76 = vector.extract_strided_slice %56 {offsets = [0, 3, 0], sizes = [8, 1, 256], strides = [1, 1, 1]} : vector<8x4x256xf32> to vector<8x1x256xf32>
    %77 = vector.shape_cast %76 : vector<8x1x256xf32> to vector<8x256xf32>
    %c3 = arith.constant 3 : index
    %c0_62 = arith.constant 0 : index
    %c0_63 = arith.constant 0 : index
    %78 = vector.load %arg6[%c3, %c0_62, %c0_63] : memref<4x256x256xf32, #tpu.memory_space<vmem>>, vector<1x256x256xf32>
    %79 = vector.shape_cast %78 : vector<1x256x256xf32> to vector<256x256xf32>
    %cst_64 = arith.constant dense<0.000000e+00> : vector<8x256xf32>
    %80 = tpu.matmul %77, %79, %cst_64 {dimension_numbers = #tpu.dot_dimension_numbers<[1], [0], [0], [1], [0, 0, 1, 1], [], []>} : vector<8x256xf32>, vector<256x256xf32>, vector<8x256xf32> -> vector<8x256xf32>
    %81 = arith.addf %75, %80 : vector<8x256xf32>
    %c0_65 = arith.constant 0 : index
    %c0_66 = arith.constant 0 : index
    %82 = vector.load %arg7[%c0_65, %c0_66] : memref<1x256xf32, #tpu.memory_space<vmem>>, vector<1x256xf32>
    %83 = vector.broadcast %82 : vector<1x256xf32> to vector<8x256xf32>
    %84 = arith.addf %81, %83 : vector<8x256xf32>
    %cst_67 = arith.constant 0.000000e+00 : f32
    %85 = vector.broadcast %cst_67 : f32 to vector<8x256xf32>
    %86 = arith.maximumf %84, %85 : vector<8x256xf32>
    %c0_68 = arith.constant 0 : index
    %c0_69 = arith.constant 0 : index
    %87 = vector.load %arg8[%c0_68, %c0_69] : memref<256x128xf32, #tpu.memory_space<vmem>>, vector<256x128xf32>
    %cst_70 = arith.constant dense<0.000000e+00> : vector<8x128xf32>
    %88 = tpu.matmul %86, %87, %cst_70 {dimension_numbers = #tpu.dot_dimension_numbers<[1], [0], [0], [1], [0, 0, 1, 1], [], []>} : vector<8x256xf32>, vector<256x128xf32>, vector<8x128xf32> -> vector<8x128xf32>
    %c0_71 = arith.constant 0 : index
    %c0_72 = arith.constant 0 : index
    %89 = vector.load %arg9[%c0_71, %c0_72] : memref<1x128xf32, #tpu.memory_space<vmem>>, vector<1x128xf32>
    %90 = vector.broadcast %89 : vector<1x128xf32> to vector<8x128xf32>
    %91 = arith.addf %88, %90 : vector<8x128xf32>
    %cst_73 = arith.constant 0.000000e+00 : f32
    %92 = vector.broadcast %cst_73 : f32 to vector<8x128xf32>
    %93 = arith.maximumf %91, %92 : vector<8x128xf32>
    %c0_74 = arith.constant 0 : index
    %c0_75 = arith.constant 0 : index
    %94 = vector.load %arg10[%c0_74, %c0_75] : memref<128x128xf32, #tpu.memory_space<vmem>>, vector<128x128xf32>
    %cst_76 = arith.constant dense<0.000000e+00> : vector<8x128xf32>
    %95 = tpu.matmul %93, %94, %cst_76 {dimension_numbers = #tpu.dot_dimension_numbers<[1], [0], [0], [1], [0, 0, 1, 1], [], []>} : vector<8x128xf32>, vector<128x128xf32>, vector<8x128xf32> -> vector<8x128xf32>
    %c0_77 = arith.constant 0 : index
    %c0_78 = arith.constant 0 : index
    %96 = vector.load %arg11[%c0_77, %c0_78] : memref<1x128xf32, #tpu.memory_space<vmem>>, vector<1x128xf32>
    %97 = vector.broadcast %96 : vector<1x128xf32> to vector<8x128xf32>
    %98 = arith.addf %95, %97 : vector<8x128xf32>
    %cst_79 = arith.constant 0.000000e+00 : f32
    %99 = vector.broadcast %cst_79 : f32 to vector<8x128xf32>
    %100 = arith.maximumf %98, %99 : vector<8x128xf32>
    %c0_80 = arith.constant 0 : index
    %c0_81 = arith.constant 0 : index
    %101 = vector.load %arg12[%c0_80, %c0_81] : memref<128x128xf32, #tpu.memory_space<vmem>>, vector<128x128xf32>
    %cst_82 = arith.constant dense<0.000000e+00> : vector<8x128xf32>
    %102 = tpu.matmul %100, %101, %cst_82 {dimension_numbers = #tpu.dot_dimension_numbers<[1], [0], [0], [1], [0, 0, 1, 1], [], []>} : vector<8x128xf32>, vector<128x128xf32>, vector<8x128xf32> -> vector<8x128xf32>
    %c0_83 = arith.constant 0 : index
    %c0_84 = arith.constant 0 : index
    %103 = vector.load %arg13[%c0_83, %c0_84] : memref<1x128xf32, #tpu.memory_space<vmem>>, vector<1x128xf32>
    %104 = vector.broadcast %103 : vector<1x128xf32> to vector<8x128xf32>
    %105 = arith.addf %102, %104 : vector<8x128xf32>
    %c0_85 = arith.constant 0 : index
    %c0_86 = arith.constant 0 : index
    %106 = vector.load %arg14[%c0_85, %c0_86] : memref<8x128xf32, #tpu.memory_space<vmem>>, vector<8x128xf32>
    tpu.vector_store %arg14[%c0_85, %c0_86], %105 {strides = array<i32>} : memref<8x128xf32, #tpu.memory_space<vmem>>, vector<8x128xf32>,
    return
  }
  func.func @transform_0(%arg0: i32) -> (i32, i32, i32) {
    %c0_i32 = arith.constant 0 : i32
    %c0_i32_0 = arith.constant 0 : i32
    %c0_i32_1 = arith.constant 0 : i32
    return %arg0, %c0_i32, %c0_i32_0 : i32, i32, i32
  }
  func.func @transform_1(%arg0: i32) -> (i32, i32) {
    %c0_i32 = arith.constant 0 : i32
    %c0_i32_0 = arith.constant 0 : i32
    %c0_i32_1 = arith.constant 0 : i32
    return %c0_i32, %c0_i32_0 : i32, i32
  }
  func.func @transform_2(%arg0: i32) -> (i32, i32) {
    %c0_i32 = arith.constant 0 : i32
    %c0_i32_0 = arith.constant 0 : i32
    %c0_i32_1 = arith.constant 0 : i32
    return %c0_i32, %c0_i32_0 : i32, i32
  }
  func.func @transform_3(%arg0: i32) -> (i32, i32) {
    %c0_i32 = arith.constant 0 : i32
    %c0_i32_0 = arith.constant 0 : i32
    %c0_i32_1 = arith.constant 0 : i32
    return %c0_i32, %c0_i32_0 : i32, i32
  }
  func.func @transform_4(%arg0: i32) -> (i32, i32) {
    %c0_i32 = arith.constant 0 : i32
    %c0_i32_0 = arith.constant 0 : i32
    %c0_i32_1 = arith.constant 0 : i32
    return %c0_i32, %c0_i32_0 : i32, i32
  }
  func.func @transform_5(%arg0: i32) -> (i32, i32, i32) {
    %c0_i32 = arith.constant 0 : i32
    %c0_i32_0 = arith.constant 0 : i32
    %c0_i32_1 = arith.constant 0 : i32
    %c0_i32_2 = arith.constant 0 : i32
    return %c0_i32, %c0_i32_0, %c0_i32_1 : i32, i32, i32
  }
  func.func @transform_6(%arg0: i32) -> (i32, i32) {
    %c0_i32 = arith.constant 0 : i32
    %c0_i32_0 = arith.constant 0 : i32
    %c0_i32_1 = arith.constant 0 : i32
    return %c0_i32, %c0_i32_0 : i32, i32
  }
  func.func @transform_7(%arg0: i32) -> (i32, i32) {
    %c0_i32 = arith.constant 0 : i32
    %c0_i32_0 = arith.constant 0 : i32
    %c0_i32_1 = arith.constant 0 : i32
    return %c0_i32, %c0_i32_0 : i32, i32
  }
  func.func @transform_8(%arg0: i32) -> (i32, i32) {
    %c0_i32 = arith.constant 0 : i32
    %c0_i32_0 = arith.constant 0 : i32
    %c0_i32_1 = arith.constant 0 : i32
    return %c0_i32, %c0_i32_0 : i32, i32
  }
  func.func @transform_9(%arg0: i32) -> (i32, i32) {
    %c0_i32 = arith.constant 0 : i32
    %c0_i32_0 = arith.constant 0 : i32
    %c0_i32_1 = arith.constant 0 : i32
    return %c0_i32, %c0_i32_0 : i32, i32
  }
  func.func @transform_10(%arg0: i32) -> (i32, i32) {
    %c0_i32 = arith.constant 0 : i32
    %c0_i32_0 = arith.constant 0 : i32
    %c0_i32_1 = arith.constant 0 : i32
    return %c0_i32, %c0_i32_0 : i32, i32
  }
  func.func @transform_11(%arg0: i32) -> (i32, i32) {
    %c0_i32 = arith.constant 0 : i32
    %c0_i32_0 = arith.constant 0 : i32
    %c0_i32_1 = arith.constant 0 : i32
    return %c0_i32, %c0_i32_0 : i32, i32
  }
  func.func @transform_12(%arg0: i32) -> (i32, i32) {
    %c0_i32 = arith.constant 0 : i32
    %c0_i32_0 = arith.constant 0 : i32
    %c0_i32_1 = arith.constant 0 : i32
    return %c0_i32, %c0_i32_0 : i32, i32
  }
  func.func @transform_13(%arg0: i32) -> (i32, i32) {
    %c0_i32 = arith.constant 0 : i32
    %c0_i32_0 = arith.constant 0 : i32
    return %arg0, %c0_i32 : i32, i32
  }
}

</mosaic_0001>

<bundles_post_ra>
// kernel: tpu_custom_call.1
= control target key start
LH: loop header
LB: loop body
LE: loop exit
PB: predicated region body
PF: predicated region fallthrough
CT: control target
= control target key end

     0   :  { %s10105_s0 = inlined_call_operand.hbm [shape: f32[16,16,32], index: 0, kind: input, shape index: {}]   ;;  %s10106_s1 = inlined_call_operand.hbm [shape: f32[96,512], index: 1, kind: input, shape index: {}]   ;;  %s10107_s2 = inlined_call_operand.hbm [shape: f32[1,512], index: 2, kind: input, shape index: {}]   ;;  %s10108_s3 = inlined_call_operand.hbm [shape: f32[768,512], index: 3, kind: input, shape index: {}]   ;;  %s10109_s4 = inlined_call_operand.hbm [shape: f32[1,512], index: 4, kind: input, shape index: {}]   ;;  %s10110_s5 = inlined_call_operand.hbm [shape: f32[4,256,256], index: 5, kind: input, shape index: {}]   ;;  %s10111_s6 = inlined_call_operand.hbm [shape: f32[1,256], index: 6, kind: input, shape index: {}]   ;;  %s10112_s7 = inlined_call_operand.hbm [shape: f32[256,128], index: 7, kind: input, shape index: {}]   ;;  %s10113_s8 = inlined_call_operand.hbm [shape: f32[1,128], index: 8, kind: input, shape index: {}]   ;;  %s10114_s9 = inlined_call_operand.hbm [shape: f32[128,128], index: 9, kind: input, shape index: {}]   ;;  %s10115_s10 = inlined_call_operand.hbm [shape: f32[1,128], index: 10, kind: input, shape index: {}]   ;;  %s10116_s11 = inlined_call_operand.hbm [shape: f32[128,128], index: 11, kind: input, shape index: {}]   ;;  %s10117_s12 = inlined_call_operand.hbm [shape: f32[1,128], index: 12, kind: input, shape index: {}]   ;;  %s10118_s13 = inlined_call_operand.hbm [shape: f32[16,128], index: 13, kind: output, shape index: {}]  }
   0x1   :  { %10162 = sst [smem:[#allocation69_spill]] %s10105_s0 }
   0x2   :  { %10163 = sst [smem:[#allocation70_spill]] %s10106_s1 }
   0x3   :  { %10164 = sst [smem:[#allocation71_spill]] %s10107_s2 }
   0x4   :  { %10165 = sst [smem:[#allocation72_spill]] %s10118_s13 }
   0x5   :  { %18 = vsyncpa [#allocation5], 0 }
   0x6   :  { %20 = vsyncpa [#allocation5 + $0x1], 0 }
   0x7   :  { %21 = vsyncpa [#allocation8], 0 }
   0x8   :  { %22 = vsyncpa [#allocation11], 0 }
   0x9   :  { %23 = vsyncpa [#allocation14], 0 }
   0xa   :  { %24 = vsyncpa [#allocation17], 0 }
   0xb   :  { %25 = vsyncpa [#allocation20], 0 }
   0xc   :  { %26 = vsyncpa [#allocation23], 0 }
   0xd   :  { %27 = vsyncpa [#allocation6], 0 }
   0xe   :  { %29 = vsyncpa [#allocation6 + $0x1], 0  ;;  %s7913_s25 = smov 0   ;;  %s7915_s26 = smov 0  }
   0xf   :  { %s7917_s27 = smov 0   ;;  %s7919_s28 = smov 0  }
  0x10 LB: > { %10166 = sst [smem:[#allocation34_spill]] %s7803_s25  ;;  %s7817_s29 = smov [#allocation7]   ;;  %s7815_s28 = sphi %s7919_s28, %s10317_s28   ;;  %s7811_s27 = sphi %s7917_s27, %s10316_s27   ;;  %s7807_s26 = sphi %s7915_s26, %s10315_s26   ;;  %s7803_s25 = sphi %s7913_s25, %s10314_s25  }
  0x11   : > { %s356_s30 = sshll.u32 %s7817_s29, 4  ;;  %s7934_s14 = sadd.s32 4294967295, %s7815_s28   ;;  %s7939_s30 = int_to_ptr.vmem [resolvable:$true] %s356_s30 }
  0x12   : > { %10167 = sst [smem:[#allocation35_spill]] %s7934_s14  ;;  %p5991_p0 = scmp.ge.s32.totalorder %s7815_s28, 1 }
  0x13   : > { %p10125_p1 = scmp.eq.s32.totalorder %s7934_s14, 0  ;;  %p344_p2 = scmp.lt.s32.totalorder %s7815_s28, 3 }
  0x14   : > { %s7818_s16 = smov [#allocation10]   ;;  %s7819_s19 = smov [#allocation13]  }
  0x15   : > { %p7941_p3 = pnand %p5991_p0, %p344_p2  ;;  %s380_s17 = sshll.u32 %s7818_s16, 4  ;;  %s7954_s17 = int_to_ptr.vmem [resolvable:$true] %s380_s17 }
  0x16   : > { %s404_s20 = sshll.u32 %s7819_s19, 4  ;;  %s10171_s1 = sld [smem:[#allocation70_spill]]  ;;  %s7956_s20 = int_to_ptr.vmem [resolvable:$true] %s404_s20 }
  0x17   : > { %s10168_s15 = scalar_select %p7941_p3, 1, 0 }
  0x18   : > { %p7222_p5 = pneg %p7941_p3 }
  0x19   : > { %10169 = sst [smem:[#allocation36_spill]] %s10168_s15 }
  0x1a   : > { %p7950_p6 = pnand %p7222_p5, %p10125_p1 }
  0x1c   : > { %s7359_s23 = scalar_lea.hbm %s10171_s1, 6144  ;;  %p7966_p8 = pneg %p7950_p6 }
  0x1d   : > { %p7360_p7 = scmp.ne.s32.totalorder %s10171_s1, %s7359_s23  ;;  %p7366_p11 = scmp.lt.u32.totalorder %s7359_s23, %s10171_s1 }
  0x1f   : > { %p7362_p9 = pnand %p7966_p8, %p7360_p7 }
  0x21   : > { %p7363_p10 = pneg %p7362_p9 }
  0x23   : > { %p7368_p12 = pnand %p7366_p11, %p7363_p10 }
  0x25   : > { %7371 = shalt.err (!%p7368_p12)
}
  0x26   : > { %s7372_s21 = scalar_lea.vmem %s7939_s30, 6144  ;;  %p7380_p5 = scmp.lt.s32.totalorder %s7939_s30, %s7939_s30 }
  0x27   : > { %p7373_p13 = scmp.ne.s32.totalorder %s7939_s30, %s7372_s21  ;;  %p7381_p4 = scmp.lt.s32.totalorder %s7372_s21, %s7372_s21 }
  0x29   : > { %p7375_p0 = pnand %p7373_p13, %p7966_p8  ;;  %p7382_p7 = por %p7381_p4, %p7380_p5 }
  0x2b   : > { %p7376_p2 = pneg %p7375_p0 }
  0x2d   : > { %p7383_p9 = pnand %p7382_p7, %p7376_p2 }
  0x2f   : > { %7386 = shalt.err (!%p7383_p9)
}
  0x30   : > { %s7820_s22 = smov 512   ;;  %s7821_s13 = smov 32  }
  0x31   : > { %7225 = dma.hbm_to_vmem [thread:$0]  (!%p7950_p6), %s10171_s1, 6144, %s7939_s30, [#allocation8], %s7820_s22, %s7820_s22, %s7821_s13  }
  0x32   : > { %s7387_s15 = scalar_lea.hbm %s10108_s3, 49152 }
  0x33   : > { %p7388_p4 = scmp.ne.s32.totalorder %s10108_s3, %s7387_s15  ;;  %p7394_p12 = scmp.lt.u32.totalorder %s7387_s15, %s10108_s3 }
  0x35   : > { %p7390_p10 = pnand %p7388_p4, %p7966_p8 }
  0x37   : > { %p7391_p11 = pneg %p7390_p10 }
  0x39   : > { %p7396_p13 = pnand %p7394_p12, %p7391_p11 }
  0x3b   : > { %7399 = shalt.err (!%p7396_p13)
}
  0x3c   : > { %s7400_s30 = scalar_lea.vmem %s7954_s17, 49152  ;;  %p7408_p7 = scmp.lt.s32.totalorder %s7954_s17, %s7954_s17 }
  0x3d   : > { %p7401_p0 = scmp.ne.s32.totalorder %s7954_s17, %s7400_s30  ;;  %p7409_p9 = scmp.lt.s32.totalorder %s7400_s30, %s7400_s30 }
  0x3f   : > { %p7403_p2 = pnand %p7401_p0, %p7966_p8  ;;  %p7410_p4 = por %p7409_p9, %p7408_p7 }
  0x41   : > { %p7404_p5 = pneg %p7403_p2 }
  0x43   : > { %p7411_p10 = pnand %p7410_p4, %p7404_p5 }
  0x45   : > { %7414 = shalt.err (!%p7411_p10)
}
  0x46   : > { %7231 = dma.hbm_to_vmem [thread:$0]  (!%p7950_p6), %s10108_s3, 49152, %s7954_s17, [#allocation11], %s7820_s22, %s7820_s22, %s7821_s13  }
  0x47   : > { %s7415_s23 = scalar_lea.hbm %s10110_s5, 32768 }
  0x48   : > { %p7416_p11 = scmp.ne.s32.totalorder %s10110_s5, %s7415_s23  ;;  %p7422_p0 = scmp.lt.u32.totalorder %s7415_s23, %s10110_s5 }
  0x4a   : > { %p7418_p12 = pnand %p7416_p11, %p7966_p8 }
  0x4c   : > { %p7419_p13 = pneg %p7418_p12 }
  0x4e   : > { %p7424_p2 = pnand %p7422_p0, %p7419_p13 }
  0x50   : > { %7427 = shalt.err (!%p7424_p2)
}
  0x51   : > { %s7428_s17 = scalar_lea.vmem %s7956_s20, 32768  ;;  %p7436_p4 = scmp.lt.s32.totalorder %s7956_s20, %s7956_s20 }
  0x52   : > { %p7429_p5 = scmp.ne.s32.totalorder %s7956_s20, %s7428_s17  ;;  %p7437_p10 = scmp.lt.s32.totalorder %s7428_s17, %s7428_s17 }
  0x54   : > { %p7431_p7 = pnand %p7429_p5, %p7966_p8  ;;  %p7438_p11 = por %p7437_p10, %p7436_p4 }
  0x56   : > { %p7432_p9 = pneg %p7431_p7 }
  0x58   : > { %p7439_p12 = pnand %p7438_p11, %p7432_p9 }
  0x5a   : > { %7442 = shalt.err (!%p7439_p12)
}
  0x5b   : > { %s7822_s22 = smov 256   ;;  %s7823_s13 = smov 16  }
  0x5c   : > { %7237 = dma.hbm_to_vmem [thread:$0]  (!%p7950_p6), %s10110_s5, 32768, %s7956_s20, [#allocation14], %s7822_s22, %s7822_s22, %s7823_s13  }
  0x5d   : > { %s7824_s25 = smov [#allocation16]   ;;  %s7443_s24 = scalar_lea.hbm %s10112_s7, 4096 }
  0x5e   : > { %s428_s14 = sshll.u32 %s7824_s25, 4  ;;  %p7444_p13 = scmp.ne.s32.totalorder %s10112_s7, %s7443_s24  ;;  %s429_s14 = int_to_ptr.vmem [resolvable:$true] %s428_s14 }
  0x5f   : > { %p7450_p5 = scmp.lt.u32.totalorder %s7443_s24, %s10112_s7 }
  0x60   : > { %p7446_p0 = pnand %p7444_p13, %p7966_p8 }
  0x62   : > { %p7447_p2 = pneg %p7446_p0 }
  0x64   : > { %p7452_p7 = pnand %p7450_p5, %p7447_p2 }
  0x66   : > { %7455 = shalt.err (!%p7452_p7)
}
  0x67   : > { %s7456_s20 = scalar_lea.vmem %s429_s14, 4096  ;;  %p7464_p11 = scmp.lt.s32.totalorder %s429_s14, %s429_s14 }
  0x68   : > { %p7457_p9 = scmp.ne.s32.totalorder %s429_s14, %s7456_s20  ;;  %p7465_p12 = scmp.lt.s32.totalorder %s7456_s20, %s7456_s20 }
  0x6a   : > { %p7459_p4 = pnand %p7457_p9, %p7966_p8  ;;  %p7466_p1 = por %p7465_p12, %p7464_p11 }
  0x6c   : > { %p7460_p10 = pneg %p7459_p4 }
  0x6e   : > { %p7467_p3 = pnand %p7466_p1, %p7460_p10 }
  0x70   : > { %7470 = shalt.err (!%p7467_p3)
}
  0x71   : > { %s10127_s22 = smov 128   ;;  %s10128_s13 = smov 8  }
  0x72   : > { %7243 = dma.hbm_to_vmem [thread:$0]  (!%p7950_p6), %s10112_s7, 4096, %s429_s14, [#allocation17], %s10127_s22, %s10127_s22, %s10128_s13  }
  0x73   : > { %s7827_s25 = smov [#allocation19]   ;;  %s7828_s23 = smov [#allocation22]  }
  0x74   : > { %s452_s15 = sshll.u32 %s7827_s25, 4  ;;  %s476_s24 = sshll.u32 %s7828_s23, 4  ;;  %s453_s15 = int_to_ptr.vmem [resolvable:$true] %s452_s15  ;;  %s8054_s24 = int_to_ptr.vmem [resolvable:$true] %s476_s24 }
  0x75   : > { %s7471_s21 = scalar_lea.hbm %s10114_s9, 2048 }
  0x76   : > { %p7472_p1 = scmp.ne.s32.totalorder %s10114_s9, %s7471_s21  ;;  %p7478_p0 = scmp.lt.u32.totalorder %s7471_s21, %s10114_s9 }
  0x78   : > { %p7474_p3 = pnand %p7472_p1, %p7966_p8 }
  0x7a   : > { %p7475_p13 = pneg %p7474_p3 }
  0x7c   : > { %p7480_p2 = pnand %p7478_p0, %p7475_p13 }
  0x7e   : > { %7483 = shalt.err (!%p7480_p2)
}
  0x7f   : > { %s7484_s0 = scalar_lea.vmem %s453_s15, 2048  ;;  %p7492_p4 = scmp.lt.s32.totalorder %s453_s15, %s453_s15 }
  0x80   : > { %p7485_p5 = scmp.ne.s32.totalorder %s453_s15, %s7484_s0  ;;  %p7493_p10 = scmp.lt.s32.totalorder %s7484_s0, %s7484_s0 }
  0x82   : > { %p7487_p7 = pnand %p7485_p5, %p7966_p8  ;;  %p7494_p11 = por %p7493_p10, %p7492_p4 }
  0x84   : > { %p7488_p9 = pneg %p7487_p7 }
  0x86   : > { %p7495_p12 = pnand %p7494_p11, %p7488_p9 }
  0x88   : > { %7498 = shalt.err (!%p7495_p12)
}
  0x89   : > { %7249 = dma.hbm_to_vmem [thread:$0]  (!%p7950_p6), %s10114_s9, 2048, %s453_s15, [#allocation20], %s10127_s22, %s10127_s22, %s10128_s13  }
  0x8a   : > { %s7499_s21 = scalar_lea.hbm %s10116_s11, 2048 }
  0x8b   : > { %p7500_p1 = scmp.ne.s32.totalorder %s10116_s11, %s7499_s21  ;;  %p7506_p0 = scmp.lt.u32.totalorder %s7499_s21, %s10116_s11 }
  0x8d   : > { %p7502_p3 = pnand %p7500_p1, %p7966_p8 }
  0x8f   : > { %p7503_p13 = pneg %p7502_p3 }
  0x91   : > { %p7508_p2 = pnand %p7506_p0, %p7503_p13 }
  0x93   : > { %7511 = shalt.err (!%p7508_p2)
}
  0x94   : > { %s7512_s15 = scalar_lea.vmem %s8054_s24, 2048  ;;  %p7520_p4 = scmp.lt.s32.totalorder %s8054_s24, %s8054_s24 }
  0x95   : > { %p7513_p5 = scmp.ne.s32.totalorder %s8054_s24, %s7512_s15  ;;  %p7521_p10 = scmp.lt.s32.totalorder %s7512_s15, %s7512_s15 }
  0x97   : > { %p7515_p7 = pnand %p7513_p5, %p7966_p8  ;;  %p7522_p11 = por %p7521_p10, %p7520_p4 }
  0x99   : > { %p7516_p9 = pneg %p7515_p7 }
  0x9b   : > { %p7523_p12 = pnand %p7522_p11, %p7516_p9 }
  0x9d   : > { %7526 = shalt.err (!%p7523_p12)
}
  0x9e   : > { %7255 = dma.hbm_to_vmem [thread:$0]  (!%p7950_p6), %s10116_s11, 2048, %s8054_s24, [#allocation23], %s10127_s22, %s10127_s22, %s10128_s13  }
  0x9f   : > { %s7829_s23 = smov [#allocation9]   ;;  %s7830_s19 = smov [#allocation12]  }
  0xa0   : > { %s370_s29 = sshll.u32 %s7829_s23, 4  ;;  %s394_s21 = sshll.u32 %s7830_s19, 4  ;;  %s371_s29 = int_to_ptr.vmem [resolvable:$true] %s370_s29  ;;  %s8103_s21 = int_to_ptr.vmem [resolvable:$true] %s394_s21 }
  0xa1   : > { %s10173_s2 = sld [smem:[#allocation71_spill]] }
  0xa7   : > { %s7527_s30 = scalar_lea.hbm %s10173_s2, 64 }
  0xa8   : > { %p7528_p1 = scmp.ne.s32.totalorder %s10173_s2, %s7527_s30  ;;  %p7534_p0 = scmp.lt.u32.totalorder %s7527_s30, %s10173_s2 }
  0xaa   : > { %p7530_p3 = pnand %p7528_p1, %p7966_p8 }
  0xac   : > { %p7531_p13 = pneg %p7530_p3 }
  0xae   : > { %p7536_p2 = pnand %p7534_p0, %p7531_p13 }
  0xb0   : > { %7539 = shalt.err (!%p7536_p2)
}
  0xb1   : > { %s7540_s25 = scalar_lea.vmem %s371_s29, 64  ;;  %p7548_p4 = scmp.lt.s32.totalorder %s371_s29, %s371_s29 }
  0xb2   : > { %p7541_p5 = scmp.ne.s32.totalorder %s371_s29, %s7540_s25  ;;  %p7549_p10 = scmp.lt.s32.totalorder %s7540_s25, %s7540_s25 }
  0xb4   : > { %p7543_p7 = pnand %p7541_p5, %p7966_p8  ;;  %p7550_p11 = por %p7549_p10, %p7548_p4 }
  0xb6   : > { %p7544_p9 = pneg %p7543_p7 }
  0xb8   : > { %p7551_p12 = pnand %p7550_p11, %p7544_p9 }
  0xba   : > { %7554 = shalt.err (!%p7551_p12)
}
  0xbb   : > { %7228 = dma.hbm_to_vmem [thread:$0]  (!%p7950_p6), %s10173_s2, 64, %s371_s29, [#allocation8]  }
  0xbc   : > { %s7555_s30 = scalar_lea.hbm %s10109_s4, 64 }
  0xbd   : > { %p7556_p1 = scmp.ne.s32.totalorder %s10109_s4, %s7555_s30  ;;  %p7562_p0 = scmp.lt.u32.totalorder %s7555_s30, %s10109_s4 }
  0xbf   : > { %p7558_p3 = pnand %p7556_p1, %p7966_p8 }
  0xc1   : > { %p7559_p13 = pneg %p7558_p3 }
  0xc3   : > { %p7564_p2 = pnand %p7562_p0, %p7559_p13 }
  0xc5   : > { %7567 = shalt.err (!%p7564_p2)
}
  0xc6   : > { %s7568_s29 = scalar_lea.vmem %s8103_s21, 64  ;;  %p7576_p4 = scmp.lt.s32.totalorder %s8103_s21, %s8103_s21 }
  0xc7   : > { %p7569_p5 = scmp.ne.s32.totalorder %s8103_s21, %s7568_s29  ;;  %p7577_p10 = scmp.lt.s32.totalorder %s7568_s29, %s7568_s29 }
  0xc9   : > { %p7571_p7 = pnand %p7569_p5, %p7966_p8  ;;  %p7578_p11 = por %p7577_p10, %p7576_p4 }
  0xcb   : > { %p7572_p9 = pneg %p7571_p7 }
  0xcd   : > { %p7579_p12 = pnand %p7578_p11, %p7572_p9 }
  0xcf   : > { %7582 = shalt.err (!%p7579_p12)
}
  0xd0   : > { %7234 = dma.hbm_to_vmem [thread:$0]  (!%p7950_p6), %s10109_s4, 64, %s8103_s21, [#allocation11]  }
  0xd1   : > { %s7831_s19 = smov [#allocation15]   ;;  %s7832_s20 = smov [#allocation18]  }
  0xd2   : > { %s418_s17 = sshll.u32 %s7831_s19, 4  ;;  %s442_s30 = sshll.u32 %s7832_s20, 4  ;;  %s419_s17 = int_to_ptr.vmem [resolvable:$true] %s418_s17  ;;  %s8146_s30 = int_to_ptr.vmem [resolvable:$true] %s442_s30 }
  0xd3   : > { %s7583_s0 = scalar_lea.hbm %s10111_s6, 32 }
  0xd4   : > { %p7584_p1 = scmp.ne.s32.totalorder %s10111_s6, %s7583_s0  ;;  %p7590_p0 = scmp.lt.u32.totalorder %s7583_s0, %s10111_s6 }
  0xd6   : > { %p7586_p3 = pnand %p7584_p1, %p7966_p8 }
  0xd8   : > { %p7587_p13 = pneg %p7586_p3 }
  0xda   : > { %p7592_p2 = pnand %p7590_p0, %p7587_p13 }
  0xdc   : > { %7595 = shalt.err (!%p7592_p2)
}
  0xdd   : > { %s7596_s23 = scalar_lea.vmem %s419_s17, 32  ;;  %p7604_p4 = scmp.lt.s32.totalorder %s419_s17, %s419_s17 }
  0xde   : > { %p7597_p5 = scmp.ne.s32.totalorder %s419_s17, %s7596_s23  ;;  %p7605_p10 = scmp.lt.s32.totalorder %s7596_s23, %s7596_s23 }
  0xe0   : > { %p7599_p7 = pnand %p7597_p5, %p7966_p8  ;;  %p7606_p11 = por %p7605_p10, %p7604_p4 }
  0xe2   : > { %p7600_p9 = pneg %p7599_p7 }
  0xe4   : > { %p7607_p12 = pnand %p7606_p11, %p7600_p9 }
  0xe6   : > { %7610 = shalt.err (!%p7607_p12)
}
  0xe7   : > { %7240 = dma.hbm_to_vmem [thread:$0]  (!%p7950_p6), %s10111_s6, 32, %s419_s17, [#allocation14]  }
  0xe8   : > { %s7611_s0 = scalar_lea.hbm %s10113_s8, 16 }
  0xe9   : > { %p7612_p1 = scmp.ne.s32.totalorder %s10113_s8, %s7611_s0  ;;  %p7618_p0 = scmp.lt.u32.totalorder %s7611_s0, %s10113_s8 }
  0xeb   : > { %p7614_p3 = pnand %p7612_p1, %p7966_p8 }
  0xed   : > { %p7615_p13 = pneg %p7614_p3 }
  0xef   : > { %p7620_p2 = pnand %p7618_p0, %p7615_p13 }
  0xf1   : > { %7623 = shalt.err (!%p7620_p2)
}
  0xf2   : > { %s7624_s17 = scalar_lea.vmem %s8146_s30, 16  ;;  %s7631_s23 = scalar_lea.vmem %s8146_s30, 32 }
  0xf3   : > { %p7625_p5 = scmp.ne.s32.totalorder %s8146_s30, %s7624_s17  ;;  %p7632_p4 = scmp.lt.s32.totalorder %s8146_s30, %s8146_s30 }
  0xf4   : > { %p7633_p10 = scmp.lt.s32.totalorder %s7631_s23, %s7624_s17 }
  0xf5   : > { %p7627_p7 = pnand %p7625_p5, %p7966_p8 }
  0xf6   : > { %p7634_p11 = por %p7633_p10, %p7632_p4 }
  0xf7   : > { %p7628_p9 = pneg %p7627_p7 }
  0xf9   : > { %p7635_p12 = pnand %p7634_p11, %p7628_p9 }
  0xfb   : > { %7638 = shalt.err (!%p7635_p12)
}
  0xfc   : > { %7246 = dma.hbm_to_vmem [thread:$0]  (!%p7950_p6), %s10113_s8, 16, %s8146_s30, [#allocation17]  }
  0xfd   : > { %s7833_s14 = smov [#allocation21]   ;;  %s7834_s0 = smov [#allocation24]  }
  0xfe   : > { %s466_s15 = sshll.u32 %s7833_s14, 4  ;;  %s490_s24 = sshll.u32 %s7834_s0, 4  ;;  %s467_s15 = int_to_ptr.vmem [resolvable:$true] %s466_s15  ;;  %s8190_s24 = int_to_ptr.vmem [resolvable:$true] %s490_s24 }
  0xff   : > { %s7639_s21 = scalar_lea.hbm %s10115_s10, 16 }
 0x100   : > { %p7640_p1 = scmp.ne.s32.totalorder %s10115_s10, %s7639_s21  ;;  %p7646_p0 = scmp.lt.u32.totalorder %s7639_s21, %s10115_s10 }
 0x102   : > { %p7642_p3 = pnand %p7640_p1, %p7966_p8 }
 0x104   : > { %p7643_p13 = pneg %p7642_p3 }
 0x106   : > { %p7648_p2 = pnand %p7646_p0, %p7643_p13 }
 0x108   : > { %7651 = shalt.err (!%p7648_p2)
}
 0x109   : > { %s7652_s20 = scalar_lea.vmem %s467_s15, 16  ;;  %s7659_s14 = scalar_lea.vmem %s467_s15, 32 }
 0x10a   : > { %p7653_p5 = scmp.ne.s32.totalorder %s467_s15, %s7652_s20  ;;  %p7660_p4 = scmp.lt.s32.totalorder %s467_s15, %s467_s15 }
 0x10b   : > { %p7661_p10 = scmp.lt.s32.totalorder %s7659_s14, %s7652_s20 }
 0x10c   : > { %p7655_p7 = pnand %p7653_p5, %p7966_p8 }
 0x10d   : > { %p7662_p11 = por %p7661_p10, %p7660_p4 }
 0x10e   : > { %p7656_p9 = pneg %p7655_p7 }
 0x110   : > { %p7663_p12 = pnand %p7662_p11, %p7656_p9 }
 0x112   : > { %7666 = shalt.err (!%p7663_p12)
}
 0x113   : > { %7252 = dma.hbm_to_vmem [thread:$0]  (!%p7950_p6), %s10115_s10, 16, %s467_s15, [#allocation20]  }
 0x114   : > { %s7667_s17 = scalar_lea.hbm %s10117_s12, 16 }
 0x115   : > { %p7668_p1 = scmp.ne.s32.totalorder %s10117_s12, %s7667_s17  ;;  %p7674_p0 = scmp.lt.u32.totalorder %s7667_s17, %s10117_s12 }
 0x117   : > { %p7670_p3 = pnand %p7668_p1, %p7966_p8 }
 0x119   : > { %p7671_p13 = pneg %p7670_p3 }
 0x11b   : > { %p7676_p2 = pnand %p7674_p0, %p7671_p13 }
 0x11d   : > { %7679 = shalt.err (!%p7676_p2)
}
 0x11e   : > { %s7680_s15 = scalar_lea.vmem %s8190_s24, 16  ;;  %s7687_s14 = scalar_lea.vmem %s8190_s24, 32 }
 0x11f   : > { %p7681_p5 = scmp.ne.s32.totalorder %s8190_s24, %s7680_s15  ;;  %p7688_p4 = scmp.lt.s32.totalorder %s8190_s24, %s8190_s24 }
 0x120   : > { %p7689_p10 = scmp.lt.s32.totalorder %s7687_s14, %s7680_s15 }
 0x121   : > { %p7683_p7 = pnand %p7681_p5, %p7966_p8 }
 0x122   : > { %p7690_p11 = por %p7689_p10, %p7688_p4 }
 0x123   : > { %p7684_p9 = pneg %p7683_p7 }
 0x125   : > { %p7691_p12 = pnand %p7690_p11, %p7684_p9 }
 0x127   : > { %7694 = shalt.err (!%p7691_p12)
}
 0x128   : > { %s10174_s16 = sld [smem:[#allocation34_spill]]  ;;  %s10175_s25 = sld [smem:[#allocation35_spill]] }
 0x129   : > { %7258 = dma.hbm_to_vmem [thread:$0]  (!%p7950_p6), %s10117_s12, 16, %s8190_s24, [#allocation23]  }
 0x12a   : > { %s5990_s18 = sadd.s32 4294967294, %s7815_s28   ;;  %s8236_s21 = sadd.s32 1, %s7815_s28  }
 0x12b   : > { %s39_s17 = ssub.s32 %s7815_s28, %s8236_s21  ;;  %s42_s23 = sadd.s32 1, %s7811_s27 }
 0x12c   : > { %p40_p8 = scmp.eq.s32.totalorder %s39_s17, 0  ;;  %p49_p1 = scmp.ne.s32.totalorder %s7811_s27, %s7807_s26 }
 0x12d   : > { %p50_p3 = scmp.eq.s32.totalorder %s7815_s28, 0  ;;  %p337_p7 = scmp.eq.s32.totalorder %s5990_s18, 1 }
 0x12e   : > { %p55_p13 = scmp.ne.s32.totalorder %s7807_s26, %s10174_s16  ;;  %p10177_p2 = scmp.eq.s32.totalorder %s10175_s25, 0 }
 0x12f   : > { %s8247_s19 = scalar_select %p40_p8, %s7811_s27, %s42_s23  }
 0x130   : > { %p8249_p0 = por %p50_p3, %p49_p1  ;;  %p8255_p6 = por %p10177_p2, %p55_p13 }
 0x131   : > { %p331_p5 = scmp.eq.s32.totalorder %s10175_s25, 1  ;;  %p7279_p9 = scmp.lt.s32.totalorder %s7815_s28, 2 }
 0x132   : > { %s501_s20 = sand.u32 1, %s7811_s27   ;;  %p8266_p10 = por %p337_p7, %p55_p13 }
 0x133   : > { %p8262_p4 = por %p331_p5, %p49_p1  ;;  %s6005_s0 = sshll.u32 %s501_s20, 7 }
 0x134   : > { %s10180_s14 = scalar_select %p8266_p10, 1, 0 }
 0x135   : > { %s10179_s15 = scalar_select %p8262_p4, 1, 0 }
 0x136   : > { %s6160_s29 = sshll.u32 %s7815_s28, 11  ;;  %s10181_s23 = sld [smem:[#allocation69_spill]] }
 0x137   : > { %s505_s25 = scalar_lea.vmem [#allocation4], %s6005_s0  ;;  %p8280_p11 = pnand %p7279_p9, %p8249_p0 }
 0x138   : > { %s513_s18 = sshll.u32 %s505_s25, 4  ;;  %s8284_s1 = scalar_lea.sflag [#allocation5], %s501_s20  ;;  %s8276_s18 = int_to_ptr.vmem [resolvable:$true] %s513_s18 }
 0x139   : > { %p7697_p8 = pneg %p8280_p11 }
 0x13c   : > { %s8274_s22 = scalar_lea.hbm %s10181_s23, %s6160_s29  ;;  %s7700_s30 = scalar_lea.hbm %s10181_s23, 4096 }
 0x13d   : > { %s7695_s16 = scalar_lea.hbm %s8274_s22, 2048  ;;  %p7701_p13 = scmp.lt.u32.totalorder %s8274_s22, %s10181_s23 }
 0x13e   : > { %p7696_p12 = scmp.ne.s32.totalorder %s8274_s22, %s7695_s16  ;;  %p7702_p0 = scmp.lt.u32.totalorder %s7700_s30, %s7695_s16 }
 0x13f   : > { %p7704_p5 = scmp.lt.u32.totalorder %s7695_s16, %s8274_s22 }
 0x140   : > { %p7698_p1 = pnand %p7697_p8, %p7696_p12  ;;  %p7703_p2 = por %p7702_p0, %p7701_p13 }
 0x142   : > { %p7699_p3 = pneg %p7698_p1  ;;  %p7705_p7 = por %p7704_p5, %p7703_p2 }
 0x144   : > { %p7706_p9 = pnand %p7705_p7, %p7699_p3 }
 0x146   : > { %7709 = shalt.err (!%p7706_p9)
}
 0x147   : > { %s7710_s20 = scalar_lea.vmem %s8276_s18, 2048  ;;  %s7835_s0 = smov [#allocation4]  }
 0x148   : > { %p7711_p12 = scmp.ne.s32.totalorder %s8276_s18, %s7710_s20  ;;  %s7715_s29 = sshll.u32 %s7835_s0, 4  ;;  %s7716_s29 = int_to_ptr.vmem [resolvable:$false] %s7715_s29 }
 0x149   : > { %s7717_s17 = scalar_lea.vmem %s7716_s29, 4096  ;;  %p7718_p4 = scmp.lt.s32.totalorder %s8276_s18, %s7716_s29 }
 0x14a   : > { %p7713_p1 = pnand %p7711_p12, %p7697_p8  ;;  %p7719_p13 = scmp.lt.s32.totalorder %s7717_s17, %s7710_s20 }
 0x14c   : > { %p7714_p10 = pneg %p7713_p1  ;;  %p7720_p0 = por %p7719_p13, %p7718_p4 }
 0x14e   : > { %p7721_p2 = pnand %p7720_p0, %p7714_p10 }
 0x150   : > { %7724 = shalt.err (!%p7721_p2)
}
 0x151   : > { %s10183_s16 = smov 8   ;;  %s10184_s30 = smov 128  }
 0x152   : > { %7262 = dma.hbm_to_vmem [thread:$0]  (!%p8280_p11), %s8274_s22, 2048, %s8276_s18, %s8284_s1, %s10184_s30, %s10184_s30, %s10183_s16  }
 0x153   : > { %s10185_s25 = sld [smem:[#allocation36_spill]] }
 0x159   : > { %p10186_p8 = scmp.ne.s32.totalorder %s10185_s25, 0 }
 0x15b   : > { %525 = sbr.rel (%p10186_p8) target bundleno = 2407 (0x967), region = 72 }
 0x162   : > { %s8318_s0 = sand.u32 1, %s7807_s26  }
 0x163   : > { %s6010_s20 = sshll.u32 %s8318_s0, 7  ;;  %s528_s29 = scalar_lea.sflag [#allocation5], %s8318_s0 }
 0x164   : > { %s8322_s17 = scalar_lea.vmem [#allocation4], %s6010_s20 }
 0x165   : > { %7770 = dma.done.wait (%p8255_p6), %s528_s29, 2048  }
 0x166   : > { %7772 = vsyncadd (%p8255_p6), %s528_s29, 4294965248  ;;  %s10187_s13 = sld [smem:[#allocation35_spill]] }
 0x16c   : > { %p10188_p4 = scmp.eq.s32.totalorder %s10187_s13, 0 }
 0x16e   : > { %7774 = dma.done.wait (%p10188_p4), [#allocation8], 6208   ;;  %p10189_p10 = pmov %p10188_p4 }
 0x16f   : > { %p10190_p11 = pmov %p10188_p4 }
 0x170   : > { %7776 = vsyncadd (%p10189_p10), [#allocation8], 4294961088 }
 0x171   : > { %7778 = dma.done.wait (%p10190_p11), [#allocation11], 49216   ;;  %p10191_p3 = pmov %p10188_p4 }
 0x173   : > { %7780 = vsyncadd (%p10191_p3), [#allocation11], 4294918080  ;;  %p10192_p5 = pmov %p10191_p3 }
 0x174   : > { %p10193_p7 = pmov %p10191_p3 }
 0x175   : > { %7782 = dma.done.wait (%p10192_p5), [#allocation14], 32800  }
 0x176   : > { %7784 = vsyncadd (%p10193_p7), [#allocation14], 4294934496  ;;  %p10194_p6 = pmov %p10191_p3 }
 0x177   : > { %p10195_p9 = pmov %p10191_p3 }
 0x178   : > { %7786 = dma.done.wait (%p10194_p6), [#allocation17], 4112  }
 0x179   : > { %7788 = vsyncadd (%p10195_p9), [#allocation17], 4294963184  ;;  %p10196_p12 = pmov %p10191_p3 }
 0x17a   : > { %p10197_p1 = pmov %p10191_p3 }
 0x17b   : > { %7790 = dma.done.wait (%p10196_p12), [#allocation20], 2064  }
 0x17c   : > { %7792 = vsyncadd (%p10197_p1), [#allocation20], 4294965232  ;;  %p10198_p13 = pmov %p10197_p1 }
 0x17d   : > { %p10199_p0 = pmov %p10197_p1 }
 0x17e   : > { %7794 = dma.done.wait (%p10198_p13), [#allocation23], 2064  }
 0x17f   : > { %7796 = vsyncadd (%p10199_p0), [#allocation23], 4294965232  ;;  %vm623_vm0 = vcmask 253952   ;;  %v10130_v0 = vmov 0.0   ;;  %vm656_vm1 = vcmask 261120   ;;  %v640_v1 = vld [vmem:[%s8322_s17] sm:$0xff] }
 0x180   : > { %632 = vst.msk [vmem:[#allocation2 + $0x11] sm:$0x1] %vm623_vm0, %v10130_v0  ;;  %624 = vst.msk [vmem:[#allocation2] sm:$0x1] %vm623_vm0, %v10130_v0  ;;  %1065 = vmatprep.mubr.f32.mxu0 %v10130_v0  ;;  %1226 = vmatprep.mubr.f32.mxu1 %v10130_v0  ;;  %v641_v2 = vld [vmem:[%s8322_s17 + $0x8] sm:$0xff]  ;;  %v642_v3 = vld [vmem:[%s8322_s17 + $0x10] sm:$0xff] }
 0x181   : > { %625 = vst.msk [vmem:[#allocation2 + $0x18] sm:$0x1] %vm623_vm0, %v10130_v0  ;;  %626 = vst.msk [vmem:[#allocation2 + $0x30] sm:$0x1] %vm623_vm0, %v10130_v0  ;;  %v643_v4 = vld [vmem:[%s8322_s17 + $0x18] sm:$0xff]  ;;  %v644_v5 = vld [vmem:[%s8322_s17 + $0x20] sm:$0xff] }
 0x182   : > { %627 = vst.msk [vmem:[#allocation2 + $0x48] sm:$0x1] %vm623_vm0, %v10130_v0  ;;  %628 = vst.msk [vmem:[#allocation2 + $0x60] sm:$0x1] %vm623_vm0, %v10130_v0  ;;  %v645_v6 = vld [vmem:[%s8322_s17 + $0x28] sm:$0xff]  ;;  %v646_v7 = vld [vmem:[%s8322_s17 + $0x30] sm:$0xff] }
 0x183   : > { %629 = vst.msk [vmem:[#allocation2 + $0x78] sm:$0x1] %vm623_vm0, %v10130_v0  ;;  %630 = vst.msk [vmem:[#allocation2 + $0x90] sm:$0x1] %vm623_vm0, %v10130_v0  ;;  %v647_v8 = vld [vmem:[%s8322_s17 + $0x38] sm:$0xff]  ;;  %v648_v9 = vld [vmem:[%s8322_s17 + $0x40] sm:$0xff] }
 0x184   : > { %631 = vst.msk [vmem:[#allocation2 + $0xa8] sm:$0x1] %vm623_vm0, %v10130_v0  ;;  %633 = vst.msk [vmem:[#allocation2 + $0x29] sm:$0x1] %vm623_vm0, %v10130_v0  ;;  %v649_v10 = vld [vmem:[%s8322_s17 + $0x48] sm:$0xff]  ;;  %v650_v11 = vld [vmem:[%s8322_s17 + $0x50] sm:$0xff] }
 0x185   : > { %634 = vst.msk [vmem:[#allocation2 + $0x41] sm:$0x1] %vm623_vm0, %v10130_v0  ;;  %635 = vst.msk [vmem:[#allocation2 + $0x59] sm:$0x1] %vm623_vm0, %v10130_v0  ;;  %v651_v12 = vld [vmem:[%s8322_s17 + $0x58] sm:$0xff]  ;;  %v652_v13 = vld [vmem:[%s8322_s17 + $0x60] sm:$0xff] }
 0x186   : > { %636 = vst.msk [vmem:[#allocation2 + $0x71] sm:$0x1] %vm623_vm0, %v10130_v0  ;;  %637 = vst.msk [vmem:[#allocation2 + $0x89] sm:$0x1] %vm623_vm0, %v10130_v0  ;;  %v653_v14 = vld [vmem:[%s8322_s17 + $0x68] sm:$0xff]  ;;  %v654_v15 = vld [vmem:[%s8322_s17 + $0x70] sm:$0xff] }
 0x187   : > { %638 = vst.msk [vmem:[#allocation2 + $0xa1] sm:$0x1] %vm623_vm0, %v10130_v0  ;;  %639 = vst.msk [vmem:[#allocation2 + $0xb9] sm:$0x1] %vm623_vm0, %v10130_v0  ;;  %v655_v16 = vld [vmem:[%s8322_s17 + $0x78] sm:$0xff]  ;;  %v883_v17 = vld [vmem:[#allocation7 + $0x8] sm:$0xff] }
 0x188   : > { %657 = vst.msk [vmem:[#allocation2 + $0x1] sm:$0xff] %vm656_vm1, %v640_v1  ;;  %658 = vst.msk [vmem:[#allocation2 + $0x9] sm:$0xff] %vm656_vm1, %v641_v2  ;;  %v887_v18 = vld [vmem:[#allocation7 + $0x28] sm:$0xff]  ;;  %v885_v20 = vld [vmem:[#allocation7 + $0x18] sm:$0xff]  ;;  %s7837_s1 = smov 32   ;;  %s7838_s22 = smov 64  }
 0x189   : > { %659 = vst.msk [vmem:[#allocation2 + $0x19] sm:$0xff] %vm656_vm1, %v642_v3  ;;  %660 = vst.msk [vmem:[#allocation2 + $0x21] sm:$0xff] %vm656_vm1, %v643_v4  ;;  %v6300_v19 = vpack.c.bf16 %v887_v18, %v883_v17  ;;  %v889_v21 = vld [vmem:[#allocation7 + $0x38] sm:$0xff]  ;;  %v882_v22 = vld [vmem:[#allocation7] sm:$0xff]  ;;  %vm865_vm2 = vcmask 523264   ;;  %vm952_vm3 = vcmask 785408  }
 0x18a   : > { %661 = vst.msk [vmem:[#allocation2 + $0x31] sm:$0xff] %vm656_vm1, %v644_v5  ;;  %662 = vst.msk [vmem:[#allocation2 + $0x39] sm:$0xff] %vm656_vm1, %v645_v6  ;;  %v6324_v23 = vpack.c.bf16 %v889_v21, %v885_v20  ;;  %v886_v24 = vld [vmem:[#allocation7 + $0x20] sm:$0xff]  ;;  %v884_v25 = vld [vmem:[#allocation7 + $0x10] sm:$0xff]  ;;  %vm2686_vm5 = vcmask 1042434   ;;  %vm2688_vm6 = vcmask 1043459  }
 0x18b   : > { %663 = vst.msk [vmem:[#allocation2 + $0x49] sm:$0xff] %vm656_vm1, %v646_v7  ;;  %664 = vst.msk [vmem:[#allocation2 + $0x51] sm:$0xff] %vm656_vm1, %v647_v8  ;;  %v888_v26 = vld [vmem:[#allocation7 + $0x30] sm:$0xff]  ;;  %6301 = vmatprep.subr.bf16.mxu0 %v6300_v19  ;;  %v6302_v29 = vpack.c.bf16 %v886_v24, %v882_v22  ;;  %v891_v37 = vld [vmem:[#allocation7 + $0x48] sm:$0xff]  ;;  %vm2690_vm7 = vcmask 1044484   ;;  %vm2692_vm8 = vcmask 1045509  }
 0x18c   : > { %665 = vst.msk [vmem:[#allocation2 + $0x61] sm:$0xff] %vm656_vm1, %v648_v9  ;;  %666 = vst.msk [vmem:[#allocation2 + $0x69] sm:$0xff] %vm656_vm1, %v649_v10  ;;  %v6326_v30 = vpack.c.bf16 %v888_v26, %v884_v25  ;;  %6325 = vmatprep.subr.bf16.mxu1 %v6324_v23  ;;  %v895_v38 = vld [vmem:[#allocation7 + $0x68] sm:$0xff]  ;;  %v893_v39 = vld [vmem:[#allocation7 + $0x58] sm:$0xff]  ;;  %vm2694_vm9 = vcmask 1046534   ;;  %vm2696_vm10 = vcmask 1047559  }
 0x18d   : > { %667 = vst.msk [vmem:[#allocation2 + $0x79] sm:$0xff] %vm656_vm1, %v650_v11  ;;  %668 = vst.msk [vmem:[#allocation2 + $0x81] sm:$0xff] %vm656_vm1, %v651_v12  ;;  %6303 = vmatpush1.bf16.msra.mxu0 %v6302_v29  ;;  %v897_v40 = vld [vmem:[#allocation7 + $0x78] sm:$0xff]  ;;  %v6304_v43 = vpack.c.bf16 %v895_v38, %v891_v37  ;;  %v890_v45 = vld [vmem:[#allocation7 + $0x40] sm:$0xff]  ;;  %vm2932_vm11 = vcmask 1046528   ;;  %vm3061_vm12 = vcmask 1045504  }
 0x18e   : > { %669 = vst.msk [vmem:[#allocation2 + $0x91] sm:$0xff] %vm656_vm1, %v652_v13  ;;  %670 = vst.msk [vmem:[#allocation2 + $0x99] sm:$0xff] %vm656_vm1, %v653_v14  ;;  %6327 = vmatpush1.bf16.msra.mxu1 %v6326_v30  ;;  %v6328_v44 = vpack.c.bf16 %v897_v40, %v893_v39  ;;  %v894_v46 = vld [vmem:[#allocation7 + $0x60] sm:$0xff]  ;;  %v892_v47 = vld [vmem:[#allocation7 + $0x50] sm:$0xff]  ;;  %vm4779_vm13 = vcmask 1041409   ;;  %vm7841_vm14 = vmmov 0  }
 0x18f   : > { %671 = vst.msk [vmem:[#allocation2 + $0xa9] sm:$0xff] %vm656_vm1, %v654_v15  ;;  %672 = vst.msk [vmem:[#allocation2 + $0xb1] sm:$0xff] %vm656_vm1, %v655_v16  ;;  %v689_v27 = vld [vmem:[#allocation2 + $0x1] sm:$0xff]  ;;  %v690_v28 = vld [vmem:[#allocation2 + $0x9] sm:$0xff]  ;;  %v6306_v48 = vpack.c.bf16 %v894_v46, %v890_v45  ;;  %6305 = vmatprep.subr.bf16.mxu0 %v6304_v43  ;;  %s6023_s24 = sshll.u32 %s8318_s0, 3  ;;  %s6156_s18 = sshll.u32 %s10187_s13, 7 }
 0x190   : > { %737 = vrot.lane.b32.xlu0 %v689_v27, %s7837_s1  ;;  %739 = vrot.lane.b32.xlu1 %v690_v28, %s7837_s1  ;;  %v705_v31 = vld [vmem:[#allocation2 + $0x2] sm:$0xff]  ;;  %v706_v32 = vld [vmem:[#allocation2 + $0xa] sm:$0xff]  ;;  %v691_v33 = vld [vmem:[#allocation2 + $0x19] sm:$0xff]  ;;  %s621_s16 = scalar_lea.vmem [#allocation25], %s6023_s24  ;;  %s10309_s29 = sld [smem:[#allocation72_spill]] }
 0x191   : > { %v707_v34 = vld [vmem:[#allocation2 + $0x1a] sm:$0xff]  ;;  %v708_v36 = vld [vmem:[#allocation2 + $0x22] sm:$0xff]  ;;  %v693_v41 = vld [vmem:[#allocation2 + $0x31] sm:$0xff]  ;;  %6329 = vmatprep.subr.bf16.mxu1 %v6328_v44  ;;  %6307 = vmatpush1.bf16.msra.mxu0 %v6306_v48  ;;  %s5806_s30 = sshll.u32 %s621_s16, 4  ;;  %p10310_p8 = scmp.ne.s32.totalorder %s10179_s15, 0  ;;  %s10063_s30 = int_to_ptr.vmem [resolvable:$true] %s5806_s30 }
 0x192   : > { %v692_v35 = vld [vmem:[#allocation2 + $0x21] sm:$0xff]  ;;  %v709_v42 = vld [vmem:[#allocation2 + $0x32] sm:$0xff]  ;;  %v695_v21 = vld [vmem:[#allocation2 + $0x49] sm:$0xff]  ;;  %s7842_s13 = smov [#allocation25]  }
 0x193   : > { %v896_v49 = vld [vmem:[#allocation7 + $0x70] sm:$0xff]  ;;  %v899_v50 = vld [vmem:[#allocation7 + $0x88] sm:$0xff]  ;;  %v901_v54 = vld [vmem:[#allocation7 + $0x98] sm:$0xff]  ;;  %s7729_s24 = sshll.u32 %s7842_s13, 4  ;;  %s7730_s24 = int_to_ptr.vmem [resolvable:$false] %s7729_s24 }
 0x194   : > { %801 = vrot.lane.b32.xlu0 %v705_v31, %s7838_s22  ;;  %803 = vrot.lane.b32.xlu1 %v706_v32, %s7838_s22  ;;  %v903_v51 = vld [vmem:[#allocation7 + $0xa8] sm:$0xff]  ;;  %v6330_v52 = vpack.c.bf16 %v896_v49, %v892_v47  ;;  %v905_v55 = vld [vmem:[#allocation7 + $0xb8] sm:$0xff]  ;;  %v898_v56 = vld [vmem:[#allocation7 + $0x80] sm:$0xff]  ;;  %s7731_s2 = scalar_lea.vmem %s7730_s24, 256  ;;  %p7732_p11 = scmp.lt.s32.totalorder %s10063_s30, %s7730_s24 }
 0x195   : > { %v6308_v53 = vpack.c.bf16 %v903_v51, %v899_v50  ;;  %v6332_v57 = vpack.c.bf16 %v905_v55, %v901_v54  ;;  %v902_v58 = vld [vmem:[#allocation7 + $0xa0] sm:$0xff]  ;;  %v900_v59 = vld [vmem:[#allocation7 + $0x90] sm:$0xff]  ;;  %v907_v2 = vld [vmem:[#allocation7 + $0xc8] sm:$0xff] }
 0x196   : > { %v904_v60 = vld [vmem:[#allocation7 + $0xb0] sm:$0xff]  ;;  %v694_v61 = vld [vmem:[#allocation2 + $0x39] sm:$0xff]  ;;  %6331 = vmatpush1.bf16.msra.mxu1 %v6330_v52  ;;  %v6310_v63 = vpack.c.bf16 %v902_v58, %v898_v56  ;;  %v911_v3 = vld [vmem:[#allocation7 + $0xe8] sm:$0xff]  ;;  %s10061_s17 = scalar_lea.hbm %s10309_s29, %s6156_s18 }
 0x197   : > { %v710_v62 = vld [vmem:[#allocation2 + $0x3a] sm:$0xff]  ;;  %6309 = vmatprep.subr.bf16.mxu0 %v6308_v53  ;;  %v6334_v1 = vpack.c.bf16 %v904_v60, %v900_v59  ;;  %v6312_v5 = vpack.c.bf16 %v911_v3, %v907_v2  ;;  %6333 = vmatprep.subr.bf16.mxu1 %v6332_v57  ;;  %v908_v10 = vld [vmem:[#allocation7 + $0xd0] sm:$0xff]  ;;  %v915_v12 = vld [vmem:[#allocation7 + $0x108] sm:$0xff] }
 0x198   : > { %741 = vrot.lane.b32.xlu0 %v691_v33, %s7837_s1  ;;  %805 = vrot.lane.b32.xlu1 %v707_v34, %s7838_s22  ;;  %v909_v4 = vld [vmem:[#allocation7 + $0xd8] sm:$0xff]  ;;  %v906_v7 = vld [vmem:[#allocation7 + $0xc0] sm:$0xff]  ;;  %v912_v11 = vld [vmem:[#allocation7 + $0xf0] sm:$0xff] }
 0x199   : > { %v913_v6 = vld [vmem:[#allocation7 + $0xf8] sm:$0xff]  ;;  %v910_v8 = vld [vmem:[#allocation7 + $0xe0] sm:$0xff]  ;;  %6311 = vmatpush1.bf16.msra.mxu0 %v6310_v63  ;;  %v919_v14 = vld [vmem:[#allocation7 + $0x128] sm:$0xff]  ;;  %v6338_v17 = vpack.c.bf16 %v912_v11, %v908_v10 }
 0x19a   : > { %v6336_v9 = vpack.c.bf16 %v913_v6, %v909_v4  ;;  %v6314_v13 = vpack.c.bf16 %v910_v8, %v906_v7  ;;  %v917_v15 = vld [vmem:[#allocation7 + $0x118] sm:$0xff]  ;;  %6335 = vmatpush1.bf16.msra.mxu1 %v6334_v1  ;;  %6313 = vmatprep.subr.bf16.mxu0 %v6312_v5  ;;  %v6316_v18 = vpack.c.bf16 %v919_v14, %v915_v12  ;;  %v914_v19 = vld [vmem:[#allocation7 + $0x100] sm:$0xff]  ;;  %v916_v22 = vld [vmem:[#allocation7 + $0x110] sm:$0xff] }
 0x19b   : > { %v921_v16 = vld [vmem:[#allocation7 + $0x138] sm:$0xff]  ;;  %v918_v20 = vld [vmem:[#allocation7 + $0x120] sm:$0xff]  ;;  %v920_v23 = vld [vmem:[#allocation7 + $0x130] sm:$0xff] }
 0x19c   : > { %743 = vrot.lane.b32.xlu0 %v692_v35, %s7837_s1  ;;  %807 = vrot.lane.b32.xlu1 %v708_v36, %s7838_s22  ;;  %v711_v24 = vld [vmem:[#allocation2 + $0x4a] sm:$0xff]  ;;  %v6340_v25 = vpack.c.bf16 %v921_v16, %v917_v15  ;;  %v6318_v28 = vpack.c.bf16 %v918_v20, %v914_v19  ;;  %v925_v29 = vld [vmem:[#allocation7 + $0x158] sm:$0xff]  ;;  %v6342_v31 = vpack.c.bf16 %v920_v23, %v916_v22  ;;  %v922_v33 = vld [vmem:[#allocation7 + $0x140] sm:$0xff] }
 0x19d   : > { %6337 = vmatprep.subr.bf16.mxu1 %v6336_v9  ;;  %v923_v26 = vld [vmem:[#allocation7 + $0x148] sm:$0xff]  ;;  %6315 = vmatpush1.bf16.msra.mxu0 %v6314_v13  ;;  %v929_v30 = vld [vmem:[#allocation7 + $0x178] sm:$0xff]  ;;  %v926_v34 = vld [vmem:[#allocation7 + $0x160] sm:$0xff] }
 0x19e   : > { %v927_v27 = vld [vmem:[#allocation7 + $0x168] sm:$0xff]  ;;  %6339 = vmatpush1.bf16.msra.mxu1 %v6338_v17  ;;  %6317 = vmatprep.subr.bf16.mxu0 %v6316_v18  ;;  %v924_v35 = vld [vmem:[#allocation7 + $0x150] sm:$0xff]  ;;  %v6344_v39 = vpack.c.bf16 %v929_v30, %v925_v29  ;;  %v6322_v40 = vpack.c.bf16 %v926_v34, %v922_v33  ;;  %v699_v46 = vld [vmem:[#allocation2 + $0x79] sm:$0xff] }
 0x19f   : > { %v6320_v32 = vpack.c.bf16 %v927_v27, %v923_v26  ;;  %v928_v36 = vld [vmem:[#allocation7 + $0x170] sm:$0xff]  ;;  %6341 = vmatprep.subr.bf16.mxu1 %v6340_v25  ;;  %v713_v43 = vld [vmem:[#allocation2 + $0x62] sm:$0xff]  ;;  %v715_v47 = vld [vmem:[#allocation2 + $0x7a] sm:$0xff] }
 0x1a0   : > { %745 = vrot.lane.b32.xlu0 %v693_v41, %s7837_s1  ;;  %809 = vrot.lane.b32.xlu1 %v709_v42, %s7838_s22  ;;  %v696_v37 = vld [vmem:[#allocation2 + $0x51] sm:$0xff]  ;;  %v6346_v41 = vpack.c.bf16 %v928_v36, %v924_v35  ;;  %v697_v42 = vld [vmem:[#allocation2 + $0x61] sm:$0xff]  ;;  %v698_v44 = vld [vmem:[#allocation2 + $0x69] sm:$0xff] }
 0x1a1   : > { %v712_v38 = vld [vmem:[#allocation2 + $0x52] sm:$0xff]  ;;  %6319 = vmatpush1.bf16.msra.mxu0 %v6318_v28  ;;  %v714_v45 = vld [vmem:[#allocation2 + $0x6a] sm:$0xff]  ;;  %v700_v48 = vld [vmem:[#allocation2 + $0x81] sm:$0xff] }
 0x1a2   : > { %6343 = vmatpush1.bf16.msra.mxu1 %v6342_v31  ;;  %6321 = vmatprep.subr.bf16.mxu0 %v6320_v32  ;;  %v716_v49 = vld [vmem:[#allocation2 + $0x82] sm:$0xff]  ;;  %v701_v50 = vld [vmem:[#allocation2 + $0x91] sm:$0xff]  ;;  %v702_v52 = vld [vmem:[#allocation2 + $0x99] sm:$0xff] }
 0x1a3   : > { %6345 = vmatprep.subr.bf16.mxu1 %v6344_v39  ;;  %v717_v51 = vld [vmem:[#allocation2 + $0x92] sm:$0xff]  ;;  %v718_v53 = vld [vmem:[#allocation2 + $0x9a] sm:$0xff]  ;;  %v703_v54 = vld [vmem:[#allocation2 + $0xa9] sm:$0xff] }
 0x1a4   : > { %747 = vrot.lane.b32.xlu0 %v694_v61, %s7837_s1  ;;  %811 = vrot.lane.b32.xlu1 %v710_v62, %s7838_s22  ;;  %v3127_v55 = vld [vmem:[#allocation10 + $0x8] sm:$0xff]  ;;  %v673_v2 = vld [vmem:[#allocation2] sm:$0xff]  ;;  %v675_v28 = vld [vmem:[#allocation2 + $0x18] sm:$0xff] }
 0x1a5   : > { %6323 = vmatpush1.bf16.msra.mxu0 %v6322_v40  ;;  %v3131_v56 = vld [vmem:[#allocation10 + $0x28] sm:$0xff]  ;;  %v3126_v4 = vld [vmem:[#allocation10] sm:$0xff] }
 0x1a6   : > { %6347 = vmatpush1.bf16.msra.mxu1 %v6346_v41  ;;  %v719_v57 = vld [vmem:[#allocation2 + $0xaa] sm:$0xff]  ;;  %v6348_v58 = vpack.c.bf16 %v3131_v56, %v3127_v55  ;;  %v720_v63 = vld [vmem:[#allocation2 + $0xb2] sm:$0xff]  ;;  %v676_v33 = vld [vmem:[#allocation2 + $0x20] sm:$0xff] }
 0x1a7   : > { %v3255_v59 = vld [vmem:[#allocation10 + $0x408] sm:$0xff]  ;;  %v3130_v5 = vld [vmem:[#allocation10 + $0x20] sm:$0xff] }
 0x1a8   : > { %749 = vrot.lane.b32.xlu0 %v695_v21, %s7837_s1  ;;  %813 = vrot.lane.b32.xlu1 %v711_v24, %s7838_s22  ;;  %v3259_v60 = vld [vmem:[#allocation10 + $0x428] sm:$0xff]  ;;  %v3254_v7 = vld [vmem:[#allocation10 + $0x400] sm:$0xff]  ;;  %v6350_v16 = vpack.c.bf16 %v3130_v5, %v3126_v4  ;;  %v678_v5 = vld [vmem:[#allocation2 + $0x38] sm:$0xff] }
 0x1a9   : > { %v6412_v61 = vpack.c.bf16 %v3259_v60, %v3255_v59  ;;  %6349 = vmatprep.subr.bf16.mxu1 %v6348_v58  ;;  %v704_v62 = vld [vmem:[#allocation2 + $0xb1] sm:$0xff]  ;;  %v3258_v8 = vld [vmem:[#allocation10 + $0x420] sm:$0xff] }
 0x1aa   : > { %v3135_v6 = vld [vmem:[#allocation10 + $0x48] sm:$0xff]  ;;  %v6414_v17 = vpack.c.bf16 %v3258_v8, %v3254_v7  ;;  %v3134_v18 = vld [vmem:[#allocation10 + $0x40] sm:$0xff] }
 0x1ab   : > { %6413 = vmatprep.subr.bf16.mxu0 %v6412_v61  ;;  %v3139_v9 = vld [vmem:[#allocation10 + $0x68] sm:$0xff]  ;;  %v3138_v19 = vld [vmem:[#allocation10 + $0x60] sm:$0xff] }
 0x1ac   : > { %751 = vrot.lane.b32.xlu0 %v696_v37, %s7837_s1  ;;  %815 = vrot.lane.b32.xlu1 %v712_v38, %s7838_s22  ;;  %v3263_v10 = vld [vmem:[#allocation10 + $0x448] sm:$0xff]  ;;  %v6352_v22 = vpack.c.bf16 %v3139_v9, %v3135_v6  ;;  %v3262_v25 = vld [vmem:[#allocation10 + $0x440] sm:$0xff]  ;;  %v6354_v34 = vpack.c.bf16 %v3138_v19, %v3134_v18 }
 0x1ad   : > { %v3267_v11 = vld [vmem:[#allocation10 + $0x468] sm:$0xff]  ;;  %v3266_v26 = vld [vmem:[#allocation10 + $0x460] sm:$0xff] }
 0x1ae   : > { %v674_v12 = vld [vmem:[#allocation2 + $0x8] sm:$0xff]  ;;  %v6416_v23 = vpack.c.bf16 %v3267_v11, %v3263_v10  ;;  %v6418_v36 = vpack.c.bf16 %v3266_v26, %v3262_v25 }
 0x1af   : > { %v3143_v20 = vld [vmem:[#allocation10 + $0x88] sm:$0xff]  ;;  %v3142_v37 = vld [vmem:[#allocation10 + $0x80] sm:$0xff] }
 0x1b0   : > { %753 = vrot.lane.b32.xlu0 %v697_v42, %s7837_s1  ;;  %817 = vrot.lane.b32.xlu1 %v713_v43, %s7838_s22  ;;  %v3147_v24 = vld [vmem:[#allocation10 + $0xa8] sm:$0xff]  ;;  %v3146_v38 = vld [vmem:[#allocation10 + $0xa0] sm:$0xff] }
 0x1b1   : > { %v3271_v29 = vld [vmem:[#allocation10 + $0x488] sm:$0xff]  ;;  %v6356_v35 = vpack.c.bf16 %v3147_v24, %v3143_v20  ;;  %v3270_v43 = vld [vmem:[#allocation10 + $0x480] sm:$0xff] }
 0x1b2   : > { %v3275_v30 = vld [vmem:[#allocation10 + $0x4a8] sm:$0xff]  ;;  %v3154_v55 = vld [vmem:[#allocation10 + $0xe0] sm:$0xff] }
 0x1b3   : > { %v6420_v41 = vpack.c.bf16 %v3275_v30, %v3271_v29  ;;  %v3151_v42 = vld [vmem:[#allocation10 + $0xc8] sm:$0xff]  ;;  %v3278_v60 = vld [vmem:[#allocation10 + $0x4c0] sm:$0xff] }
 0x1b4   : > { %755 = vrot.lane.b32.xlu0 %v698_v44, %s7837_s1  ;;  %819 = vrot.lane.b32.xlu1 %v714_v45, %s7838_s22  ;;  %v3274_v44 = vld [vmem:[#allocation10 + $0x4a0] sm:$0xff]  ;;  %v3155_v45 = vld [vmem:[#allocation10 + $0xe8] sm:$0xff] }
 0x1b5   : > { %v3159_v59 = vld [vmem:[#allocation10 + $0x108] sm:$0xff]  ;;  %v3282_v61 = vld [vmem:[#allocation10 + $0x4e0] sm:$0xff] }
 0x1b6   : > { %v6426_v7 = vpack.c.bf16 %v3282_v61, %v3278_v60  ;;  %v3158_v8 = vld [vmem:[#allocation10 + $0x100] sm:$0xff]  ;;  %v3299_v18 = vld [vmem:[#allocation10 + $0x568] sm:$0xff] }
 0x1b7   : > { %v3162_v9 = vld [vmem:[#allocation10 + $0x120] sm:$0xff]  ;;  %v3175_v30 = vld [vmem:[#allocation10 + $0x188] sm:$0xff] }
 0x1b8   : > { %757 = vrot.lane.b32.xlu0 %v699_v46, %s7837_s1  ;;  %821 = vrot.lane.b32.xlu1 %v715_v47, %s7838_s22  ;;  %v3279_v46 = vld [vmem:[#allocation10 + $0x4c8] sm:$0xff]  ;;  %v3166_v25 = vld [vmem:[#allocation10 + $0x140] sm:$0xff] }
 0x1b9   : > { %v3283_v47 = vld [vmem:[#allocation10 + $0x4e8] sm:$0xff]  ;;  %v3170_v26 = vld [vmem:[#allocation10 + $0x160] sm:$0xff] }
 0x1ba   : > { %v6424_v58 = vpack.c.bf16 %v3283_v47, %v3279_v46  ;;  %v3302_v46 = vld [vmem:[#allocation10 + $0x580] sm:$0xff] }
 0x1bb   : > { %v3306_v47 = vld [vmem:[#allocation10 + $0x5a0] sm:$0xff] }
 0x1bc   : > { %759 = vrot.lane.b32.xlu0 %v700_v48, %s7837_s1  ;;  %823 = vrot.lane.b32.xlu1 %v716_v49, %s7838_s22  ;;  %v681_v60 = vld [vmem:[#allocation2 + $0x60] sm:$0xff] }
 0x1c0   : > { %761 = vrot.lane.b32.xlu0 %v701_v50, %s7837_s1  ;;  %825 = vrot.lane.b32.xlu1 %v717_v51, %s7838_s22  ;;  %v677_v51 = vld [vmem:[#allocation2 + $0x30] sm:$0xff] }
 0x1c4   : > { %763 = vrot.lane.b32.xlu0 %v702_v52, %s7837_s1  ;;  %827 = vrot.lane.b32.xlu1 %v718_v53, %s7838_s22  ;;  %v6358_v52 = vpack.c.bf16 %v3146_v38, %v3142_v37  ;;  %v6422_v53 = vpack.c.bf16 %v3274_v44, %v3270_v43  ;;  %v3178_v44 = vld [vmem:[#allocation10 + $0x1a0] sm:$0xff] }
 0x1c8   : > { %765 = vrot.lane.b32.xlu0 %v703_v54, %s7837_s1  ;;  %829 = vrot.lane.b32.xlu1 %v719_v57, %s7838_s22  ;;  %v3150_v54 = vld [vmem:[#allocation10 + $0xc0] sm:$0xff]  ;;  %v6360_v57 = vpack.c.bf16 %v3155_v45, %v3151_v42 }
 0x1c9   : > { %v6362_v6 = vpack.c.bf16 %v3154_v55, %v3150_v54  ;;  %v6438_v55 = vpack.c.bf16 %v3306_v47, %v3302_v46  ;;  %v3314_v46 = vld [vmem:[#allocation10 + $0x5e0] sm:$0xff] }
 0x1ca   : > { %v3190_v47 = vld [vmem:[#allocation10 + $0x200] sm:$0xff] }
 0x1cc   : > { %767 = vrot.lane.b32.xlu0 %v704_v62, %s7837_s1  ;;  %831 = vrot.lane.b32.xlu1 %v720_v63, %s7838_s22  ;;  %v3163_v62 = vld [vmem:[#allocation10 + $0x128] sm:$0xff]  ;;  %s5793_s1 = scalar_lea.sflag [#allocation6], %s8318_s0  ;;  %s7725_s22 = scalar_lea.vmem %s10063_s30, 128 }
 0x1cd   : > { %v3287_v63 = vld [vmem:[#allocation10 + $0x508] sm:$0xff]  ;;  %v6364_v11 = vpack.c.bf16 %v3163_v62, %v3159_v59  ;;  %v3186_v59 = vld [vmem:[#allocation10 + $0x1e0] sm:$0xff]  ;;  %p7726_p2 = scmp.ne.s32.totalorder %s10063_s30, %s7725_s22  ;;  %p7733_p3 = scmp.lt.s32.totalorder %s7731_s2, %s7725_s22 }
 0x1cf   : > { %p7727_p4 = pnand %p7726_p2, %p10310_p8  ;;  %p7734_p5 = por %p7733_p3, %p7732_p11 }
 0x1d1   : > { %p7728_p10 = pneg %p7727_p4 }
 0x1d3   : > { %p7735_p7 = pnand %p7734_p5, %p7728_p10 }
 0x202   : > { %v738_v1 = vpop.permute.xlu0 %737  ;;  %v740_v3 = vpop.permute.xlu1 %739 }
 0x203   : > { %v849_v13 = vsel %vm656_vm1, %v673_v2, %v738_v1  ;;  %v850_v27 = vsel %vm656_vm1, %v674_v12, %v740_v3  ;;  %v3291_v1 = vld [vmem:[#allocation10 + $0x528] sm:$0xff] }
 0x204   : > { %v6428_v12 = vpack.c.bf16 %v3291_v1, %v3287_v63 }
 0x206   : > { %v802_v14 = vpop.permute.xlu0 %801  ;;  %v804_v15 = vpop.permute.xlu1 %803 }
 0x207   : > { %v866_v21 = vsel %vm865_vm2, %v849_v13, %v802_v14  ;;  %v867_v39 = vsel %vm865_vm2, %v850_v27, %v804_v15  ;;  %v3167_v13 = vld [vmem:[#allocation10 + $0x148] sm:$0xff]  ;;  %v3286_v14 = vld [vmem:[#allocation10 + $0x500] sm:$0xff] }
 0x208   : > { %6024 = vmatmul.mubr.msk.f32.vlgmr.msra.gmra.mrb[0].mxu0 %vm952_vm3, %v866_v21  ;;  %6040 = vmatmul.mubr.msk.f32.vlgmr.msra.gmra.mrb[0].mxu1 %vm952_vm3, %v866_v21  ;;  %v3290_v15 = vld [vmem:[#allocation10 + $0x520] sm:$0xff] }
 0x209   : > { %1071 = vmatprep.mubr.f32.mxu0 %v10130_v0  ;;  %1232 = vmatprep.mubr.f32.mxu1 %v10130_v0  ;;  %v6430_v24 = vpack.c.bf16 %v3290_v15, %v3286_v14 }
 0x20a   : > { %v742_v31 = vpop.permute.xlu0 %741  ;;  %v806_v32 = vpop.permute.xlu1 %805  ;;  %6351 = vmatpush1.bf16.msra.mxu1 %v6350_v16  ;;  %6415 = vmatpush1.bf16.msra.mxu0 %v6414_v17  ;;  %v3171_v16 = vld [vmem:[#allocation10 + $0x168] sm:$0xff] }
 0x20b   : > { %v851_v40 = vsel %vm656_vm1, %v675_v28, %v742_v31  ;;  %6353 = vmatprep.subr.bf16.mxu1 %v6352_v22  ;;  %6417 = vmatprep.subr.bf16.mxu0 %v6416_v23  ;;  %v3295_v17 = vld [vmem:[#allocation10 + $0x548] sm:$0xff]  ;;  %v6366_v23 = vpack.c.bf16 %v3162_v9, %v3158_v8  ;;  %v6368_v28 = vpack.c.bf16 %v3171_v16, %v3167_v13  ;;  %v3294_v31 = vld [vmem:[#allocation10 + $0x540] sm:$0xff]  ;;  %v683_v8 = vld [vmem:[#allocation2 + $0x78] sm:$0xff] }
 0x20c   : > { %6025 = vmatmul.mubr.msk.f32.gmra.mrb[2].mxu0 %vm952_vm3, %v867_v39  ;;  %6041 = vmatmul.mubr.msk.f32.gmra.mrb[2].mxu1 %vm952_vm3, %v867_v39  ;;  %v868_v48 = vsel %vm865_vm2, %v851_v40, %v806_v32  ;;  %v679_v22 = vld [vmem:[#allocation2 + $0x48] sm:$0xff]  ;;  %v6432_v29 = vpack.c.bf16 %v3299_v18, %v3295_v17  ;;  %v6370_v39 = vpack.c.bf16 %v3170_v26, %v3166_v25  ;;  %v684_v13 = vld [vmem:[#allocation2 + $0x80] sm:$0xff]  ;;  %v685_v18 = vld [vmem:[#allocation2 + $0x90] sm:$0xff] }
 0x20d   : > { %1077 = vmatprep.mubr.f32.mxu0 %v10130_v0  ;;  %1238 = vmatprep.mubr.f32.mxu1 %v10130_v0  ;;  %v3298_v32 = vld [vmem:[#allocation10 + $0x560] sm:$0xff] }
 0x20e   : > { %v744_v49 = vpop.permute.xlu0 %743  ;;  %v808_v50 = vpop.permute.xlu1 %807  ;;  %6355 = vmatpush1.bf16.msra.mxu1 %v6354_v34  ;;  %6419 = vmatpush1.bf16.msra.mxu0 %v6418_v36  ;;  %v3303_v34 = vld [vmem:[#allocation10 + $0x588] sm:$0xff]  ;;  %v6434_v40 = vpack.c.bf16 %v3298_v32, %v3294_v31 }
 0x20f   : > { %v852_v56 = vsel %vm656_vm1, %v676_v33, %v744_v49  ;;  %6357 = vmatprep.subr.bf16.mxu1 %v6356_v35  ;;  %6421 = vmatprep.subr.bf16.mxu0 %v6420_v41  ;;  %v3179_v33 = vld [vmem:[#allocation10 + $0x1a8] sm:$0xff]  ;;  %v3174_v41 = vld [vmem:[#allocation10 + $0x180] sm:$0xff] }
 0x210   : > { %6026 = vmatmul.mubr.msk.f32.gmra.mrb[4].mxu0 %vm952_vm3, %v868_v48  ;;  %6042 = vmatmul.mubr.msk.f32.gmra.mrb[4].mxu1 %vm952_vm3, %v868_v48  ;;  %v869_v2 = vsel %vm865_vm2, %v852_v56, %v808_v50  ;;  %v3307_v35 = vld [vmem:[#allocation10 + $0x5a8] sm:$0xff]  ;;  %v6372_v43 = vpack.c.bf16 %v3179_v33, %v3175_v30  ;;  %v6374_v54 = vpack.c.bf16 %v3178_v44, %v3174_v41  ;;  %v3310_v44 = vld [vmem:[#allocation10 + $0x5c0] sm:$0xff] }
 0x211   : > { %1083 = vmatprep.mubr.f32.mxu0 %v10130_v0  ;;  %1244 = vmatprep.mubr.f32.mxu1 %v10130_v0  ;;  %v6436_v45 = vpack.c.bf16 %v3307_v35, %v3303_v34  ;;  %v680_v48 = vld [vmem:[#allocation2 + $0x50] sm:$0xff] }
 0x212   : > { %v746_v3 = vpop.permute.xlu0 %745  ;;  %v810_v4 = vpop.permute.xlu1 %809  ;;  %6359 = vmatpush1.bf16.msra.mxu1 %v6358_v52  ;;  %6423 = vmatpush1.bf16.msra.mxu0 %v6422_v53  ;;  %v3183_v49 = vld [vmem:[#allocation10 + $0x1c8] sm:$0xff] }
 0x213   : > { %v853_v10 = vsel %vm656_vm1, %v677_v51, %v746_v3  ;;  %6361 = vmatprep.subr.bf16.mxu1 %v6360_v57  ;;  %6425 = vmatprep.subr.bf16.mxu0 %v6424_v58  ;;  %v3187_v50 = vld [vmem:[#allocation10 + $0x1e8] sm:$0xff]  ;;  %v3182_v58 = vld [vmem:[#allocation10 + $0x1c0] sm:$0xff] }
 0x214   : > { %6027 = vmatmul.mubr.msk.f32.gmra.mrb[6].mxu0 %vm952_vm3, %v869_v2  ;;  %6043 = vmatmul.mubr.msk.f32.gmra.mrb[6].mxu1 %vm952_vm3, %v869_v2  ;;  %v870_v19 = vsel %vm865_vm2, %v853_v10, %v810_v4  ;;  %v6376_v57 = vpack.c.bf16 %v3187_v50, %v3183_v49  ;;  %v6378_v1 = vpack.c.bf16 %v3186_v59, %v3182_v58  ;;  %v682_v3 = vld [vmem:[#allocation2 + $0x68] sm:$0xff]  ;;  %v688_v33 = vld [vmem:[#allocation2 + $0xb0] sm:$0xff] }
 0x215   : > { %1089 = vmatprep.mubr.f32.mxu0 %v10130_v0  ;;  %1250 = vmatprep.mubr.f32.mxu1 %v10130_v0  ;;  %v6442_v49 = vpack.c.bf16 %v3314_v46, %v3310_v44  ;;  %v3322_v58 = vld [vmem:[#allocation10 + $0x620] sm:$0xff] }
 0x216   : > { %v748_v20 = vpop.permute.xlu0 %747  ;;  %v812_v21 = vpop.permute.xlu1 %811  ;;  %6363 = vmatpush1.bf16.msra.mxu1 %v6362_v6  ;;  %6427 = vmatpush1.bf16.msra.mxu0 %v6426_v7  ;;  %v3198_v59 = vld [vmem:[#allocation10 + $0x240] sm:$0xff] }
 0x217   : > { %v854_v27 = vsel %vm656_vm1, %v678_v5, %v748_v20  ;;  %6365 = vmatprep.subr.bf16.mxu1 %v6364_v11  ;;  %6429 = vmatprep.subr.bf16.mxu0 %v6428_v12  ;;  %v3230_v44 = vld [vmem:[#allocation10 + $0x340] sm:$0xff] }
 0x218   : > { %6028 = vmatmul.mubr.msk.f32.gmra.mrb[8].mxu0 %vm952_vm3, %v870_v19  ;;  %6044 = vmatmul.mubr.msk.f32.gmra.mrb[8].mxu1 %vm952_vm3, %v870_v19  ;;  %v871_v36 = vsel %vm865_vm2, %v854_v27, %v812_v21 }
 0x219   : > { %1095 = vmatprep.mubr.f32.mxu0 %v10130_v0  ;;  %1256 = vmatprep.mubr.f32.mxu1 %v10130_v0 }
 0x21a   : > { %v750_v37 = vpop.permute.xlu0 %749  ;;  %v814_v38 = vpop.permute.xlu1 %813  ;;  %6367 = vmatpush1.bf16.msra.mxu1 %v6366_v23  ;;  %6431 = vmatpush1.bf16.msra.mxu0 %v6430_v24  ;;  %v686_v23 = vld [vmem:[#allocation2 + $0x98] sm:$0xff] }
 0x21b   : > { %v855_v42 = vsel %vm656_vm1, %v679_v22, %v750_v37  ;;  %6369 = vmatprep.subr.bf16.mxu1 %v6368_v28  ;;  %6433 = vmatprep.subr.bf16.mxu0 %v6432_v29  ;;  %v687_v28 = vld [vmem:[#allocation2 + $0xa8] sm:$0xff] }
 0x21c   : > { %6029 = vmatmul.mubr.msk.f32.gmra.mrb[10].mxu0 %vm952_vm3, %v871_v36  ;;  %6045 = vmatmul.mubr.msk.f32.gmra.mrb[10].mxu1 %vm952_vm3, %v871_v36  ;;  %v872_v51 = vsel %vm865_vm2, %v855_v42, %v814_v38  ;;  %v3191_v42 = vld [vmem:[#allocation10 + $0x208] sm:$0xff] }
 0x21d   : > { %1101 = vmatprep.mubr.f32.mxu0 %v10130_v0  ;;  %1262 = vmatprep.mubr.f32.mxu1 %v10130_v0 }
 0x21e   : > { %v752_v52 = vpop.permute.xlu0 %751  ;;  %v816_v53 = vpop.permute.xlu1 %815  ;;  %6371 = vmatpush1.bf16.msra.mxu1 %v6370_v39  ;;  %6435 = vmatpush1.bf16.msra.mxu0 %v6434_v40  ;;  %v3311_v39 = vld [vmem:[#allocation10 + $0x5c8] sm:$0xff] }
 0x21f   : > { %v856_v56 = vsel %vm656_vm1, %v680_v48, %v752_v52  ;;  %6373 = vmatprep.subr.bf16.mxu1 %v6372_v43  ;;  %6437 = vmatprep.subr.bf16.mxu0 %v6436_v45  ;;  %v3315_v40 = vld [vmem:[#allocation10 + $0x5e8] sm:$0xff]  ;;  %v3194_v48 = vld [vmem:[#allocation10 + $0x220] sm:$0xff] }
 0x220   : > { %6030 = vmatmul.mubr.msk.f32.gmra.mrb[12].mxu0 %vm952_vm3, %v872_v51  ;;  %6046 = vmatmul.mubr.msk.f32.gmra.mrb[12].mxu1 %vm952_vm3, %v872_v51  ;;  %v873_v61 = vsel %vm865_vm2, %v856_v56, %v816_v53  ;;  %v6440_v41 = vpack.c.bf16 %v3315_v40, %v3311_v39  ;;  %v3195_v43 = vld [vmem:[#allocation10 + $0x228] sm:$0xff]  ;;  %v6382_v50 = vpack.c.bf16 %v3194_v48, %v3190_v47  ;;  %v3318_v56 = vld [vmem:[#allocation10 + $0x600] sm:$0xff] }
 0x221   : > { %1107 = vmatprep.mubr.f32.mxu0 %v10130_v0  ;;  %1268 = vmatprep.mubr.f32.mxu1 %v10130_v0  ;;  %v6380_v45 = vpack.c.bf16 %v3195_v43, %v3191_v42  ;;  %v3319_v51 = vld [vmem:[#allocation10 + $0x608] sm:$0xff]  ;;  %v3354_v43 = vld [vmem:[#allocation10 + $0x720] sm:$0xff] }
 0x222   : > { %v754_v62 = vpop.permute.xlu0 %753  ;;  %v818_v63 = vpop.permute.xlu1 %817  ;;  %6375 = vmatpush1.bf16.msra.mxu1 %v6374_v54  ;;  %6439 = vmatpush1.bf16.msra.mxu0 %v6438_v55  ;;  %v3323_v52 = vld [vmem:[#allocation10 + $0x628] sm:$0xff] }
 0x223   : > { %v857_v2 = vsel %vm656_vm1, %v681_v60, %v754_v62  ;;  %6377 = vmatprep.subr.bf16.mxu1 %v6376_v57  ;;  %6441 = vmatprep.subr.bf16.mxu0 %v6440_v41  ;;  %v6444_v53 = vpack.c.bf16 %v3323_v52, %v3319_v51  ;;  %v3199_v54 = vld [vmem:[#allocation10 + $0x248] sm:$0xff]  ;;  %v3202_v60 = vld [vmem:[#allocation10 + $0x260] sm:$0xff] }
 0x224   : > { %6031 = vmatmul.mubr.msk.f32.gmra.mrb[14].mxu0 %vm952_vm3, %v873_v61  ;;  %6047 = vmatmul.mubr.msk.f32.gmra.mrb[14].mxu1 %vm952_vm3, %v873_v61  ;;  %v874_v4 = vsel %vm865_vm2, %v857_v2, %v818_v63  ;;  %v3203_v55 = vld [vmem:[#allocation10 + $0x268] sm:$0xff]  ;;  %v6446_v61 = vpack.c.bf16 %v3322_v58, %v3318_v56  ;;  %v6386_v62 = vpack.c.bf16 %v3202_v60, %v3198_v59  ;;  %v3350_v41 = vld [vmem:[#allocation10 + $0x700] sm:$0xff]  ;;  %v932_v60 = vlaneseq }
 0x225   : > { %1113 = vmatprep.mubr.f32.mxu0 %v10130_v0  ;;  %1274 = vmatprep.mubr.f32.mxu1 %v10130_v0  ;;  %v6384_v57 = vpack.c.bf16 %v3203_v55, %v3199_v54  ;;  %v3327_v63 = vld [vmem:[#allocation10 + $0x648] sm:$0xff]  ;;  %v6462_v46 = vpack.c.bf16 %v3354_v43, %v3350_v41  ;;  %v3362_v55 = vld [vmem:[#allocation10 + $0x760] sm:$0xff] }
 0x226   : > { %v756_v5 = vpop.permute.xlu0 %755  ;;  %v820_v6 = vpop.permute.xlu1 %819  ;;  %6379 = vmatpush1.bf16.msra.mxu1 %v6378_v1  ;;  %6443 = vmatpush1.bf16.msra.mxu0 %v6442_v49  ;;  %v3331_v1 = vld [vmem:[#allocation10 + $0x668] sm:$0xff]  ;;  %v3238_v56 = vld [vmem:[#allocation10 + $0x380] sm:$0xff]  ;;  %vm8544_vm4 = vcmp.lt.s32.totalorder %v932_v60, 256 }
 0x227   : > { %v858_v7 = vsel %vm656_vm1, %v682_v3, %v756_v5  ;;  %6381 = vmatprep.subr.bf16.mxu1 %v6380_v45  ;;  %6445 = vmatprep.subr.bf16.mxu0 %v6444_v53  ;;  %v6448_v2 = vpack.c.bf16 %v3331_v1, %v3327_v63  ;;  %v3207_v3 = vld [vmem:[#allocation10 + $0x288] sm:$0xff]  ;;  %v3326_v5 = vld [vmem:[#allocation10 + $0x640] sm:$0xff]  ;;  %2063 = vst.msk [vmem:[#allocation3] ss:$8 sm:$0x3] %vm8544_vm4, %v10130_v0 }
 0x228   : > { %6032 = vmatmul.mubr.msk.f32.gmra.mrb[16].mxu0 %vm952_vm3, %v874_v4  ;;  %6048 = vmatmul.mubr.msk.f32.gmra.mrb[16].mxu1 %vm952_vm3, %v874_v4  ;;  %v875_v9 = vsel %vm865_vm2, %v858_v7, %v820_v6  ;;  %v3211_v4 = vld [vmem:[#allocation10 + $0x2a8] sm:$0xff]  ;;  %v3330_v7 = vld [vmem:[#allocation10 + $0x660] sm:$0xff]  ;;  %2066 = vst.msk [vmem:[#allocation3 + $0x20] ss:$8 sm:$0x3] %vm8544_vm4, %v10130_v0 }
 0x229   : > { %1119 = vmatprep.mubr.f32.mxu0 %v10130_v0  ;;  %1280 = vmatprep.mubr.f32.mxu1 %v10130_v0  ;;  %v6388_v6 = vpack.c.bf16 %v3211_v4, %v3207_v3  ;;  %v3231_v39 = vld [vmem:[#allocation10 + $0x348] sm:$0xff]  ;;  %v3234_v45 = vld [vmem:[#allocation10 + $0x360] sm:$0xff]  ;;  %2069 = vst.msk [vmem:[#allocation3 + $0x40] ss:$8 sm:$0x3] %vm8544_vm4, %v10130_v0 }
 0x22a   : > { %v758_v10 = vpop.permute.xlu0 %757  ;;  %v822_v11 = vpop.permute.xlu1 %821  ;;  %6383 = vmatpush1.bf16.msra.mxu1 %v6382_v50  ;;  %6447 = vmatpush1.bf16.msra.mxu0 %v6446_v61  ;;  %v3235_v40 = vld [vmem:[#allocation10 + $0x368] sm:$0xff]  ;;  %v6402_v47 = vpack.c.bf16 %v3234_v45, %v3230_v44  ;;  %v3358_v53 = vld [vmem:[#allocation10 + $0x740] sm:$0xff]  ;;  %2072 = vst.msk [vmem:[#allocation3 + $0x60] ss:$8 sm:$0x3] %vm8544_vm4, %v10130_v0  ;;  %v8632_v44 = vld [vmem:[#allocation10 + $0x98] sm:$0xff] }
 0x22b   : > { %v859_v12 = vsel %vm656_vm1, %v683_v8, %v758_v10  ;;  %6385 = vmatprep.subr.bf16.mxu1 %v6384_v57  ;;  %v3206_v8 = vld [vmem:[#allocation10 + $0x280] sm:$0xff]  ;;  %6449 = vmatprep.subr.bf16.mxu0 %v6448_v2  ;;  %v6450_v10 = vpack.c.bf16 %v3330_v7, %v3326_v5  ;;  %v6400_v42 = vpack.c.bf16 %v3235_v40, %v3231_v39  ;;  %v3359_v48 = vld [vmem:[#allocation10 + $0x748] sm:$0xff]  ;;  %v8622_v39 = vld [vmem:[#allocation10 + $0x70] sm:$0xff] }
 0x22c   : > { %6033 = vmatmul.mubr.msk.f32.gmra.mrb[18].mxu0 %vm952_vm3, %v875_v9  ;;  %6049 = vmatmul.mubr.msk.f32.gmra.mrb[18].mxu1 %vm952_vm3, %v875_v9  ;;  %v876_v14 = vsel %vm865_vm2, %v859_v12, %v822_v11  ;;  %v3210_v9 = vld [vmem:[#allocation10 + $0x2a0] sm:$0xff]  ;;  %v3335_v12 = vld [vmem:[#allocation10 + $0x688] sm:$0xff]  ;;  %v6466_v58 = vpack.c.bf16 %v3362_v55, %v3358_v53  ;;  %2075 = vst.msk [vmem:[#allocation3 + $0x80] ss:$8 sm:$0x3] %vm8544_vm4, %v10130_v0  ;;  %v8634_v45 = vld [vmem:[#allocation10 + $0xb8] sm:$0xff] }
 0x22d   : > { %1125 = vmatprep.mubr.f32.mxu0 %v10130_v0  ;;  %1286 = vmatprep.mubr.f32.mxu1 %v10130_v0  ;;  %v6390_v11 = vpack.c.bf16 %v3210_v9, %v3206_v8  ;;  %v3363_v49 = vld [vmem:[#allocation10 + $0x768] sm:$0xff]  ;;  %v3242_v57 = vld [vmem:[#allocation10 + $0x3a0] sm:$0xff]  ;;  %2078 = vst.msk [vmem:[#allocation3 + $0xa0] ss:$8 sm:$0x3] %vm8544_vm4, %v10130_v0 }
 0x22e   : > { %v760_v15 = vpop.permute.xlu0 %759  ;;  %v824_v16 = vpop.permute.xlu1 %823  ;;  %6387 = vmatpush1.bf16.msra.mxu1 %v6386_v62  ;;  %6451 = vmatpush1.bf16.msra.mxu0 %v6450_v10  ;;  %v6464_v50 = vpack.c.bf16 %v3363_v49, %v3359_v48  ;;  %v3239_v51 = vld [vmem:[#allocation10 + $0x388] sm:$0xff]  ;;  %v6406_v59 = vpack.c.bf16 %v3242_v57, %v3238_v56  ;;  %v3366_v3 = vld [vmem:[#allocation10 + $0x780] sm:$0xff]  ;;  %2081 = vst.msk [vmem:[#allocation3 + $0xc0] ss:$8 sm:$0x3] %vm8544_vm4, %v10130_v0  ;;  %v8664_v57 = vld [vmem:[#allocation10 + $0xd8] sm:$0xff] }
 0x22f   : > { %v860_v17 = vsel %vm656_vm1, %v684_v13, %v760_v15  ;;  %6389 = vmatprep.subr.bf16.mxu1 %v6388_v6  ;;  %v3339_v13 = vld [vmem:[#allocation10 + $0x6a8] sm:$0xff]  ;;  %v3370_v5 = vld [vmem:[#allocation10 + $0x7a0] sm:$0xff]  ;;  %2084 = vst.msk [vmem:[#allocation3 + $0xe0] ss:$8 sm:$0x3] %vm8544_vm4, %v10130_v0 }
 0x230   : > { %6034 = vmatmul.mubr.msk.f32.gmra.mrb[20].mxu0 %vm952_vm3, %v876_v14  ;;  %6050 = vmatmul.mubr.msk.f32.gmra.mrb[20].mxu1 %vm952_vm3, %v876_v14  ;;  %v877_v19 = vsel %vm865_vm2, %v860_v17, %v824_v16  ;;  %v6452_v14 = vpack.c.bf16 %v3339_v13, %v3335_v12  ;;  %v3215_v15 = vld [vmem:[#allocation10 + $0x2c8] sm:$0xff]  ;;  %v3334_v17 = vld [vmem:[#allocation10 + $0x680] sm:$0xff]  ;;  %v6470_v9 = vpack.c.bf16 %v3370_v5, %v3366_v3 }
 0x231   : > { %1131 = vmatprep.mubr.f32.mxu0 %v10130_v0  ;;  %1292 = vmatprep.mubr.f32.mxu1 %v10130_v0  ;;  %v3219_v16 = vld [vmem:[#allocation10 + $0x2e8] sm:$0xff]  ;;  %v3246_v6 = vld [vmem:[#allocation10 + $0x3c0] sm:$0xff]  ;;  %2087 = vst.msk [vmem:[#allocation3 + $0x11] ss:$8 sm:$0x3] %vm8544_vm4, %v10130_v0 }
 0x232   : > { %v762_v20 = vpop.permute.xlu0 %761  ;;  %v826_v21 = vpop.permute.xlu1 %825  ;;  %6391 = vmatpush1.bf16.msra.mxu1 %v6390_v11  ;;  %6453 = vmatprep.subr.bf16.mxu0 %v6452_v14  ;;  %v3243_v52 = vld [vmem:[#allocation10 + $0x3a8] sm:$0xff]  ;;  %v3250_v7 = vld [vmem:[#allocation10 + $0x3e0] sm:$0xff]  ;;  %2090 = vst.msk [vmem:[#allocation3 + $0x31] ss:$8 sm:$0x3] %vm8544_vm4, %v10130_v0 }
 0x233   : > { %v861_v22 = vsel %vm656_vm1, %v685_v18, %v762_v20  ;;  %v6392_v18 = vpack.c.bf16 %v3219_v16, %v3215_v15  ;;  %v3214_v20 = vld [vmem:[#allocation10 + $0x2c0] sm:$0xff]  ;;  %v6404_v54 = vpack.c.bf16 %v3243_v52, %v3239_v51  ;;  %v3367_v61 = vld [vmem:[#allocation10 + $0x788] sm:$0xff]  ;;  %v6410_v10 = vpack.c.bf16 %v3250_v7, %v3246_v6  ;;  %2093 = vst.msk [vmem:[#allocation3 + $0x51] ss:$8 sm:$0x3] %vm8544_vm4, %v10130_v0  ;;  %v3129_v16 = vld [vmem:[#allocation10 + $0x18] sm:$0xff] }
 0x234   : > { %6035 = vmatmul.mubr.msk.f32.gmra.mrb[22].mxu0 %vm952_vm3, %v877_v19  ;;  %6051 = vmatmul.mubr.msk.f32.gmra.mrb[22].mxu1 %vm952_vm3, %v877_v19  ;;  %v878_v24 = vsel %vm865_vm2, %v861_v22, %v826_v21  ;;  %v3338_v19 = vld [vmem:[#allocation10 + $0x6a0] sm:$0xff]  ;;  %v3371_v62 = vld [vmem:[#allocation10 + $0x7a8] sm:$0xff]  ;;  %2096 = vst.msk [vmem:[#allocation3 + $0x71] ss:$8 sm:$0x3] %vm8544_vm4, %v10130_v0  ;;  %v8730_v7 = vld [vmem:[#allocation10 + $0x178] sm:$0xff] }
 0x235   : > { %1137 = vmatprep.mubr.f32.mxu0 %v10130_v0  ;;  %1298 = vmatprep.mubr.f32.mxu1 %v10130_v0  ;;  %v3218_v21 = vld [vmem:[#allocation10 + $0x2e0] sm:$0xff]  ;;  %v6454_v22 = vpack.c.bf16 %v3338_v19, %v3334_v17  ;;  %v6468_v63 = vpack.c.bf16 %v3371_v62, %v3367_v61  ;;  %v3247_v1 = vld [vmem:[#allocation10 + $0x3c8] sm:$0xff]  ;;  %2099 = vst.msk [vmem:[#allocation3 + $0x91] ss:$8 sm:$0x3] %vm8544_vm4, %v10130_v0  ;;  %10223 = vst [vmem:[#allocation58_spill] sm:$0xff] %v8730_v7 }
 0x236   : > { %v764_v25 = vpop.permute.xlu0 %763  ;;  %v828_v26 = vpop.permute.xlu1 %827  ;;  %6393 = vmatprep.subr.bf16.mxu1 %v6392_v18  ;;  %v3251_v2 = vld [vmem:[#allocation10 + $0x3e8] sm:$0xff]  ;;  %2102 = vst.msk [vmem:[#allocation3 + $0xb1] ss:$8 sm:$0x3] %vm8544_vm4, %v10130_v0  ;;  %v3374_v14 = vld [vmem:[#allocation10 + $0x7c0] sm:$0xff]  ;;  %v3133_v18 = vld [vmem:[#allocation10 + $0x38] sm:$0xff] }
 0x237   : > { %v862_v27 = vsel %vm656_vm1, %v686_v23, %v764_v25  ;;  %v6394_v23 = vpack.c.bf16 %v3218_v21, %v3214_v20  ;;  %6455 = vmatpush1.bf16.msra.mxu0 %v6454_v22  ;;  %v3347_v25 = vld [vmem:[#allocation10 + $0x6e8] sm:$0xff]  ;;  %v6408_v4 = vpack.c.bf16 %v3251_v2, %v3247_v1  ;;  %2105 = vst.msk [vmem:[#allocation3 + $0xd1] ss:$8 sm:$0x3] %vm8544_vm4, %v10130_v0  ;;  %v3378_v15 = vld [vmem:[#allocation10 + $0x7e0] sm:$0xff]  ;;  %v8678_v1 = vld [vmem:[#allocation10 + $0xf0] sm:$0xff] }
 0x238   : > { %6036 = vmatmul.mubr.msk.f32.gmra.mrb[24].mxu0 %vm952_vm3, %v878_v24  ;;  %6052 = vmatmul.mubr.msk.f32.gmra.mrb[24].mxu1 %vm952_vm3, %v878_v24  ;;  %v879_v29 = vsel %vm865_vm2, %v862_v27, %v828_v26  ;;  %v3343_v24 = vld [vmem:[#allocation10 + $0x6c8] sm:$0xff]  ;;  %2108 = vst.msk [vmem:[#allocation3 + $0xf1] ss:$8 sm:$0x3] %vm8544_vm4, %v10130_v0  ;;  %v6474_v17 = vpack.c.bf16 %v3378_v15, %v3374_v14  ;;  %v8630_v43 = vld [vmem:[#allocation10 + $0x860] sm:$0xff] }
 0x239   : > { %1143 = vmatprep.mubr.f32.mxu0 %v10130_v0  ;;  %1304 = vmatprep.mubr.f32.mxu1 %v10130_v0  ;;  %v6456_v26 = vpack.c.bf16 %v3347_v25, %v3343_v24  ;;  %v3223_v27 = vld [vmem:[#allocation10 + $0x308] sm:$0xff]  ;;  %v6540_v19 = vpack.c.bf16 %v3133_v18, %v3129_v16  ;;  %v7839_v24 = vmov 1983009808   ;;  %10209 = vst [vmem:[#allocation44_spill] sm:$0xff] %v8630_v43  ;;  %v8650_v52 = vld [vmem:[#allocation10 + $0x880] sm:$0xff]  ;;  %v8736_v18 = vld [vmem:[#allocation10 + $0x150] sm:$0xff] }
 0x23a   : > { %v766_v30 = vpop.permute.xlu0 %765  ;;  %v830_v31 = vpop.permute.xlu1 %829  ;;  %6395 = vmatpush1.bf16.msra.mxu1 %v6394_v23  ;;  %v3375_v11 = vld [vmem:[#allocation10 + $0x7c8] sm:$0xff]  ;;  %v8596_v23 = vshrl.u32 %v932_v60, 7  ;;  %v1454_v25 = vunpack.c.l.s4 %v7839_v24  ;;  %10212 = vst [vmem:[#allocation47_spill] sm:$0xff] %v8650_v52  ;;  %v8652_v53 = vld [vmem:[#allocation10 + $0x8a0] sm:$0xff]  ;;  %10224 = vst [vmem:[#allocation59_spill] sm:$0xff] %v8736_v18 }
 0x23b   : > { %v863_v32 = vsel %vm656_vm1, %v687_v28, %v766_v30  ;;  %v3227_v28 = vld [vmem:[#allocation10 + $0x328] sm:$0xff]  ;;  %6457 = vmatprep.subr.bf16.mxu0 %v6456_v26  ;;  %v930_v26 = vld [vmem:[#allocation9] sm:$0xf]  ;;  %10213 = vst [vmem:[#allocation48_spill] sm:$0xff] %v8652_v53 }
 0x23c   : > { %6037 = vmatmul.mubr.msk.f32.gmra.mrb[26].mxu0 %vm952_vm3, %v879_v29  ;;  %6053 = vmatmul.mubr.msk.f32.gmra.mrb[26].mxu1 %vm952_vm3, %v879_v29  ;;  %v880_v34 = vsel %vm865_vm2, %v863_v32, %v830_v31  ;;  %v3342_v29 = vld [vmem:[#allocation10 + $0x6c0] sm:$0xff]  ;;  %v6396_v30 = vpack.c.bf16 %v3227_v28, %v3223_v27  ;;  %v3379_v12 = vld [vmem:[#allocation10 + $0x7e8] sm:$0xff]  ;;  %10202 = vst [vmem:[#allocation37_spill] sm:$0xff] %v8596_v23  ;;  %v8599_v27 = vsub.s32 0, %v8596_v23  ;;  %v8602_v28 = vsub.s32 2, %v8596_v23 }
 0x23d   : > { %1149 = vmatprep.mubr.f32.mxu0 %v10130_v0  ;;  %1310 = vmatprep.mubr.f32.mxu1 %v10130_v0  ;;  %v3346_v31 = vld [vmem:[#allocation10 + $0x6e0] sm:$0xff]  ;;  %v6472_v13 = vpack.c.bf16 %v3379_v12, %v3375_v11  ;;  %v3383_v20 = vld [vmem:[#allocation10 + $0x808] sm:$0xff]  ;;  %v8696_v12 = vld [vmem:[#allocation10 + $0x118] sm:$0xff] }
 0x23e   : > { %v768_v35 = vpop.permute.xlu0 %767  ;;  %v832_v36 = vpop.permute.xlu1 %831  ;;  %v3222_v32 = vld [vmem:[#allocation10 + $0x300] sm:$0xff]  ;;  %6397 = vmatprep.subr.bf16.mxu1 %v6396_v30  ;;  %v3387_v21 = vld [vmem:[#allocation10 + $0x828] sm:$0xff]  ;;  %v10132_v30 = vsub.s32 3, %v8596_v23  ;;  %v8643_v49 = vrot.slane %v930_v26, %v8599_v27 }
 0x23f   : > { %v864_v37 = vsel %vm656_vm1, %v688_v33, %v768_v35  ;;  %v3226_v33 = vld [vmem:[#allocation10 + $0x320] sm:$0xff]  ;;  %v6476_v22 = vpack.c.bf16 %v3387_v21, %v3383_v20  ;;  %v8624_v40 = vld [vmem:[#allocation10 + $0x848] sm:$0xff]  ;;  %v8706_v20 = vld [vmem:[#allocation10 + $0x110] sm:$0xff] }
 0x240   : > { %6038 = vmatmul.mubr.msk.f32.gmra.mrb[28].mxu0 %vm952_vm3, %v880_v34  ;;  %6054 = vmatmul.mubr.msk.f32.gmra.mrb[28].mxu1 %vm952_vm3, %v880_v34  ;;  %v881_v38 = vsel %vm865_vm2, %v864_v37, %v832_v36  ;;  %v6458_v34 = vpack.c.bf16 %v3346_v31, %v3342_v29  ;;  %v6398_v35 = vpack.c.bf16 %v3226_v33, %v3222_v32  ;;  %v3351_v36 = vld [vmem:[#allocation10 + $0x708] sm:$0xff]  ;;  %v8605_v29 = vsub.s32 1, %v8596_v23  ;;  %v8608_v32 = vld [vmem:[#allocation10 + $0x10] sm:$0xff]  ;;  %v8694_v11 = vld [vmem:[#allocation10 + $0x8e0] sm:$0xff] }
 0x241   : > { %1155 = vmatprep.mubr.f32.mxu0 %v10130_v0  ;;  %1316 = vmatprep.mubr.f32.mxu1 %v10130_v0  ;;  %v3355_v37 = vld [vmem:[#allocation10 + $0x728] sm:$0xff]  ;;  %v1455_v31 = vunpack.c.0.s8 %v1454_v25  ;;  %v8610_v33 = vld [vmem:[#allocation10 + $0x30] sm:$0xff]  ;;  %10206 = vst [vmem:[#allocation41_spill] sm:$0xff] %v8624_v40  ;;  %v8659_v55 = vrot.slane %v930_v26, %v10132_v30  ;;  %10217 = vst [vmem:[#allocation52_spill] sm:$0xff] %v8694_v11 }
 0x242   : > { %6459 = vmatpush1.bf16.msra.mxu0 %v6458_v34  ;;  %6399 = vmatpush1.bf16.msra.mxu1 %v6398_v35  ;;  %10203 = vst [vmem:[#allocation38_spill] sm:$0xff] %v8605_v29  ;;  %v8612_v34 = vld [vmem:[#allocation10 + $0x800] sm:$0xff]  ;;  %v8626_v41 = vld [vmem:[#allocation10 + $0x868] sm:$0xff]  ;;  %v8708_v21 = vld [vmem:[#allocation10 + $0x130] sm:$0xff] }
 0x243   : > { %6401 = vmatprep.subr.bf16.mxu1 %v6400_v42  ;;  %10204 = vst [vmem:[#allocation39_spill] sm:$0xff] %v8612_v34  ;;  %v8614_v35 = vld [vmem:[#allocation10 + $0x820] sm:$0xff]  ;;  %10207 = vst [vmem:[#allocation42_spill] sm:$0xff] %v8626_v41  ;;  %v8640_v48 = vld [vmem:[#allocation10 + $0x888] sm:$0xff]  ;;  %v8662_v56 = vsub.s32 %v1455_v31, %v8596_v23 }
 0x244   : > { %6039 = vmatmul.mubr.msk.f32.gmra.mrb[30].mxu0 %vm952_vm3, %v881_v38  ;;  %6055 = vmatmul.mubr.msk.f32.gmra.mrb[30].mxu1 %vm952_vm3, %v881_v38  ;;  %v6460_v38 = vpack.c.bf16 %v3355_v37, %v3351_v36  ;;  %10205 = vst [vmem:[#allocation40_spill] sm:$0xff] %v8614_v35  ;;  %v8616_v36 = vld [vmem:[#allocation10 + $0x58] sm:$0xff]  ;;  %v8628_v42 = vld [vmem:[#allocation10 + $0x840] sm:$0xff]  ;;  %10210 = vst [vmem:[#allocation45_spill] sm:$0xff] %v8640_v48 }
 0x245   : > { %v8618_v37 = vld [vmem:[#allocation10 + $0x78] sm:$0xff]  ;;  %10208 = vst [vmem:[#allocation43_spill] sm:$0xff] %v8628_v42  ;;  %v8648_v51 = vld [vmem:[#allocation10 + $0x8a8] sm:$0xff] }
 0x246   : > { %6461 = vmatprep.subr.bf16.mxu0 %v6460_v38  ;;  %6403 = vmatpush1.bf16.msra.mxu1 %v6402_v47  ;;  %v8620_v38 = vld [vmem:[#allocation10 + $0x50] sm:$0xff]  ;;  %10211 = vst [vmem:[#allocation46_spill] sm:$0xff] %v8648_v51  ;;  %v8680_v2 = vld [vmem:[#allocation10 + $0x8c8] sm:$0xff] }
 0x247   : > { %6463 = vmatpush1.bf16.msra.mxu0 %v6462_v46  ;;  %6405 = vmatprep.subr.bf16.mxu1 %v6404_v54  ;;  %v8636_v46 = vld [vmem:[#allocation10 + $0x90] sm:$0xff]  ;;  %v8655_v54 = vrot.slane %v930_v26, %v8605_v29  ;;  %10214 = vst [vmem:[#allocation49_spill] sm:$0xff] %v8680_v2  ;;  %v8682_v3 = vld [vmem:[#allocation10 + $0x8e8] sm:$0xff] }
 0x248   : > { %6465 = vmatprep.subr.bf16.mxu0 %v6464_v50  ;;  %v8638_v47 = vld [vmem:[#allocation10 + $0xb0] sm:$0xff]  ;;  %v8646_v50 = vrot.slane %v930_v26, %v8602_v28  ;;  %10215 = vst [vmem:[#allocation50_spill] sm:$0xff] %v8682_v3  ;;  %v8716_v31 = vld [vmem:[#allocation10 + $0x908] sm:$0xff] }
 0x249   : > { %10218 = vst [vmem:[#allocation53_spill] sm:$0xff] %v8716_v31 }
 0x24a   : > { %6407 = vmatpush1.bf16.msra.mxu1 %v6406_v59  ;;  %v8668_v59 = vld [vmem:[#allocation10 + $0xd0] sm:$0xff] }
 0x24b   : > { %6467 = vmatpush1.bf16.msra.mxu0 %v6466_v58  ;;  %6409 = vmatprep.subr.bf16.mxu1 %v6408_v4  ;;  %v8666_v58 = vld [vmem:[#allocation10 + $0xf8] sm:$0xff] }
 0x24c   : > { %6469 = vmatprep.subr.bf16.mxu0 %v6468_v63 }
 0x24e   : > { %6411 = vmatpush1.bf16.msra.mxu1 %v6410_v10  ;;  %v8692_v10 = vld [vmem:[#allocation10 + $0x8c0] sm:$0xff] }
 0x24f   : > { %6471 = vmatpush1.bf16.msra.mxu0 %v6470_v9  ;;  %6541 = vmatprep.subr.bf16.mxu1 %v6540_v19  ;;  %10216 = vst [vmem:[#allocation51_spill] sm:$0xff] %v8692_v10  ;;  %v8704_v19 = vld [vmem:[#allocation10 + $0x138] sm:$0xff]  ;;  %v8738_v9 = vld [vmem:[#allocation10 + $0x170] sm:$0xff] }
 0x250   : > { %6473 = vmatprep.subr.bf16.mxu0 %v6472_v13  ;;  %10225 = vst [vmem:[#allocation60_spill] sm:$0xff] %v8738_v9 }
 0x253   : > { %6475 = vmatpush1.bf16.msra.mxu0 %v6474_v17  ;;  %v8728_v17 = vld [vmem:[#allocation10 + $0x158] sm:$0xff] }
 0x254   : > { %6477 = vmatprep.subr.bf16.mxu0 %v6476_v22  ;;  %10222 = vst [vmem:[#allocation57_spill] sm:$0xff] %v8728_v17 }
 0x2db   : > { %v1067_v4 = vpop.f32.mrb[0].mxu0  ;;  %v1228_v5 = vpop.f32.mrb[0].mxu1 }
 0x2dc   : > { %v1068_v13 = vadd.f32 %v1067_v4, %v8643_v49  ;;  %v1229_v14 = vadd.f32 %v1228_v5, %v8646_v50  ;;  %v1069_v15 = vpop.f32.mrb[1].mxu0  ;;  %v1230_v16 = vpop.f32.mrb[1].mxu1  ;;  %v8718_v4 = vld [vmem:[#allocation10 + $0x928] sm:$0xff]  ;;  %v8720_v5 = vld [vmem:[#allocation10 + $0x900] sm:$0xff] }
 0x2dd   : > { %v1070_v22 = vadd.f32 %v1069_v15, %v8655_v54  ;;  %v1231_v24 = vadd.f32 %v1230_v16, %v8659_v55  ;;  %10219 = vst [vmem:[#allocation54_spill] sm:$0xff] %v8718_v4  ;;  %10220 = vst [vmem:[#allocation55_spill] sm:$0xff] %v8720_v5  ;;  %v8726_v16 = vld [vmem:[#allocation10 + $0x920] sm:$0xff] }
 0x2de   : > { %v1323_v0 = vmax.f32 %v1068_v13, 0.0  ;;  %v1325_v30 = vmax.f32 %v1229_v14, 0.0  ;;  %10221 = vst [vmem:[#allocation56_spill] sm:$0xff] %v8726_v16  ;;  %v8756_v4 = vld [vmem:[#allocation10 + $0x940] sm:$0xff] }
 0x2df   : > { %v1324_v6 = vmax.f32 %v1070_v22, 0.0  ;;  %v1326_v61 = vmax.f32 %v1231_v24, 0.0  ;;  %v1073_v26 = vpop.f32.mrb[2].mxu0  ;;  %v1234_v25 = vpop.f32.mrb[2].mxu1  ;;  %10228 = vst [vmem:[#allocation63_spill] sm:$0xff] %v8756_v4 }
 0x2e0   : > { %v1387_v15 = vmax.f32 %v1323_v0, %v1325_v30  ;;  %v1074_v8 = vadd.f32 %v1073_v26, %v8643_v49  ;;  %v1235_v63 = vadd.f32 %v1234_v25, %v8646_v50  ;;  %v1075_v62 = vpop.f32.mrb[3].mxu0  ;;  %v1236_v22 = vpop.f32.mrb[3].mxu1  ;;  %v8752_v25 = vld [vmem:[#allocation10 + $0x948] sm:$0xff] }
 0x2e1   : > { %v1388_v60 = vmax.f32 %v1324_v6, %v1326_v61  ;;  %v1076_v13 = vadd.f32 %v1075_v62, %v8655_v54  ;;  %v1237_v23 = vadd.f32 %v1236_v22, %v8659_v55  ;;  %10226 = vst [vmem:[#allocation61_spill] sm:$0xff] %v8752_v25  ;;  %v8754_v26 = vld [vmem:[#allocation10 + $0x968] sm:$0xff] }
 0x2e2   : > { %v1327_v29 = vmax.f32 %v1074_v8, 0.0  ;;  %v1329_v10 = vmax.f32 %v1235_v63, 0.0  ;;  %10227 = vst [vmem:[#allocation62_spill] sm:$0xff] %v8754_v26  ;;  %v8758_v8 = vld [vmem:[#allocation10 + $0x960] sm:$0xff] }
 0x2e3   : > { %v1451_v61 = vcombine.low %v1387_v15, %v1388_v60  ;;  %v1452_v6 = vcombine.high %v1387_v15, %v1388_v60  ;;  %v1328_v62 = vmax.f32 %v1076_v13, 0.0  ;;  %v1330_v24 = vmax.f32 %v1237_v23, 0.0  ;;  %v1079_v22 = vpop.f32.mrb[4].mxu0  ;;  %v1240_v31 = vpop.f32.mrb[4].mxu1  ;;  %10229 = vst [vmem:[#allocation64_spill] sm:$0xff] %v8758_v8 }
 0x2e4   : > { %v1389_v63 = vmax.f32 %v1327_v29, %v1329_v10  ;;  %v1080_v14 = vadd.f32 %v1079_v22, %v8643_v49  ;;  %v1241_v30 = vadd.f32 %v1240_v31, %v8646_v50  ;;  %v1081_v0 = vpop.f32.mrb[5].mxu0  ;;  %v1242_v5 = vpop.f32.mrb[5].mxu1 }
 0x2e5   : > { %v1459_v60 = vrot.slane %v1451_v61, %v8662_v56  ;;  %v1466_v23 = vrot.slane %v1452_v6, %v8662_v56  ;;  %v1390_v15 = vmax.f32 %v1328_v62, %v1330_v24  ;;  %v1082_v13 = vadd.f32 %v1081_v0, %v8655_v54 }
 0x2e6   : > { %v1331_v11 = vmax.f32 %v1080_v14, 0.0  ;;  %v1333_v29 = vmax.f32 %v1241_v30, 0.0  ;;  %v1243_v10 = vadd.f32 %v1242_v5, %v8659_v55 }
 0x2e7   : > { %v1467_v22 = vcombine.high %v1459_v60, %v1459_v60  ;;  %v1468_v2 = vcombine.high %v1466_v23, %v1466_v23  ;;  %v6056_v3 = vrot.slane %v1459_v60, 9  ;;  %v6058_v16 = vrot.slane %v1466_v23, 9  ;;  %v1085_v25 = vpop.f32.mrb[6].mxu0  ;;  %v8770_v61 = vpop.f32.mrb[6].mxu1 }
 0x2e8   : > { %v1469_v6 = vcombine.low %v1389_v63, %v1390_v15  ;;  %v1470_v26 = vcombine.high %v1389_v63, %v1390_v15  ;;  %v8772_v24 = vmax.f32 %v1331_v11, %v1333_v29  ;;  %v1332_v0 = vmax.f32 %v1082_v13, 0.0  ;;  %v8774_v62 = vpop.f32.mrb[7].mxu0  ;;  %v8776_v14 = vpop.f32.mrb[7].mxu1 }
 0x2e9   : > { %v6057_v5 = vrot.slane %v1467_v22, 9  ;;  %v6059_v30 = vrot.slane %v1468_v2, 9  ;;  %v1995_v52 = vmax.f32 %v1459_v60, %v6056_v3  ;;  %v1997_v31 = vmax.f32 %v1466_v23, %v6058_v16 }
 0x2ea   : > { %v1477_v4 = vrot.slane %v1469_v6, %v8662_v56  ;;  %v1484_v8 = vrot.slane %v1470_v26, %v8662_v56  ;;  %v1334_v53 = vmax.f32 %v1243_v10, 0.0  ;;  %v8781_v63 = vadd.f32 %v1085_v25, %v8643_v49 }
 0x2eb   : > { %v1996_v11 = vmax.f32 %v1467_v22, %v6057_v5  ;;  %v1998_v15 = vmax.f32 %v1468_v2, %v6059_v30  ;;  %v2177_v13 = vrot.slane %v1995_v52, %v8599_v27  ;;  %v2181_v29 = vrot.slane %v1995_v52, %v8602_v28  ;;  %v8785_v48 = vpop.f32.mrb[8].mxu0  ;;  %v8787_v3 = vpop.f32.mrb[8].mxu1 }
 0x2ec   : > { %v2193_v16 = vrot.slane %v1997_v31, %v8599_v27  ;;  %v2197_v26 = vrot.slane %v1997_v31, %v8602_v28  ;;  %v1485_v60 = vcombine.high %v1477_v4, %v1477_v4  ;;  %v1486_v23 = vcombine.high %v1484_v8, %v1484_v8  ;;  %v8791_v10 = vpop.f32.mrb[9].mxu0  ;;  %v8793_v25 = vpop.f32.mrb[9].mxu1 }
 0x2ed   : > { %v2185_v2 = vrot.slane %v1996_v11, %v8599_v27  ;;  %v2189_v22 = vrot.slane %v1996_v11, %v8602_v28  ;;  %v2201_v52 = vrot.slane %v1998_v15, %v8599_v27  ;;  %v2205_v6 = vrot.slane %v1998_v15, %v8602_v28 }
 0x2ee   : > { %v6060_v5 = vrot.slane %v1477_v4, 9  ;;  %v6061_v30 = vrot.slane %v1485_v60, 9  ;;  %v6062_v51 = vrot.slane %v1484_v8, 9  ;;  %v6063_v42 = vrot.slane %v1486_v23, 9 }
 0x2ef   : > { %v2687_v31 = vsel %vm2686_vm5, %v2185_v2, %v2177_v13  ;;  %v2698_v43 = vsel %vm2686_vm5, %v2189_v22, %v2181_v29  ;;  %v1392_v40 = vmax.f32 %v1332_v0, %v1334_v53  ;;  %v1335_v41 = vmax.f32 %v8781_v63, 0.0  ;;  %v8802_v34 = vpop.f32.mrb[10].mxu0  ;;  %v8804_v35 = vpop.f32.mrb[10].mxu1 }
 0x2f0   : > { %v2689_v11 = vsel %vm2688_vm6, %v2193_v16, %v2687_v31  ;;  %v2699_v18 = vsel %vm2688_vm6, %v2197_v26, %v2698_v43  ;;  %v1999_v15 = vmax.f32 %v1477_v4, %v6060_v5  ;;  %v2000_v9 = vmax.f32 %v1485_v60, %v6061_v30  ;;  %v8808_v17 = vpop.f32.mrb[11].mxu0  ;;  %v8810_v7 = vpop.f32.mrb[11].mxu1 }
 0x2f1   : > { %v2691_v13 = vsel %vm2690_vm7, %v2201_v52, %v2689_v11  ;;  %v2700_v53 = vsel %vm2690_vm7, %v2205_v6, %v2699_v18  ;;  %v2001_v0 = vmax.f32 %v1484_v8, %v6062_v51  ;;  %v2002_v63 = vmax.f32 %v1486_v23, %v6063_v42 }
 0x2f2   : > { %v2209_v29 = vrot.slane %v1999_v15, %v8599_v27  ;;  %v2213_v2 = vrot.slane %v1999_v15, %v8602_v28  ;;  %v2217_v16 = vrot.slane %v2000_v9, %v8599_v27  ;;  %v2221_v43 = vrot.slane %v2000_v9, %v8602_v28 }
 0x2f3   : > { %v2225_v4 = vrot.slane %v2001_v0, %v8599_v27  ;;  %v2229_v26 = vrot.slane %v2001_v0, %v8602_v28  ;;  %v2233_v60 = vrot.slane %v2002_v63, %v8599_v27  ;;  %v2237_v22 = vrot.slane %v2002_v63, %v8602_v28  ;;  %v8822_v52 = vpop.f32.mrb[12].mxu0  ;;  %v8824_v51 = vpop.f32.mrb[12].mxu1 }
 0x2f4   : > { %v2693_v42 = vsel %vm2692_vm8, %v2209_v29, %v2691_v13  ;;  %v2701_v18 = vsel %vm2692_vm8, %v2213_v2, %v2700_v53  ;;  %v1487_v8 = vcombine.low %v8772_v24, %v1392_v40  ;;  %v1488_v9 = vcombine.high %v8772_v24, %v1392_v40  ;;  %v8830_v23 = vpop.f32.mrb[13].mxu0  ;;  %v8832_v6 = vpop.f32.mrb[13].mxu1 }
 0x2f5   : > { %v2695_v5 = vsel %vm2694_vm9, %v2217_v16, %v2693_v42  ;;  %v2702_v30 = vsel %vm2694_vm9, %v2221_v43, %v2701_v18  ;;  %2822 = vst [vmem:[#allocation3 + $0x10] sm:$0x1] %v2233_v60  ;;  %2823 = vst [vmem:[#allocation3 + $0x18] sm:$0x1] %v2237_v22  ;;  %v1247_v31 = vadd.f32 %v8770_v61, %v8646_v50 }
 0x2f6   : > { %v1088_v11 = vadd.f32 %v8774_v62, %v8655_v54  ;;  %v2697_v15 = vsel %vm2696_vm10, %v2225_v4, %v2695_v5  ;;  %v2703_v40 = vsel %vm2696_vm10, %v2229_v26, %v2702_v30  ;;  %v1495_v24 = vrot.slane %v1487_v8, %v8662_v56 }
 0x2f7   : > { %v1502_v13 = vrot.slane %v1488_v9, %v8662_v56  ;;  %2820 = vst [vmem:[#allocation3] sm:$0xfe] %v2697_v15  ;;  %2821 = vst [vmem:[#allocation3 + $0x8] sm:$0xfe] %v2703_v40  ;;  %v1337_v53 = vmax.f32 %v1247_v31, 0.0  ;;  %v1249_v63 = vadd.f32 %v8776_v14, %v8659_v55  ;;  %v1092_v61 = vadd.f32 %v8785_v48, %v8643_v49  ;;  %v8848_v29 = vpop.f32.mrb[14].mxu0 }
 0x2f8   : > { %v1336_v0 = vmax.f32 %v1088_v11, 0.0  ;;  %v8850_v62 = vpop.f32.mrb[14].mxu1  ;;  %v1503_v2 = vcombine.high %v1495_v24, %v1495_v24  ;;  %v6064_v43 = vrot.slane %v1495_v24, 9  ;;  %v8852_v26 = vpop.f32.mrb[15].mxu0  ;;  %v1253_v14 = vadd.f32 %v8787_v3, %v8646_v50 }
 0x2f9   : > { %v1504_v16 = vcombine.high %v1502_v13, %v1502_v13  ;;  %v6066_v4 = vrot.slane %v1502_v13, 9  ;;  %v8854_v60 = vpop.f32.mrb[15].mxu1  ;;  %v1393_v22 = vmax.f32 %v1335_v41, %v1337_v53  ;;  %v1338_v42 = vmax.f32 %v1249_v63, 0.0 }
 0x2fa   : > { %v1339_v18 = vmax.f32 %v1092_v61, 0.0  ;;  %v6065_v8 = vrot.slane %v1503_v2, 9  ;;  %v2003_v9 = vmax.f32 %v1495_v24, %v6064_v43  ;;  %v1341_v31 = vmax.f32 %v1253_v14, 0.0 }
 0x2fb   : > { %v6067_v48 = vrot.slane %v1504_v16, 9  ;;  %v2005_v5 = vmax.f32 %v1502_v13, %v6066_v4  ;;  %v1394_v30 = vmax.f32 %v1336_v0, %v1338_v42  ;;  %v1094_v11 = vadd.f32 %v8791_v10, %v8655_v54  ;;  %v8862_v40 = vpop.f32.mrb[16].mxu0  ;;  %v8864_v41 = vpop.f32.mrb[16].mxu1 }
 0x2fc   : > { %v1255_v15 = vadd.f32 %v8793_v25, %v8659_v55  ;;  %10230 = vst [vmem:[#allocation65_spill] sm:$0xff] %v8864_v41  ;;  %v2004_v53 = vmax.f32 %v1503_v2, %v6065_v8  ;;  %v2241_v3 = vrot.slane %v2003_v9, %v8599_v27  ;;  %v2245_v61 = vrot.slane %v2003_v9, %v8602_v28  ;;  %v8868_v24 = vpop.f32.mrb[17].mxu0  ;;  %v8870_v13 = vpop.f32.mrb[17].mxu1 }
 0x2fd   : > { %v2006_v63 = vmax.f32 %v1504_v16, %v6067_v48  ;;  %10231 = vst [vmem:[#allocation66_spill] sm:$0xff] %v8868_v24  ;;  %10232 = vst [vmem:[#allocation67_spill] sm:$0xff] %v8870_v13  ;;  %v2257_v0 = vrot.slane %v2005_v5, %v8599_v27  ;;  %v2261_v10 = vrot.slane %v2005_v5, %v8602_v28  ;;  %v1340_v24 = vmax.f32 %v1094_v11, 0.0 }
 0x2fe   : > { %v1505_v43 = vcombine.low %v1393_v22, %v1394_v30  ;;  %v1506_v25 = vcombine.high %v1393_v22, %v1394_v30  ;;  %v2249_v4 = vrot.slane %v2004_v53, %v8599_v27  ;;  %v2253_v42 = vrot.slane %v2004_v53, %v8602_v28  ;;  %v2853_v14 = vld [vmem:[#allocation3 + $0x8] sm:$0xff]  ;;  %v2852_v8 = vld [vmem:[#allocation3] sm:$0xff] }
 0x2ff   : > { %v2265_v2 = vrot.slane %v2006_v63, %v8599_v27  ;;  %v2269_v16 = vrot.slane %v2006_v63, %v8602_v28  ;;  %v1395_v13 = vmax.f32 %v1339_v18, %v1341_v31  ;;  %3596 = vmatprep.mubr.f32.mxu1 %v2853_v14  ;;  %v8880_v5 = vpop.f32.mrb[18].mxu0  ;;  %v8882_v22 = vpop.f32.mrb[18].mxu1  ;;  %v1342_v41 = vmax.f32 %v1255_v15, 0.0 }
 0x300   : > { %v1513_v48 = vrot.slane %v1505_v43, %v8662_v56  ;;  %v1520_v9 = vrot.slane %v1506_v25, %v8662_v56  ;;  %v2704_v30 = vsel %vm2686_vm5, %v2249_v4, %v2241_v3  ;;  %v2710_v53 = vsel %vm2686_vm5, %v2253_v42, %v2245_v61  ;;  %3597 = vmatmul.mubr.f32.vlgmr.msra.gmra.mrb[32].mxu1 %v2852_v8  ;;  %v8890_v43 = vpop.f32.mrb[19].mxu0  ;;  %v8892_v25 = vpop.f32.mrb[19].mxu1 }
 0x301   : > { %v8888_v63 = vadd.f32 %v8802_v34, %v8643_v49  ;;  %10233 = vst [vmem:[#allocation68_spill] sm:$0xff] %v8892_v25  ;;  %v2705_v18 = vsel %vm2688_vm6, %v2257_v0, %v2704_v30  ;;  %v2711_v31 = vsel %vm2688_vm6, %v2261_v10, %v2710_v53  ;;  %v10234_v3 = vpack.c.bf16 %v8610_v33, %v8608_v32 }
 0x302   : > { %v1521_v11 = vcombine.high %v1513_v48, %v1513_v48  ;;  %v1522_v14 = vcombine.high %v1520_v9, %v1520_v9  ;;  %v2706_v15 = vsel %vm2690_vm7, %v2265_v2, %v2705_v18  ;;  %v2712_v34 = vsel %vm2690_vm7, %v2269_v16, %v2711_v31 }
 0x303   : > { %6543 = vmatpush1.bf16.msra.mxu1 %v10234_v3  ;;  %v6068_v61 = vrot.slane %v1513_v48, 9  ;;  %v6070_v4 = vrot.slane %v1520_v9, 9  ;;  %v10235_v42 = vpack.c.bf16 %v8618_v37, %v8616_v36  ;;  %v1396_v30 = vmax.f32 %v1340_v24, %v1342_v41  ;;  %v8905_v53 = vpop.f32.mrb[20].mxu0  ;;  %v8907_v25 = vpop.f32.mrb[20].mxu1 }
 0x304   : > { %v6069_v8 = vrot.slane %v1521_v11, 9  ;;  %v6071_v0 = vrot.slane %v1522_v14, 9  ;;  %v1343_v10 = vmax.f32 %v8888_v63, 0.0  ;;  %v1259_v2 = vadd.f32 %v8804_v35, %v8646_v50  ;;  %v8915_v36 = vpop.f32.mrb[21].mxu0  ;;  %v8917_v37 = vpop.f32.mrb[21].mxu1 }
 0x305   : > { %6545 = vmatprep.subr.bf16.mxu1 %v10235_v42  ;;  %v2007_v32 = vmax.f32 %v1513_v48, %v6068_v61  ;;  %v2009_v33 = vmax.f32 %v1520_v9, %v6070_v4  ;;  %v8913_v16 = vadd.f32 %v8808_v17, %v8655_v54  ;;  %v1523_v63 = vcombine.low %v1395_v13, %v1396_v30 }
 0x306   : > { %v2008_v41 = vmax.f32 %v1521_v11, %v6069_v8  ;;  %v2010_v24 = vmax.f32 %v1522_v14, %v6071_v0  ;;  %v1524_v18 = vcombine.high %v1395_v13, %v1396_v30  ;;  %v10236_v31 = vpack.c.bf16 %v8622_v39, %v8620_v38 }
 0x307   : > { %v2273_v48 = vrot.slane %v2007_v32, %v8599_v27  ;;  %v2277_v35 = vrot.slane %v2007_v32, %v8602_v28  ;;  %v2289_v9 = vrot.slane %v2009_v33, %v8599_v27  ;;  %v2293_v17 = vrot.slane %v2009_v33, %v8602_v28  ;;  %v8933_v39 = vpop.f32.mrb[22].mxu0  ;;  %v8935_v61 = vpop.f32.mrb[22].mxu1 }
 0x308   : > { %6547 = vmatpush1.bf16.msra.mxu1 %v10236_v31  ;;  %v10237_v3 = vpack.c.bf16 %v8634_v45, %v8632_v44  ;;  %v2281_v11 = vrot.slane %v2008_v41, %v8599_v27  ;;  %v2285_v13 = vrot.slane %v2008_v41, %v8602_v28  ;;  %v2297_v14 = vrot.slane %v2010_v24, %v8599_v27  ;;  %v8941_v45 = vpop.f32.mrb[23].mxu0  ;;  %v8943_v0 = vpop.f32.mrb[23].mxu1 }
 0x309   : > { %v2301_v38 = vrot.slane %v2010_v24, %v8602_v28  ;;  %v2707_v4 = vsel %vm2692_vm8, %v2273_v48, %v2706_v15  ;;  %v2713_v42 = vsel %vm2692_vm8, %v2277_v35, %v2712_v34  ;;  %v1531_v8 = vrot.slane %v1523_v63, %v8662_v56 }
 0x30a   : > { %6549 = vmatprep.subr.bf16.mxu1 %v10237_v3  ;;  %v1538_v44 = vrot.slane %v1524_v18, %v8662_v56  ;;  %v2708_v30 = vsel %vm2694_vm9, %v2281_v11, %v2707_v4  ;;  %v2714_v32 = vsel %vm2694_vm9, %v2285_v13, %v2713_v42  ;;  %2826 = vst [vmem:[#allocation3 + $0x30] sm:$0x1] %v2297_v14  ;;  %v1345_v33 = vmax.f32 %v1259_v2, 0.0 }
 0x30b   : > { %2827 = vst [vmem:[#allocation3 + $0x38] sm:$0x1] %v2301_v38  ;;  %v1344_v41 = vmax.f32 %v8913_v16, 0.0  ;;  %v10238_v15 = vpack.c.bf16 %v8638_v47, %v8636_v46  ;;  %v2709_v34 = vsel %vm2696_vm10, %v2289_v9, %v2708_v30  ;;  %v2715_v24 = vsel %vm2696_vm10, %v2293_v17, %v2714_v32  ;;  %v8958_v46 = vpop.f32.mrb[24].mxu0  ;;  %v8960_v47 = vpop.f32.mrb[24].mxu1 }
 0x30c   : > { %v1539_v63 = vcombine.high %v1531_v8, %v1531_v8  ;;  %v1540_v18 = vcombine.high %v1538_v44, %v1538_v44  ;;  %v10239_v31 = vpack.c.bf16 %v8666_v58, %v8664_v57  ;;  %2824 = vst [vmem:[#allocation3 + $0x20] sm:$0xfe] %v2709_v34  ;;  %2825 = vst [vmem:[#allocation3 + $0x28] sm:$0xfe] %v2715_v24  ;;  %v6072_v48 = vrot.slane %v1531_v8, 9  ;;  %v8966_v58 = vpop.f32.mrb[25].mxu0 }
 0x30d   : > { %6551 = vmatpush1.bf16.msra.mxu1 %v10238_v15  ;;  %v6074_v2 = vrot.slane %v1538_v44, 9  ;;  %v1397_v35 = vmax.f32 %v1343_v10, %v1345_v33  ;;  %v1261_v16 = vadd.f32 %v8810_v7, %v8659_v55  ;;  %v1104_v3 = vadd.f32 %v8822_v52, %v8643_v49  ;;  %v8968_v11 = vpop.f32.mrb[25].mxu1 }
 0x30e   : > { %6553 = vmatprep.subr.bf16.mxu1 %v10239_v31  ;;  %v6073_v9 = vrot.slane %v1539_v63, 9  ;;  %v6075_v17 = vrot.slane %v1540_v18, 9  ;;  %v1265_v57 = vadd.f32 %v8824_v51, %v8646_v50  ;;  %v2011_v10 = vmax.f32 %v1531_v8, %v6072_v48 }
 0x30f   : > { %v2013_v13 = vmax.f32 %v1538_v44, %v6074_v2  ;;  %v1346_v14 = vmax.f32 %v1261_v16, 0.0  ;;  %v1106_v7 = vadd.f32 %v8830_v23, %v8655_v54  ;;  %v10240_v38 = vpack.c.bf16 %v8678_v1, %v8668_v59  ;;  %v8982_v33 = vpop.f32.mrb[26].mxu0  ;;  %v8984_v59 = vpop.f32.mrb[26].mxu1 }
 0x310   : > { %v2012_v4 = vmax.f32 %v1539_v63, %v6073_v9  ;;  %v2014_v42 = vmax.f32 %v1540_v18, %v6075_v17  ;;  %v1347_v52 = vmax.f32 %v1104_v3, 0.0  ;;  %v1349_v30 = vmax.f32 %v1265_v57, 0.0  ;;  %v8992_v24 = vpop.f32.mrb[27].mxu1 }
 0x311   : > { %6555 = vmatpush1.bf16.msra.mxu1 %v10240_v38  ;;  %v10241_v51 = vpack.c.bf16 %v8704_v19, %v8696_v12  ;;  %v2305_v32 = vrot.slane %v2011_v10, %v8599_v27  ;;  %v2309_v8 = vrot.slane %v2011_v10, %v8602_v28  ;;  %v2321_v44 = vrot.slane %v2013_v13, %v8599_v27  ;;  %v8990_v19 = vpop.f32.mrb[27].mxu0  ;;  %v10243_v10 = vld [vmem:[#allocation58_spill] sm:$0xff] }
 0x312   : > { %v2325_v23 = vrot.slane %v2013_v13, %v8602_v28  ;;  %v2313_v1 = vrot.slane %v2012_v4, %v8599_v27  ;;  %v2317_v15 = vrot.slane %v2012_v4, %v8602_v28  ;;  %v2329_v34 = vrot.slane %v2014_v42, %v8599_v27  ;;  %v10244_v13 = vld [vmem:[#allocation57_spill] sm:$0xff] }
 0x313   : > { %6557 = vmatprep.subr.bf16.mxu1 %v10241_v51  ;;  %v2333_v12 = vrot.slane %v2014_v42, %v8602_v28  ;;  %v1398_v63 = vmax.f32 %v1344_v41, %v1346_v14  ;;  %v1399_v18 = vmax.f32 %v1347_v52, %v1349_v30  ;;  %v1348_v31 = vmax.f32 %v1106_v7, 0.0  ;;  %v2855_v41 = vld [vmem:[#allocation3 + $0x28] sm:$0xff]  ;;  %v2854_v57 = vld [vmem:[#allocation3 + $0x20] sm:$0xff]  ;;  %v9010_v38 = vpop.f32.mrb[28].mxu0  ;;  %v9012_v4 = vpop.f32.mrb[28].mxu1 }
 0x314   : > { %v1267_v48 = vadd.f32 %v8832_v6, %v8659_v55  ;;  %v10242_v2 = vpack.c.bf16 %v8708_v21, %v8706_v20  ;;  %v2716_v16 = vsel %vm2686_vm5, %v2313_v1, %v2305_v32  ;;  %v2722_v9 = vsel %vm2686_vm5, %v2317_v15, %v2309_v8  ;;  %3602 = vmatprep.mubr.f32.mxu1 %v2855_v41  ;;  %v9016_v30 = vpop.f32.mrb[29].mxu0  ;;  %v9018_v51 = vpop.f32.mrb[29].mxu1  ;;  %v10247_v1 = vld [vmem:[#allocation59_spill] sm:$0xff] }
 0x315   : > { %v1110_v17 = vadd.f32 %v8848_v29, %v8643_v49  ;;  %v1271_v3 = vadd.f32 %v8850_v62, %v8646_v50  ;;  %v10245_v14 = vpack.c.bf16 %v10243_v10, %v10244_v13  ;;  %v2717_v6 = vsel %vm2688_vm6, %v2321_v44, %v2716_v16  ;;  %3603 = vmatmul.mubr.f32.gmra.mrb[34].mxu1 %v2854_v57 }
 0x316   : > { %6559 = vmatpush1.bf16.msra.mxu1 %v10242_v2  ;;  %v2723_v20 = vsel %vm2688_vm6, %v2325_v23, %v2722_v9  ;;  %v1541_v21 = vcombine.low %v1397_v35, %v1398_v63  ;;  %v1542_v7 = vcombine.high %v1397_v35, %v1398_v63  ;;  %v2718_v29 = vsel %vm2690_vm7, %v2329_v34, %v2717_v6  ;;  %v10246_v23 = vld [vmem:[#allocation60_spill] sm:$0xff] }
 0x317   : > { %6561 = vmatprep.subr.bf16.mxu1 %v10245_v14  ;;  %v2724_v62 = vsel %vm2690_vm7, %v2333_v12, %v2723_v20  ;;  %v1350_v42 = vmax.f32 %v1267_v48, 0.0  ;;  %v1351_v52 = vmax.f32 %v1110_v17, 0.0  ;;  %v1353_v8 = vmax.f32 %v1271_v3, 0.0  ;;  %v10249_v48 = vld [vmem:[#allocation65_spill] sm:$0xff]  ;;  %v9037_v3 = vpop.f32.mrb[30].mxu0  ;;  %v9039_v41 = vpop.f32.mrb[30].mxu1 }
 0x318   : > { %v1549_v32 = vrot.slane %v1541_v21, %v8662_v56  ;;  %v1556_v35 = vrot.slane %v1542_v7, %v8662_v56  ;;  %v1112_v44 = vadd.f32 %v8852_v26, %v8655_v54  ;;  %v10248_v15 = vpack.c.bf16 %v10246_v23, %v10247_v1  ;;  %v9043_v13 = vpop.f32.mrb[31].mxu0 }
 0x319   : > { %v1400_v34 = vmax.f32 %v1348_v31, %v1350_v42  ;;  %v1273_v12 = vadd.f32 %v8854_v60, %v8659_v55  ;;  %v9031_v63 = vadd.f32 %v8862_v40, %v8643_v49  ;;  %v9035_v2 = vadd.f32 %v10249_v48, %v8646_v50  ;;  %v9045_v40 = vpop.f32.mrb[31].mxu1 }
 0x31a   : > { %6563 = vmatpush1.bf16.msra.mxu1 %v10248_v15  ;;  %v1557_v16 = vcombine.high %v1549_v32, %v1549_v32  ;;  %v1558_v9 = vcombine.high %v1556_v35, %v1556_v35  ;;  %v6076_v17 = vrot.slane %v1549_v32, 9  ;;  %v6078_v26 = vrot.slane %v1556_v35, 9  ;;  %10250 = vst [vmem:[#allocation58_spill] sm:$0xff] %v9045_v40 }
 0x31b   : > { %v1559_v31 = vcombine.low %v1399_v18, %v1400_v34  ;;  %v1560_v57 = vcombine.high %v1399_v18, %v1400_v34  ;;  %v9041_v10 = vmax.f32 %v1351_v52, %v1353_v8  ;;  %v1352_v60 = vmax.f32 %v1112_v44, 0.0 }
 0x31c   : > { %v6077_v14 = vrot.slane %v1557_v16, 9  ;;  %v6079_v6 = vrot.slane %v1558_v9, 9  ;;  %v2015_v20 = vmax.f32 %v1549_v32, %v6076_v17  ;;  %v2017_v21 = vmax.f32 %v1556_v35, %v6078_v26 }
 0x31d   : > { %v1567_v7 = vrot.slane %v1559_v31, %v8662_v56  ;;  %v1574_v42 = vrot.slane %v1560_v57, %v8662_v56  ;;  %v1354_v23 = vmax.f32 %v1273_v12, 0.0  ;;  %v1355_v1 = vmax.f32 %v9031_v63, 0.0 }
 0x31e   : > { %v2016_v15 = vmax.f32 %v1557_v16, %v6077_v14  ;;  %v2018_v18 = vmax.f32 %v1558_v9, %v6079_v6  ;;  %v2337_v52 = vrot.slane %v2015_v20, %v8599_v27  ;;  %v2341_v8 = vrot.slane %v2015_v20, %v8602_v28 }
 0x31f   : > { %v2353_v44 = vrot.slane %v2017_v21, %v8599_v27  ;;  %v2357_v34 = vrot.slane %v2017_v21, %v8602_v28  ;;  %v1575_v48 = vcombine.high %v1567_v7, %v1567_v7  ;;  %v1576_v32 = vcombine.high %v1574_v42, %v1574_v42 }
 0x320   : > { %v2345_v35 = vrot.slane %v2016_v15, %v8599_v27  ;;  %v2349_v17 = vrot.slane %v2016_v15, %v8602_v28  ;;  %v2361_v12 = vrot.slane %v2018_v18, %v8599_v27  ;;  %v2365_v63 = vrot.slane %v2018_v18, %v8602_v28 }
 0x321   : > { %v2719_v16 = vsel %vm2692_vm8, %v2337_v52, %v2718_v29  ;;  %v2725_v9 = vsel %vm2692_vm8, %v2341_v8, %v2724_v62  ;;  %v6080_v26 = vrot.slane %v1567_v7, 9  ;;  %v6081_v31 = vrot.slane %v1575_v48, 9 }
 0x322   : > { %v2720_v57 = vsel %vm2694_vm9, %v2345_v35, %v2719_v16  ;;  %v2726_v14 = vsel %vm2694_vm9, %v2349_v17, %v2725_v9  ;;  %2830 = vst [vmem:[#allocation3 + $0x50] sm:$0x1] %v2361_v12  ;;  %2831 = vst [vmem:[#allocation3 + $0x58] sm:$0x1] %v2365_v63  ;;  %v6082_v6 = vrot.slane %v1574_v42, 9  ;;  %v6083_v20 = vrot.slane %v1576_v32, 9 }
 0x323   : > { %v2721_v21 = vsel %vm2696_vm10, %v2353_v44, %v2720_v57  ;;  %v2727_v15 = vsel %vm2696_vm10, %v2357_v34, %v2726_v14  ;;  %v2019_v40 = vmax.f32 %v1567_v7, %v6080_v26  ;;  %v2020_v18 = vmax.f32 %v1575_v48, %v6081_v31  ;;  %v10251_v9 = vld [vmem:[#allocation66_spill] sm:$0xff] }
 0x324   : > { %2828 = vst [vmem:[#allocation3 + $0x40] sm:$0xfe] %v2721_v21  ;;  %2829 = vst [vmem:[#allocation3 + $0x48] sm:$0xfe] %v2727_v15  ;;  %v2021_v29 = vmax.f32 %v1574_v42, %v6082_v6  ;;  %v2022_v62 = vmax.f32 %v1576_v32, %v6083_v20  ;;  %v1402_v52 = vmax.f32 %v1352_v60, %v1354_v23  ;;  %v1357_v8 = vmax.f32 %v9035_v2, 0.0  ;;  %v10252_v21 = vld [vmem:[#allocation67_spill] sm:$0xff] }
 0x325   : > { %v2369_v35 = vrot.slane %v2019_v40, %v8599_v27  ;;  %v2373_v17 = vrot.slane %v2019_v40, %v8602_v28  ;;  %v2377_v12 = vrot.slane %v2020_v18, %v8599_v27  ;;  %v2381_v63 = vrot.slane %v2020_v18, %v8602_v28 }
 0x326   : > { %v2385_v44 = vrot.slane %v2021_v29, %v8599_v27  ;;  %v2389_v7 = vrot.slane %v2021_v29, %v8602_v28  ;;  %v2393_v34 = vrot.slane %v2022_v62, %v8599_v27  ;;  %v2397_v42 = vrot.slane %v2022_v62, %v8602_v28 }
 0x327   : > { %v2728_v60 = vsel %vm2686_vm5, %v2377_v12, %v2369_v35  ;;  %v2734_v2 = vsel %vm2686_vm5, %v2381_v63, %v2373_v17  ;;  %v1577_v23 = vcombine.low %v9041_v10, %v1402_v52  ;;  %v1578_v40 = vcombine.high %v9041_v10, %v1402_v52 }
 0x328   : > { %v2729_v48 = vsel %vm2688_vm6, %v2385_v44, %v2728_v60  ;;  %v2735_v32 = vsel %vm2688_vm6, %v2389_v7, %v2734_v2  ;;  %v1403_v16 = vmax.f32 %v1355_v1, %v1357_v8  ;;  %v1118_v26 = vadd.f32 %v10251_v9, %v8655_v54 }
 0x329   : > { %v2730_v31 = vsel %vm2690_vm7, %v2393_v34, %v2729_v48  ;;  %v2736_v57 = vsel %vm2690_vm7, %v2397_v42, %v2735_v32  ;;  %v1585_v14 = vrot.slane %v1577_v23, %v8662_v56  ;;  %v1592_v6 = vrot.slane %v1578_v40, %v8662_v56  ;;  %v10253_v23 = vld [vmem:[#allocation68_spill] sm:$0xff] }
 0x32a   : > { %v1356_v20 = vmax.f32 %v1118_v26, 0.0  ;;  %v1279_v10 = vadd.f32 %v10252_v21, %v8659_v55  ;;  %v1122_v15 = vadd.f32 %v8880_v5, %v8643_v49  ;;  %v1283_v1 = vadd.f32 %v8882_v22, %v8646_v50 }
 0x32b   : > { %v1593_v18 = vcombine.high %v1585_v14, %v1585_v14  ;;  %v1594_v29 = vcombine.high %v1592_v6, %v1592_v6  ;;  %v6084_v62 = vrot.slane %v1585_v14, 9  ;;  %v6086_v52 = vrot.slane %v1592_v6, 9  ;;  %v2857_v8 = vld [vmem:[#allocation3 + $0x48] sm:$0xff]  ;;  %v2856_v35 = vld [vmem:[#allocation3 + $0x40] sm:$0xff] }
 0x32c   : > { %v1358_v17 = vmax.f32 %v1279_v10, 0.0  ;;  %v1359_v12 = vmax.f32 %v1122_v15, 0.0  ;;  %v1361_v63 = vmax.f32 %v1283_v1, 0.0  ;;  %v1124_v44 = vadd.f32 %v8890_v43, %v8655_v54  ;;  %3608 = vmatprep.mubr.f32.mxu1 %v2857_v8  ;;  %v2869_v10 = vld [vmem:[#allocation3 + $0x8] sm:$0xfe] }
 0x32d   : > { %v6085_v7 = vrot.slane %v1593_v18, 9  ;;  %v6087_v34 = vrot.slane %v1594_v29, 9  ;;  %v2023_v42 = vmax.f32 %v1585_v14, %v6084_v62  ;;  %v2025_v5 = vmax.f32 %v1592_v6, %v6086_v52  ;;  %3609 = vmatmul.mubr.f32.gmra.mrb[36].mxu1 %v2856_v35  ;;  %v2871_v35 = vld [vmem:[#allocation3 + $0x18] sm:$0x1] }
 0x32e   : > { %v1404_v22 = vmax.f32 %v1356_v20, %v1358_v17  ;;  %v9093_v60 = vmax.f32 %v1359_v12, %v1361_v63  ;;  %v1360_v2 = vmax.f32 %v1124_v44, 0.0  ;;  %v1285_v40 = vadd.f32 %v10253_v23, %v8659_v55  ;;  %v2868_v44 = vld [vmem:[#allocation3] sm:$0xfe] }
 0x32f   : > { %v2024_v48 = vmax.f32 %v1593_v18, %v6085_v7  ;;  %v2026_v32 = vmax.f32 %v1594_v29, %v6087_v34  ;;  %v2401_v9 = vrot.slane %v2023_v42, %v8599_v27  ;;  %v2405_v43 = vrot.slane %v2023_v42, %v8602_v28  ;;  %v2870_v7 = vld [vmem:[#allocation3 + $0x10] sm:$0x1] }
 0x330   : > { %v2417_v26 = vrot.slane %v2025_v5, %v8599_v27  ;;  %v2421_v14 = vrot.slane %v2025_v5, %v8602_v28  ;;  %v1595_v6 = vcombine.low %v1403_v16, %v1404_v22  ;;  %v1596_v21 = vcombine.high %v1403_v16, %v1404_v22 }
 0x331   : > { %v2409_v20 = vrot.slane %v2024_v48, %v8599_v27  ;;  %v2413_v15 = vrot.slane %v2024_v48, %v8602_v28  ;;  %v2425_v1 = vrot.slane %v2026_v32, %v8599_v27  ;;  %v2429_v18 = vrot.slane %v2026_v32, %v8602_v28 }
 0x332   : > { %v2731_v29 = vsel %vm2692_vm8, %v2401_v9, %v2730_v31  ;;  %v2737_v62 = vsel %vm2692_vm8, %v2405_v43, %v2736_v57  ;;  %v1603_v52 = vrot.slane %v1595_v6, %v8662_v56  ;;  %v1610_v8 = vrot.slane %v1596_v21, %v8662_v56 }
 0x333   : > { %v2732_v16 = vsel %vm2694_vm9, %v2409_v20, %v2731_v29  ;;  %v2738_v17 = vsel %vm2694_vm9, %v2413_v15, %v2737_v62  ;;  %2834 = vst [vmem:[#allocation3 + $0x70] sm:$0x1] %v2425_v1  ;;  %2835 = vst [vmem:[#allocation3 + $0x78] sm:$0x1] %v2429_v18  ;;  %v1362_v12 = vmax.f32 %v1285_v40, 0.0  ;;  %v2936_v63 = vrot.slane %v2869_v10, 1 }
 0x334   : > { %v2733_v34 = vsel %vm2696_vm10, %v2417_v26, %v2732_v16  ;;  %v2739_v31 = vsel %vm2696_vm10, %v2421_v14, %v2738_v17  ;;  %v1611_v57 = vcombine.high %v1603_v52, %v1603_v52  ;;  %v1612_v42 = vcombine.high %v1610_v8, %v1610_v8 }
 0x335   : > { %2832 = vst [vmem:[#allocation3 + $0x60] sm:$0xfe] %v2733_v34  ;;  %2833 = vst [vmem:[#allocation3 + $0x68] sm:$0xfe] %v2739_v31  ;;  %v6088_v5 = vrot.slane %v1603_v52, 9  ;;  %v6090_v22 = vrot.slane %v1610_v8, 9  ;;  %v1406_v23 = vmax.f32 %v1360_v2, %v1362_v12  ;;  %v1289_v34 = vadd.f32 %v8907_v25, %v8646_v50 }
 0x336   : > { %v2937_v48 = vrot.slane %v2871_v35, 1  ;;  %v6089_v32 = vrot.slane %v1611_v57, 9  ;;  %v6091_v9 = vrot.slane %v1612_v42, 9  ;;  %v2933_v43 = vrot.slane %v2868_v44, 1  ;;  %v10254_v12 = vld [vmem:[#allocation40_spill] sm:$0xff] }
 0x337   : > { %v2934_v6 = vrot.slane %v2870_v7, 1  ;;  %v2027_v40 = vmax.f32 %v1603_v52, %v6088_v5  ;;  %v2029_v21 = vmax.f32 %v1610_v8, %v6090_v22  ;;  %v1613_v10 = vcombine.low %v9093_v60, %v1406_v23  ;;  %v10257_v22 = vld [vmem:[#allocation42_spill] sm:$0xff] }
 0x338   : > { %v1614_v26 = vcombine.high %v9093_v60, %v1406_v23  ;;  %v2028_v20 = vmax.f32 %v1611_v57, %v6089_v32  ;;  %v2030_v14 = vmax.f32 %v1612_v42, %v6091_v9  ;;  %v9116_v15 = vsel %vm2932_vm11, %v2936_v63, %v2937_v48  ;;  %v10255_v63 = vld [vmem:[#allocation39_spill] sm:$0xff]  ;;  %v10258_v23 = vld [vmem:[#allocation41_spill] sm:$0xff] }
 0x339   : > { %v9119_v1 = vsel %vm2932_vm11, %v2933_v43, %v2934_v6  ;;  %v2433_v2 = vrot.slane %v2027_v40, %v8599_v27  ;;  %v2437_v18 = vrot.slane %v2027_v40, %v8602_v28  ;;  %v2449_v29 = vrot.slane %v2029_v21, %v8599_v27  ;;  %3709 = vmatprep.mubr.f32.mxu0 %v9116_v15 }
 0x33a   : > { %v2453_v62 = vrot.slane %v2029_v21, %v8602_v28  ;;  %v2441_v60 = vrot.slane %v2028_v20, %v8599_v27  ;;  %v2445_v52 = vrot.slane %v2028_v20, %v8602_v28  ;;  %v2457_v8 = vrot.slane %v2030_v14, %v8599_v27  ;;  %3710 = vmatmul.mubr.f32.vlgmr.msra.gmra.mrb[32].mxu0 %v9119_v1 }
 0x33b   : > { %v2461_v35 = vrot.slane %v2030_v14, %v8602_v28  ;;  %v1621_v16 = vrot.slane %v1613_v10, %v8662_v56  ;;  %v1628_v17 = vrot.slane %v1614_v26, %v8662_v56  ;;  %v10256_v44 = vpack.c.bf16 %v10254_v12, %v10255_v63  ;;  %v10263_v63 = vld [vmem:[#allocation46_spill] sm:$0xff] }
 0x33c   : > { %v1128_v7 = vadd.f32 %v8905_v53, %v8643_v49  ;;  %v2740_v31 = vsel %vm2686_vm5, %v2441_v60, %v2433_v2  ;;  %v2746_v57 = vsel %vm2686_vm5, %v2445_v52, %v2437_v18  ;;  %v1130_v42 = vadd.f32 %v8915_v36, %v8655_v54  ;;  %v2859_v32 = vld [vmem:[#allocation3 + $0x68] sm:$0xff]  ;;  %v2858_v9 = vld [vmem:[#allocation3 + $0x60] sm:$0xff]  ;;  %v10260_v2 = vld [vmem:[#allocation44_spill] sm:$0xff] }
 0x33d   : > { %6479 = vmatpush1.bf16.msra.mxu0 %v10256_v44  ;;  %v1291_v5 = vadd.f32 %v8917_v37, %v8659_v55  ;;  %v10259_v48 = vpack.c.bf16 %v10257_v22, %v10258_v23  ;;  %v2741_v53 = vsel %vm2688_vm6, %v2449_v29, %v2740_v31  ;;  %v2747_v25 = vsel %vm2688_vm6, %v2453_v62, %v2746_v57  ;;  %v10261_v18 = vld [vmem:[#allocation43_spill] sm:$0xff]  ;;  %v10264_v44 = vld [vmem:[#allocation45_spill] sm:$0xff] }
 0x33e   : > { %v1629_v43 = vcombine.high %v1621_v16, %v1621_v16  ;;  %v1630_v6 = vcombine.high %v1628_v17, %v1628_v17  ;;  %3614 = vmatprep.mubr.f32.mxu1 %v2859_v32  ;;  %v2742_v40 = vsel %vm2690_vm7, %v2457_v8, %v2741_v53  ;;  %v2748_v36 = vsel %vm2690_vm7, %v2461_v35, %v2747_v25  ;;  %v10266_v32 = vld [vmem:[#allocation48_spill] sm:$0xff] }
 0x33f   : > { %6481 = vmatprep.subr.bf16.mxu0 %v10259_v48  ;;  %v6092_v21 = vrot.slane %v1621_v16, 9  ;;  %v6094_v10 = vrot.slane %v1628_v17, 9  ;;  %3615 = vmatmul.mubr.f32.gmra.mrb[38].mxu1 %v2858_v9  ;;  %v1363_v20 = vmax.f32 %v1128_v7, 0.0  ;;  %v1365_v14 = vmax.f32 %v1289_v34, 0.0  ;;  %v10267_v9 = vld [vmem:[#allocation47_spill] sm:$0xff] }
 0x340   : > { %v6093_v37 = vrot.slane %v1629_v43, 9  ;;  %v6095_v26 = vrot.slane %v1630_v6, 9  ;;  %v10262_v60 = vpack.c.bf16 %v10260_v2, %v10261_v18  ;;  %v1364_v52 = vmax.f32 %v1130_v42, 0.0  ;;  %v2872_v18 = vld [vmem:[#allocation3 + $0x20] sm:$0xfe] }
 0x341   : > { %v2031_v29 = vmax.f32 %v1621_v16, %v6092_v21  ;;  %v2033_v62 = vmax.f32 %v1628_v17, %v6094_v10  ;;  %v1366_v12 = vmax.f32 %v1291_v5, 0.0  ;;  %v10265_v8 = vpack.c.bf16 %v10263_v63, %v10264_v44  ;;  %v2873_v21 = vld [vmem:[#allocation3 + $0x28] sm:$0xfe] }
 0x342   : > { %6483 = vmatpush1.bf16.msra.mxu0 %v10262_v60  ;;  %v2032_v35 = vmax.f32 %v1629_v43, %v6093_v37  ;;  %v2034_v31 = vmax.f32 %v1630_v6, %v6095_v26  ;;  %v1407_v57 = vmax.f32 %v1363_v20, %v1365_v14  ;;  %v1134_v22 = vadd.f32 %v8933_v39, %v8643_v49  ;;  %v10269_v10 = vld [vmem:[#allocation50_spill] sm:$0xff]  ;;  %v10270_v37 = vld [vmem:[#allocation49_spill] sm:$0xff] }
 0x343   : > { %6485 = vmatprep.subr.bf16.mxu0 %v10265_v8  ;;  %v2465_v7 = vrot.slane %v2031_v29, %v8599_v27  ;;  %v2469_v34 = vrot.slane %v2031_v29, %v8602_v28  ;;  %v2481_v23 = vrot.slane %v2033_v62, %v8599_v27  ;;  %v2485_v16 = vrot.slane %v2033_v62, %v8602_v28 }
 0x344   : > { %v2473_v17 = vrot.slane %v2032_v35, %v8599_v27  ;;  %v2477_v42 = vrot.slane %v2032_v35, %v8602_v28  ;;  %v2489_v5 = vrot.slane %v2034_v31, %v8599_v27  ;;  %v2493_v48 = vrot.slane %v2034_v31, %v8602_v28  ;;  %v10272_v35 = vld [vmem:[#allocation52_spill] sm:$0xff]  ;;  %v10273_v31 = vld [vmem:[#allocation51_spill] sm:$0xff] }
 0x345   : > { %v10268_v53 = vpack.c.bf16 %v10266_v32, %v10267_v9  ;;  %v2743_v39 = vsel %vm2692_vm8, %v2465_v7, %v2742_v40  ;;  %v2749_v25 = vsel %vm2692_vm8, %v2469_v34, %v2748_v36  ;;  %v1408_v43 = vmax.f32 %v1364_v52, %v1366_v12  ;;  %v2875_v36 = vld [vmem:[#allocation3 + $0x38] sm:$0x1]  ;;  %v2874_v12 = vld [vmem:[#allocation3 + $0x30] sm:$0x1] }
 0x346   : > { %v1367_v6 = vmax.f32 %v1134_v22, 0.0  ;;  %v10271_v26 = vpack.c.bf16 %v10269_v10, %v10270_v37  ;;  %v2744_v20 = vsel %vm2694_vm9, %v2473_v17, %v2743_v39  ;;  %v2750_v14 = vsel %vm2694_vm9, %v2477_v42, %v2749_v25  ;;  %2838 = vst [vmem:[#allocation3 + $0x90] sm:$0x1] %v2489_v5  ;;  %2839 = vst [vmem:[#allocation3 + $0x98] sm:$0x1] %v2493_v48  ;;  %v10278_v37 = vld [vmem:[#allocation56_spill] sm:$0xff] }
 0x347   : > { %6487 = vmatpush1.bf16.msra.mxu0 %v10268_v53  ;;  %v1295_v2 = vadd.f32 %v8935_v61, %v8646_v50  ;;  %v1136_v40 = vadd.f32 %v8941_v45, %v8655_v54  ;;  %v2745_v60 = vsel %vm2696_vm10, %v2481_v23, %v2744_v20  ;;  %v2751_v29 = vsel %vm2696_vm10, %v2485_v16, %v2750_v14  ;;  %v10276_v16 = vld [vmem:[#allocation53_spill] sm:$0xff] }
 0x348   : > { %6489 = vmatprep.subr.bf16.mxu0 %v10271_v26  ;;  %v1631_v62 = vcombine.low %v1407_v57, %v1408_v43  ;;  %v1632_v52 = vcombine.high %v1407_v57, %v1408_v43  ;;  %2836 = vst [vmem:[#allocation3 + $0x80] sm:$0xfe] %v2745_v60  ;;  %2837 = vst [vmem:[#allocation3 + $0x88] sm:$0xfe] %v2751_v29  ;;  %v1297_v8 = vadd.f32 %v8943_v0, %v8659_v55  ;;  %v10275_v57 = vld [vmem:[#allocation54_spill] sm:$0xff]  ;;  %v10279_v26 = vld [vmem:[#allocation55_spill] sm:$0xff] }
 0x349   : > { %v1369_v63 = vmax.f32 %v1295_v2, 0.0  ;;  %v1368_v44 = vmax.f32 %v1136_v40, 0.0  ;;  %v2942_v61 = vrot.slane %v2873_v21, 1  ;;  %v10274_v45 = vpack.c.bf16 %v10272_v35, %v10273_v31  ;;  %v10281_v40 = vld [vmem:[#allocation62_spill] sm:$0xff] }
 0x34a   : > { %v1639_v22 = vrot.slane %v1631_v62, %v8662_v56  ;;  %v1646_v7 = vrot.slane %v1632_v52, %v8662_v56  ;;  %v2943_v34 = vrot.slane %v2875_v36, 1  ;;  %v2939_v23 = vrot.slane %v2872_v18, 1  ;;  %v10282_v36 = vld [vmem:[#allocation61_spill] sm:$0xff] }
 0x34b   : > { %6491 = vmatpush1.bf16.msra.mxu0 %v10274_v45  ;;  %v10277_v17 = vpack.c.bf16 %v10275_v57, %v10276_v16  ;;  %v1409_v42 = vmax.f32 %v1367_v6, %v1369_v63  ;;  %v1370_v5 = vmax.f32 %v1297_v8, 0.0  ;;  %v2940_v48 = vrot.slane %v2874_v12, 1 }
 0x34c   : > { %v1140_v0 = vadd.f32 %v8958_v46, %v8643_v49  ;;  %v1647_v32 = vcombine.high %v1639_v22, %v1639_v22  ;;  %v1648_v9 = vcombine.high %v1646_v7, %v1646_v7  ;;  %v6096_v53 = vrot.slane %v1639_v22, 9 }
 0x34d   : > { %6493 = vmatprep.subr.bf16.mxu0 %v10277_v17  ;;  %v6098_v39 = vrot.slane %v1646_v7, 9  ;;  %v1410_v25 = vmax.f32 %v1368_v44, %v1370_v5  ;;  %v9198_v43 = vsel %vm2932_vm11, %v2942_v61, %v2943_v34  ;;  %v9201_v21 = vsel %vm2932_vm11, %v2939_v23, %v2940_v48  ;;  %v10285_v34 = vld [vmem:[#allocation63_spill] sm:$0xff] }
 0x34e   : > { %v1371_v10 = vmax.f32 %v1140_v0, 0.0  ;;  %v10280_v6 = vpack.c.bf16 %v10278_v37, %v10279_v26  ;;  %v6097_v20 = vrot.slane %v1647_v32, 9  ;;  %v6099_v14 = vrot.slane %v1648_v9, 9  ;;  %3715 = vmatprep.mubr.f32.mxu0 %v9198_v43 }
 0x34f   : > { %v2035_v2 = vmax.f32 %v1639_v22, %v6096_v53  ;;  %v2037_v46 = vmax.f32 %v1646_v7, %v6098_v39  ;;  %v10283_v18 = vpack.c.bf16 %v10281_v40, %v10282_v36  ;;  %v1649_v60 = vcombine.low %v1409_v42, %v1410_v25  ;;  %3716 = vmatmul.mubr.f32.gmra.mrb[34].mxu0 %v9201_v21  ;;  %v2861_v61 = vld [vmem:[#allocation3 + $0x88] sm:$0xff]  ;;  %v2860_v35 = vld [vmem:[#allocation3 + $0x80] sm:$0xff] }
 0x350   : > { %6495 = vmatpush1.bf16.msra.mxu0 %v10280_v6  ;;  %v1650_v29 = vcombine.high %v1409_v42, %v1410_v25  ;;  %v1301_v62 = vadd.f32 %v8960_v47, %v8646_v50  ;;  %v1142_v52 = vadd.f32 %v8966_v58, %v8655_v54  ;;  %v2036_v12 = vmax.f32 %v1647_v32, %v6097_v20  ;;  %v10284_v47 = vld [vmem:[#allocation64_spill] sm:$0xff] }
 0x351   : > { %6497 = vmatprep.subr.bf16.mxu0 %v10283_v18  ;;  %v2038_v63 = vmax.f32 %v1648_v9, %v6099_v14  ;;  %v2497_v44 = vrot.slane %v2035_v2, %v8599_v27  ;;  %v2501_v8 = vrot.slane %v2035_v2, %v8602_v28  ;;  %v2513_v31 = vrot.slane %v2037_v46, %v8599_v27 }
 0x352   : > { %v2517_v45 = vrot.slane %v2037_v46, %v8602_v28  ;;  %v1657_v22 = vrot.slane %v1649_v60, %v8662_v56  ;;  %v1664_v7 = vrot.slane %v1650_v29, %v8662_v56  ;;  %v10286_v23 = vpack.c.bf16 %v10284_v47, %v10285_v34  ;;  %3620 = vmatprep.mubr.f32.mxu1 %v2861_v61 }
 0x353   : > { %v2505_v58 = vrot.slane %v2036_v12, %v8599_v27  ;;  %v2509_v57 = vrot.slane %v2036_v12, %v8602_v28  ;;  %v2521_v16 = vrot.slane %v2038_v63, %v8599_v27  ;;  %v2525_v17 = vrot.slane %v2038_v63, %v8602_v28  ;;  %3621 = vmatmul.mubr.f32.gmra.mrb[40].mxu1 %v2860_v35 }
 0x354   : > { %6499 = vmatpush1.bf16.msra.mxu0 %v10286_v23  ;;  %v1665_v42 = vcombine.high %v1657_v22, %v1657_v22  ;;  %v1666_v5 = vcombine.high %v1664_v7, %v1664_v7  ;;  %v6100_v48 = vrot.slane %v1657_v22, 9  ;;  %v6102_v0 = vrot.slane %v1664_v7, 9  ;;  %v2879_v23 = vld [vmem:[#allocation3 + $0x58] sm:$0x1] }
 0x355   : > { %v2752_v32 = vsel %vm2686_vm5, %v2505_v58, %v2497_v44  ;;  %v2758_v9 = vsel %vm2686_vm5, %v2509_v57, %v2501_v8  ;;  %v1373_v53 = vmax.f32 %v1301_v62, 0.0  ;;  %v1372_v39 = vmax.f32 %v1142_v52, 0.0  ;;  %v2876_v58 = vld [vmem:[#allocation3 + $0x40] sm:$0xfe] }
 0x356   : > { %v2753_v25 = vsel %vm2688_vm6, %v2513_v31, %v2752_v32  ;;  %v2759_v37 = vsel %vm2688_vm6, %v2517_v45, %v2758_v9  ;;  %v6101_v26 = vrot.slane %v1665_v42, 9  ;;  %v6103_v6 = vrot.slane %v1666_v5, 9  ;;  %v2877_v45 = vld [vmem:[#allocation3 + $0x48] sm:$0xfe] }
 0x357   : > { %v2754_v20 = vsel %vm2690_vm7, %v2521_v16, %v2753_v25  ;;  %v2760_v14 = vsel %vm2690_vm7, %v2525_v17, %v2759_v37  ;;  %v2039_v2 = vmax.f32 %v1657_v22, %v6100_v48  ;;  %v2041_v46 = vmax.f32 %v1664_v7, %v6102_v0 }
 0x358   : > { %v2040_v40 = vmax.f32 %v1665_v42, %v6101_v26  ;;  %v2042_v36 = vmax.f32 %v1666_v5, %v6103_v6  ;;  %v1411_v18 = vmax.f32 %v1371_v10, %v1373_v53  ;;  %v1303_v60 = vadd.f32 %v8968_v11, %v8659_v55  ;;  %v2878_v42 = vld [vmem:[#allocation3 + $0x50] sm:$0x1] }
 0x359   : > { %v2529_v29 = vrot.slane %v2039_v2, %v8599_v27  ;;  %v2533_v62 = vrot.slane %v2039_v2, %v8602_v28  ;;  %v2545_v52 = vrot.slane %v2041_v46, %v8599_v27  ;;  %v2549_v12 = vrot.slane %v2041_v46, %v8602_v28 }
 0x35a   : > { %v2537_v63 = vrot.slane %v2040_v40, %v8599_v27  ;;  %v2541_v44 = vrot.slane %v2040_v40, %v8602_v28  ;;  %v2553_v8 = vrot.slane %v2042_v36, %v8599_v27  ;;  %v2557_v61 = vrot.slane %v2042_v36, %v8602_v28 }
 0x35b   : > { %v2755_v10 = vsel %vm2692_vm8, %v2529_v29, %v2754_v20  ;;  %v2761_v11 = vsel %vm2692_vm8, %v2533_v62, %v2760_v14  ;;  %v1374_v35 = vmax.f32 %v1303_v60, 0.0  ;;  %v1146_v31 = vadd.f32 %v8982_v33, %v8643_v49 }
 0x35c   : > { %v2756_v22 = vsel %vm2694_vm9, %v2537_v63, %v2755_v10  ;;  %v2762_v7 = vsel %vm2694_vm9, %v2541_v44, %v2761_v11  ;;  %2842 = vst [vmem:[#allocation3 + $0xb0] sm:$0x1] %v2553_v8  ;;  %2843 = vst [vmem:[#allocation3 + $0xb8] sm:$0x1] %v2557_v61  ;;  %v1307_v47 = vadd.f32 %v8984_v59, %v8646_v50  ;;  %v2948_v59 = vrot.slane %v2877_v45, 1 }
 0x35d   : > { %v1148_v34 = vadd.f32 %v8990_v19, %v8655_v54  ;;  %v2757_v57 = vsel %vm2696_vm10, %v2545_v52, %v2756_v22  ;;  %v2763_v16 = vsel %vm2696_vm10, %v2549_v12, %v2762_v7  ;;  %v1412_v33 = vmax.f32 %v1372_v39, %v1374_v35 }
 0x35e   : > { %v1375_v17 = vmax.f32 %v1146_v31, 0.0  ;;  %2840 = vst [vmem:[#allocation3 + $0xa0] sm:$0xfe] %v2757_v57  ;;  %2841 = vst [vmem:[#allocation3 + $0xa8] sm:$0xfe] %v2763_v16  ;;  %v1377_v5 = vmax.f32 %v1307_v47, 0.0  ;;  %v1309_v0 = vadd.f32 %v8992_v24, %v8659_v55  ;;  %v1152_v39 = vadd.f32 %v9010_v38, %v8643_v49 }
 0x35f   : > { %v1376_v48 = vmax.f32 %v1148_v34, 0.0  ;;  %v1667_v32 = vcombine.low %v1411_v18, %v1412_v33  ;;  %v1668_v9 = vcombine.high %v1411_v18, %v1412_v33  ;;  %v2949_v19 = vrot.slane %v2879_v23, 1  ;;  %v3177_v33 = vld [vmem:[#allocation10 + $0x198] sm:$0xff] }
 0x360   : > { %v2945_v53 = vrot.slane %v2876_v58, 1  ;;  %v1413_v25 = vmax.f32 %v1375_v17, %v1377_v5  ;;  %v1378_v37 = vmax.f32 %v1309_v0, 0.0  ;;  %v2946_v26 = vrot.slane %v2878_v42, 1  ;;  %v3181_v17 = vld [vmem:[#allocation10 + $0x1b8] sm:$0xff] }
 0x361   : > { %v1675_v6 = vrot.slane %v1667_v32, %v8662_v56  ;;  %v1682_v20 = vrot.slane %v1668_v9, %v8662_v56  ;;  %v9263_v14 = vsel %vm2932_vm11, %v2948_v59, %v2949_v19  ;;  %v1313_v24 = vadd.f32 %v9012_v4, %v8646_v50 }
 0x362   : > { %v1414_v2 = vmax.f32 %v1376_v48, %v1378_v37  ;;  %3721 = vmatprep.mubr.f32.mxu0 %v9263_v14  ;;  %v9269_v46 = vsel %vm2932_vm11, %v2945_v53, %v2946_v26  ;;  %v1379_v40 = vmax.f32 %v1152_v39, 0.0  ;;  %v9273_v38 = vadd.f32 %v9016_v30, %v8655_v54 }
 0x363   : > { %v1683_v36 = vcombine.high %v1675_v6, %v1675_v6  ;;  %v1684_v18 = vcombine.high %v1682_v20, %v1682_v20  ;;  %v6104_v60 = vrot.slane %v1675_v6, 9  ;;  %v6106_v29 = vrot.slane %v1682_v20, 9  ;;  %3722 = vmatmul.mubr.f32.gmra.mrb[36].mxu0 %v9269_v46 }
 0x364   : > { %v1685_v62 = vcombine.low %v1413_v25, %v1414_v2  ;;  %v1686_v52 = vcombine.high %v1413_v25, %v1414_v2  ;;  %v1381_v4 = vmax.f32 %v1313_v24, 0.0  ;;  %v1380_v12 = vmax.f32 %v9273_v38, 0.0 }
 0x365   : > { %v6105_v63 = vrot.slane %v1683_v36, 9  ;;  %v6107_v44 = vrot.slane %v1684_v18, 9  ;;  %v2043_v8 = vmax.f32 %v1675_v6, %v6104_v60  ;;  %v2045_v61 = vmax.f32 %v1682_v20, %v6106_v29  ;;  %v9277_v10 = vld [vmem:[#allocation3 + $0xa8] sm:$0xff]  ;;  %v9279_v11 = vld [vmem:[#allocation3 + $0xa0] sm:$0xff] }
 0x366   : > { %v1693_v30 = vrot.slane %v1685_v62, %v8662_v56  ;;  %v1700_v35 = vrot.slane %v1686_v52, %v8662_v56  ;;  %v9283_v31 = vmax.f32 %v1379_v40, %v1381_v4  ;;  %v1315_v45 = vadd.f32 %v9018_v51, %v8659_v55  ;;  %3626 = vmatprep.mubr.f32.mxu1 %v9277_v10 }
 0x367   : > { %v2044_v22 = vmax.f32 %v1683_v36, %v6105_v63  ;;  %v2046_v7 = vmax.f32 %v1684_v18, %v6107_v44  ;;  %v2561_v47 = vrot.slane %v2043_v8, %v8599_v27  ;;  %v2565_v34 = vrot.slane %v2043_v8, %v8602_v28  ;;  %3627 = vmatmul.mubr.f32.gmra.mrb[42].mxu1 %v9279_v11  ;;  %v3176_v36 = vld [vmem:[#allocation10 + $0x190] sm:$0xff] }
 0x368   : > { %v2577_v23 = vrot.slane %v2045_v61, %v8599_v27  ;;  %v2581_v58 = vrot.slane %v2045_v61, %v8602_v28  ;;  %v1701_v57 = vcombine.high %v1693_v30, %v1693_v30  ;;  %v1702_v16 = vcombine.high %v1700_v35, %v1700_v35  ;;  %v3180_v18 = vld [vmem:[#allocation10 + $0x1b0] sm:$0xff] }
 0x369   : > { %v2569_v51 = vrot.slane %v2044_v22, %v8599_v27  ;;  %v2573_v42 = vrot.slane %v2044_v22, %v8602_v28  ;;  %v2585_v5 = vrot.slane %v2046_v7, %v8599_v27  ;;  %v2589_v48 = vrot.slane %v2046_v7, %v8602_v28 }
 0x36a   : > { %v6108_v0 = vrot.slane %v1693_v30, 9  ;;  %v6109_v59 = vrot.slane %v1701_v57, 9  ;;  %v6110_v32 = vrot.slane %v1700_v35, 9  ;;  %v6111_v9 = vrot.slane %v1702_v16, 9 }
 0x36b   : > { %v2764_v19 = vsel %vm2686_vm5, %v2569_v51, %v2561_v47  ;;  %v2770_v53 = vsel %vm2686_vm5, %v2573_v42, %v2565_v34  ;;  %v1382_v25 = vmax.f32 %v1315_v45, 0.0  ;;  %v6564_v37 = vpack.c.bf16 %v3181_v17, %v3177_v33  ;;  %v3431_v17 = vld [vmem:[#allocation10 + $0x988] sm:$0xff] }
 0x36c   : > { %v2765_v26 = vsel %vm2688_vm6, %v2577_v23, %v2764_v19  ;;  %v2771_v39 = vsel %vm2688_vm6, %v2581_v58, %v2770_v53  ;;  %v2047_v6 = vmax.f32 %v1693_v30, %v6108_v0  ;;  %v2048_v20 = vmax.f32 %v1701_v57, %v6109_v59  ;;  %v2881_v23 = vld [vmem:[#allocation3 + $0x68] sm:$0xfe]  ;;  %v2883_v58 = vld [vmem:[#allocation3 + $0x78] sm:$0x1] }
 0x36d   : > { %v2766_v24 = vsel %vm2690_vm7, %v2585_v5, %v2765_v26  ;;  %v2772_v2 = vsel %vm2690_vm7, %v2589_v48, %v2771_v39  ;;  %v2049_v40 = vmax.f32 %v1700_v35, %v6110_v32  ;;  %v2050_v38 = vmax.f32 %v1702_v16, %v6111_v9  ;;  %6565 = vmatprep.subr.bf16.mxu1 %v6564_v37  ;;  %v3435_v51 = vld [vmem:[#allocation10 + $0x9a8] sm:$0xff] }
 0x36e   : > { %v2593_v60 = vrot.slane %v2047_v6, %v8599_v27  ;;  %v2597_v29 = vrot.slane %v2047_v6, %v8602_v28  ;;  %v2601_v62 = vrot.slane %v2048_v20, %v8599_v27  ;;  %v2605_v52 = vrot.slane %v2048_v20, %v8602_v28  ;;  %v2882_v32 = vld [vmem:[#allocation3 + $0x70] sm:$0x1] }
 0x36f   : > { %v2609_v4 = vrot.slane %v2049_v40, %v8599_v27  ;;  %v2613_v63 = vrot.slane %v2049_v40, %v8602_v28  ;;  %v2617_v44 = vrot.slane %v2050_v38, %v8599_v27  ;;  %v2621_v8 = vrot.slane %v2050_v38, %v8602_v28 }
 0x370   : > { %v2767_v61 = vsel %vm2692_vm8, %v2593_v60, %v2766_v24  ;;  %v2773_v30 = vsel %vm2692_vm8, %v2597_v29, %v2772_v2  ;;  %v1416_v35 = vmax.f32 %v1380_v12, %v1382_v25  ;;  %v6566_v45 = vpack.c.bf16 %v3180_v18, %v3176_v36 }
 0x371   : > { %v2768_v22 = vsel %vm2694_vm9, %v2601_v62, %v2767_v61  ;;  %v2774_v7 = vsel %vm2694_vm9, %v2605_v52, %v2773_v30  ;;  %2846 = vst [vmem:[#allocation3 + $0xd0] sm:$0x1] %v2617_v44  ;;  %2847 = vst [vmem:[#allocation3 + $0xd8] sm:$0x1] %v2621_v8  ;;  %v1158_v47 = vadd.f32 %v9037_v3, %v8643_v49  ;;  %v10287_v3 = vld [vmem:[#allocation58_spill] sm:$0xff]  ;;  %v2954_v0 = vrot.slane %v2881_v23, 1 }
 0x372   : > { %v1319_v34 = vadd.f32 %v9039_v41, %v8646_v50  ;;  %v2769_v57 = vsel %vm2696_vm10, %v2609_v4, %v2768_v22  ;;  %v2775_v16 = vsel %vm2696_vm10, %v2613_v63, %v2774_v7  ;;  %v1703_v12 = vcombine.low %v9283_v31, %v1416_v35  ;;  %6567 = vmatpush1.bf16.msra.mxu1 %v6566_v45  ;;  %v3185_v61 = vld [vmem:[#allocation10 + $0x1d8] sm:$0xff]  ;;  %v3184_v23 = vld [vmem:[#allocation10 + $0x1d0] sm:$0xff] }
 0x373   : > { %v1704_v33 = vcombine.high %v9283_v31, %v1416_v35  ;;  %2844 = vst [vmem:[#allocation3 + $0xc0] sm:$0xfe] %v2769_v57  ;;  %2845 = vst [vmem:[#allocation3 + $0xc8] sm:$0xfe] %v2775_v16  ;;  %v1383_v42 = vmax.f32 %v1158_v47, 0.0  ;;  %v1160_v50 = vadd.f32 %v9043_v13, %v8655_v54  ;;  %v1321_v41 = vadd.f32 %v10287_v3, %v8659_v55  ;;  %v3430_v54 = vld [vmem:[#allocation10 + $0x980] sm:$0xff] }
 0x374   : > { %v1385_v49 = vmax.f32 %v1319_v34, 0.0  ;;  %v1711_v5 = vrot.slane %v1703_v12, %v8662_v56  ;;  %v2955_v59 = vrot.slane %v2883_v58, 1  ;;  %v2880_v31 = vld [vmem:[#allocation3 + $0x60] sm:$0xfe]  ;;  %v6500_v25 = vpack.c.bf16 %v3435_v51, %v3431_v17  ;;  %v3188_v58 = vld [vmem:[#allocation10 + $0x1f0] sm:$0xff] }
 0x375   : > { %v1718_v48 = vrot.slane %v1704_v33, %v8662_v56  ;;  %v1384_v19 = vmax.f32 %v1160_v50, 0.0  ;;  %v1386_v53 = vmax.f32 %v1321_v41, 0.0  ;;  %v3434_v13 = vld [vmem:[#allocation10 + $0x9a0] sm:$0xff]  ;;  %v2951_v24 = vrot.slane %v2880_v31, 1  ;;  %v3189_v34 = vld [vmem:[#allocation10 + $0x1f8] sm:$0xff]  ;;  %v3439_v50 = vld [vmem:[#allocation10 + $0x9c8] sm:$0xff] }
 0x376   : > { %v1417_v9 = vmax.f32 %v1383_v42, %v1385_v49  ;;  %v1719_v37 = vcombine.high %v1711_v5, %v1711_v5  ;;  %v6112_v39 = vrot.slane %v1711_v5, 9  ;;  %v9330_v55 = vsel %vm2932_vm11, %v2954_v0, %v2955_v59  ;;  %6501 = vmatprep.subr.bf16.mxu0 %v6500_v25  ;;  %v3443_v0 = vld [vmem:[#allocation10 + $0x9e8] sm:$0xff]  ;;  %v3438_v59 = vld [vmem:[#allocation10 + $0x9c0] sm:$0xff] }
 0x377   : > { %v1720_v26 = vcombine.high %v1718_v48, %v1718_v48  ;;  %v6114_v6 = vrot.slane %v1718_v48, 9  ;;  %v1418_v20 = vmax.f32 %v1384_v19, %v1386_v53  ;;  %v2952_v2 = vrot.slane %v2882_v32, 1  ;;  %3727 = vmatprep.mubr.f32.mxu0 %v9330_v55  ;;  %v3442_v31 = vld [vmem:[#allocation10 + $0x9e0] sm:$0xff] }
 0x378   : > { %v6113_v40 = vrot.slane %v1719_v37, 9  ;;  %v2051_v36 = vmax.f32 %v1711_v5, %v6112_v39  ;;  %v6502_v52 = vpack.c.bf16 %v3434_v13, %v3430_v54  ;;  %v6568_v5 = vpack.c.bf16 %v3189_v34, %v3185_v61  ;;  %v3197_v54 = vld [vmem:[#allocation10 + $0x238] sm:$0xff]  ;;  %v3192_v13 = vld [vmem:[#allocation10 + $0x210] sm:$0xff]  ;;  %v3450_v61 = vld [vmem:[#allocation10 + $0xa20] sm:$0xff] }
 0x379   : > { %v6115_v38 = vrot.slane %v1720_v26, 9  ;;  %v2053_v18 = vmax.f32 %v1718_v48, %v6114_v6  ;;  %v1721_v60 = vcombine.low %v1417_v9, %v1418_v20  ;;  %v1722_v29 = vcombine.high %v1417_v9, %v1418_v20  ;;  %v3193_v6 = vld [vmem:[#allocation10 + $0x218] sm:$0xff] }
 0x37a   : > { %v9334_v62 = vsel %vm2932_vm11, %v2951_v24, %v2952_v2  ;;  %v2052_v4 = vmax.f32 %v1719_v37, %v6113_v40  ;;  %v2625_v44 = vrot.slane %v2051_v36, %v8599_v27  ;;  %v2629_v8 = vrot.slane %v2051_v36, %v8602_v28  ;;  %v9339_v30 = vld [vmem:[#allocation3 + $0xc8] sm:$0xff]  ;;  %v9341_v35 = vld [vmem:[#allocation3 + $0xc0] sm:$0xff]  ;;  %6503 = vmatpush1.bf16.msra.mxu0 %v6502_v52 }
 0x37b   : > { %v2054_v63 = vmax.f32 %v1720_v26, %v6115_v38  ;;  %3728 = vmatmul.mubr.f32.gmra.mrb[38].mxu0 %v9334_v62  ;;  %v2641_v45 = vrot.slane %v2053_v18, %v8599_v27  ;;  %v2645_v22 = vrot.slane %v2053_v18, %v8602_v28  ;;  %v1729_v7 = vrot.slane %v1721_v60, %v8662_v56  ;;  %v3196_v38 = vld [vmem:[#allocation10 + $0x230] sm:$0xff]  ;;  %v3447_v36 = vld [vmem:[#allocation10 + $0xa08] sm:$0xff] }
 0x37c   : > { %v1736_v47 = vrot.slane %v1722_v29, %v8662_v56  ;;  %v2633_v57 = vrot.slane %v2052_v4, %v8599_v27  ;;  %v2637_v16 = vrot.slane %v2052_v4, %v8602_v28  ;;  %3632 = vmatprep.mubr.f32.mxu1 %v9339_v30  ;;  %v6570_v48 = vpack.c.bf16 %v3188_v58, %v3184_v23  ;;  %v3451_v18 = vld [vmem:[#allocation10 + $0xa28] sm:$0xff]  ;;  %v2884_v58 = vld [vmem:[#allocation3 + $0x80] sm:$0xfe] }
 0x37d   : > { %v2649_v12 = vrot.slane %v2054_v63, %v8599_v27  ;;  %v2653_v33 = vrot.slane %v2054_v63, %v8602_v28  ;;  %v1737_v17 = vcombine.high %v1729_v7, %v1729_v7  ;;  %v6116_v42 = vrot.slane %v1729_v7, 9  ;;  %3633 = vmatmul.mubr.f32.gmra.mrb[44].mxu1 %v9341_v35  ;;  %6569 = vmatprep.subr.bf16.mxu1 %v6568_v5  ;;  %v2885_v63 = vld [vmem:[#allocation3 + $0x88] sm:$0xfe] }
 0x37e   : > { %v1738_v51 = vcombine.high %v1736_v47, %v1736_v47  ;;  %v6118_v49 = vrot.slane %v1736_v47, 9  ;;  %v2776_v3 = vsel %vm2686_vm5, %v2633_v57, %v2625_v44  ;;  %v2782_v41 = vsel %vm2686_vm5, %v2637_v16, %v2629_v8  ;;  %6571 = vmatpush1.bf16.msra.mxu1 %v6570_v48  ;;  %v2887_v44 = vld [vmem:[#allocation3 + $0x98] sm:$0x1]  ;;  %v3446_v8 = vld [vmem:[#allocation10 + $0xa00] sm:$0xff] }
 0x37f   : > { %v2777_v32 = vsel %vm2688_vm6, %v2641_v45, %v2776_v3  ;;  %v2783_v9 = vsel %vm2688_vm6, %v2645_v22, %v2782_v41  ;;  %v6117_v19 = vrot.slane %v1737_v17, 9  ;;  %v2055_v26 = vmax.f32 %v1729_v7, %v6116_v42  ;;  %v3201_v45 = vld [vmem:[#allocation10 + $0x258] sm:$0xff]  ;;  %v9367_v57 = vld [vmem:[#allocation10 + $0x250] sm:$0xff]  ;;  %v9373_v3 = vld [vmem:[#allocation10 + $0xa40] sm:$0xff] }
 0x380   : > { %v6119_v53 = vrot.slane %v1738_v51, 9  ;;  %v2778_v25 = vsel %vm2690_vm7, %v2649_v12, %v2777_v32  ;;  %v2784_v37 = vsel %vm2690_vm7, %v2653_v33, %v2783_v9  ;;  %v2057_v39 = vmax.f32 %v1736_v47, %v6118_v49  ;;  %v3205_v22 = vld [vmem:[#allocation10 + $0x278] sm:$0xff]  ;;  %v9369_v16 = vld [vmem:[#allocation10 + $0x270] sm:$0xff]  ;;  %v3455_v12 = vld [vmem:[#allocation10 + $0xa48] sm:$0xff] }
 0x381   : > { %v2056_v20 = vmax.f32 %v1737_v17, %v6117_v19  ;;  %v6504_v2 = vpack.c.bf16 %v3443_v0, %v3439_v50  ;;  %v6506_v40 = vpack.c.bf16 %v3442_v31, %v3438_v59  ;;  %v2657_v60 = vrot.slane %v2055_v26, %v8599_v27  ;;  %v3459_v33 = vld [vmem:[#allocation10 + $0xa68] sm:$0xff]  ;;  %v9375_v41 = vld [vmem:[#allocation10 + $0xa60] sm:$0xff]  ;;  %v3209_v31 = vld [vmem:[#allocation10 + $0x298] sm:$0xff] }
 0x382   : > { %v2058_v24 = vmax.f32 %v1738_v51, %v6119_v53  ;;  %v2661_v29 = vrot.slane %v2055_v26, %v8602_v28  ;;  %v2673_v52 = vrot.slane %v2057_v39, %v8599_v27  ;;  %v2677_v4 = vrot.slane %v2057_v39, %v8602_v28  ;;  %v2886_v50 = vld [vmem:[#allocation3 + $0x90] sm:$0x1]  ;;  %v3213_v32 = vld [vmem:[#allocation10 + $0x2b8] sm:$0xff]  ;;  %v2889_v9 = vld [vmem:[#allocation3 + $0xa8] sm:$0xfe] }
 0x383   : > { %v2665_v7 = vrot.slane %v2056_v20, %v8599_v27  ;;  %v2669_v47 = vrot.slane %v2056_v20, %v8602_v28  ;;  %6505 = vmatprep.subr.bf16.mxu0 %v6504_v2  ;;  %v2779_v17 = vsel %vm2692_vm8, %v2657_v60, %v2778_v25  ;;  %v6572_v42 = vpack.c.bf16 %v3197_v54, %v3193_v6  ;;  %v9381_v26 = vld [vmem:[#allocation10 + $0x290] sm:$0xff]  ;;  %v3463_v6 = vld [vmem:[#allocation10 + $0xa88] sm:$0xff] }
 0x384   : > { %v2681_v34 = vrot.slane %v2058_v24, %v8599_v27  ;;  %v2685_v23 = vrot.slane %v2058_v24, %v8602_v28  ;;  %v2785_v51 = vsel %vm2692_vm8, %v2661_v29, %v2784_v37  ;;  %6507 = vmatpush1.bf16.msra.mxu0 %v6506_v40  ;;  %v6574_v49 = vpack.c.bf16 %v3196_v38, %v3192_v13  ;;  %v2891_v39 = vld [vmem:[#allocation3 + $0xb8] sm:$0x1]  ;;  %v3467_v2 = vld [vmem:[#allocation10 + $0xaa8] sm:$0xff]  ;;  %v2888_v40 = vld [vmem:[#allocation3 + $0xa0] sm:$0xfe] }
 0x385   : > { %v2780_v5 = vsel %vm2694_vm9, %v2665_v7, %v2779_v17  ;;  %v2786_v48 = vsel %vm2694_vm9, %v2669_v47, %v2785_v51  ;;  %v2960_v0 = vrot.slane %v2885_v63, 1  ;;  %v2961_v59 = vrot.slane %v2887_v44, 1  ;;  %6573 = vmatprep.subr.bf16.mxu1 %v6572_v42  ;;  %v2890_v38 = vld [vmem:[#allocation3 + $0xb0] sm:$0x1]  ;;  %v3212_v60 = vld [vmem:[#allocation10 + $0x2b0] sm:$0xff] }
 0x386   : > { %2850 = vst [vmem:[#allocation3 + $0xf0] sm:$0x1] %v2681_v34  ;;  %2851 = vst [vmem:[#allocation3 + $0xf8] sm:$0x1] %v2685_v23  ;;  %v2781_v19 = vsel %vm2696_vm10, %v2673_v52, %v2780_v5  ;;  %v2787_v53 = vsel %vm2696_vm10, %v2677_v4, %v2786_v48  ;;  %v6508_v25 = vpack.c.bf16 %v3451_v18, %v3447_v36  ;;  %v2957_v37 = vrot.slane %v2884_v58, 1  ;;  %v9389_v52 = vld [vmem:[#allocation10 + $0xa80] sm:$0xff] }
 0x387   : > { %2848 = vst [vmem:[#allocation3 + $0xe0] sm:$0xfe] %v2781_v19  ;;  %2849 = vst [vmem:[#allocation3 + $0xe8] sm:$0xfe] %v2787_v53  ;;  %6575 = vmatpush1.bf16.msra.mxu1 %v6574_v49  ;;  %v9384_v54 = vsel %vm2932_vm11, %v2960_v0, %v2961_v59  ;;  %v2958_v13 = vrot.slane %v2886_v50, 1  ;;  %v6510_v20 = vpack.c.bf16 %v3450_v61, %v3446_v8  ;;  %v2966_v29 = vrot.slane %v2889_v9, 1 }
 0x388   : > { %v6576_v24 = vpack.c.bf16 %v3205_v22, %v3201_v45  ;;  %3733 = vmatprep.mubr.f32.mxu0 %v9384_v54  ;;  %6509 = vmatprep.subr.bf16.mxu0 %v6508_v25  ;;  %v6578_v36 = vpack.c.bf16 %v9369_v16, %v9367_v57  ;;  %v6512_v18 = vpack.c.bf16 %v3459_v33, %v3455_v12  ;;  %v9391_v4 = vld [vmem:[#allocation10 + $0xaa0] sm:$0xff]  ;;  %v2967_v61 = vrot.slane %v2891_v39, 1  ;;  %v3217_v45 = vld [vmem:[#allocation10 + $0x2d8] sm:$0xff]  ;;  %v9399_v58 = vld [vmem:[#allocation10 + $0x2d0] sm:$0xff] }
 0x389   : > { %v9394_v63 = vsel %vm2932_vm11, %v2957_v37, %v2958_v13  ;;  %6511 = vmatpush1.bf16.msra.mxu0 %v6510_v20  ;;  %v6514_v44 = vpack.c.bf16 %v9375_v41, %v9373_v3  ;;  %v6580_v8 = vpack.c.bf16 %v3213_v32, %v3209_v31  ;;  %v3221_v22 = vld [vmem:[#allocation10 + $0x2f8] sm:$0xff]  ;;  %v2893_v7 = vld [vmem:[#allocation3 + $0xc8] sm:$0xfe]  ;;  %v6516_v47 = vpack.c.bf16 %v3467_v2, %v3463_v6  ;;  %v3220_v57 = vld [vmem:[#allocation10 + $0x2f0] sm:$0xff] }
 0x38a   : > { %6577 = vmatprep.subr.bf16.mxu1 %v6576_v24  ;;  %3734 = vmatmul.mubr.f32.gmra.mrb[40].mxu0 %v9394_v63  ;;  %v2963_v34 = vrot.slane %v2888_v40, 1  ;;  %v2964_v23 = vrot.slane %v2890_v38, 1  ;;  %v2895_v16 = vld [vmem:[#allocation3 + $0xd8] sm:$0x1]  ;;  %v2892_v12 = vld [vmem:[#allocation3 + $0xc0] sm:$0xfe]  ;;  %v6582_v33 = vpack.c.bf16 %v3212_v60, %v9381_v26  ;;  %v9403_v17 = vsel %vm2932_vm11, %v2966_v29, %v2967_v61 }
 0x38b   : > { %6513 = vmatprep.subr.bf16.mxu0 %v6512_v18  ;;  %6579 = vmatpush1.bf16.msra.mxu1 %v6578_v36  ;;  %v3471_v51 = vld [vmem:[#allocation10 + $0xac8] sm:$0xff]  ;;  %v6584_v3 = vpack.c.bf16 %v3221_v22, %v3217_v45  ;;  %v9409_v41 = vld [vmem:[#allocation10 + $0xac0] sm:$0xff]  ;;  %v3225_v48 = vld [vmem:[#allocation10 + $0x318] sm:$0xff]  ;;  %v2972_v59 = vrot.slane %v2893_v7, 1  ;;  %v6518_v31 = vpack.c.bf16 %v9391_v4, %v9389_v52  ;;  %v2973_v32 = vrot.slane %v2895_v16, 1 }
 0x38c   : > { %v3475_v42 = vld [vmem:[#allocation10 + $0xae8] sm:$0xff]  ;;  %6581 = vmatprep.subr.bf16.mxu1 %v6580_v8  ;;  %3739 = vmatprep.mubr.f32.mxu0 %v9403_v17  ;;  %v9407_v50 = vsel %vm2932_vm11, %v2963_v34, %v2964_v23  ;;  %v3474_v5 = vld [vmem:[#allocation10 + $0xae0] sm:$0xff]  ;;  %v3229_v0 = vld [vmem:[#allocation10 + $0x338] sm:$0xff]  ;;  %v2969_v9 = vrot.slane %v2892_v12, 1  ;;  %v6586_v20 = vpack.c.bf16 %v3220_v57, %v9399_v58 }
 0x38d   : > { %v2894_v49 = vld [vmem:[#allocation3 + $0xd0] sm:$0x1]  ;;  %6515 = vmatpush1.bf16.msra.mxu0 %v6514_v44  ;;  %v2899_v19 = vld [vmem:[#allocation3 + $0xf8] sm:$0x1]  ;;  %v9413_v25 = vld [vmem:[#allocation3 + $0x8] sm:$0xfc]  ;;  %v6520_v37 = vpack.c.bf16 %v3475_v42, %v3471_v51  ;;  %v9422_v24 = vsel %vm2932_vm11, %v2972_v59, %v2973_v32  ;;  %v6588_v18 = vpack.c.bf16 %v3229_v0, %v3225_v48  ;;  %v6522_v44 = vpack.c.bf16 %v3474_v5, %v9409_v41 }
 0x38e   : > { %v2898_v53 = vld [vmem:[#allocation3 + $0xf0] sm:$0x1]  ;;  %6517 = vmatprep.subr.bf16.mxu0 %v6516_v47  ;;  %3740 = vmatmul.mubr.f32.gmra.mrb[42].mxu0 %v9407_v50  ;;  %v2970_v26 = vrot.slane %v2894_v49, 1  ;;  %v9416_v39 = vld [vmem:[#allocation3 + $0xe8] sm:$0xff]  ;;  %v9418_v6 = vld [vmem:[#allocation3 + $0xe0] sm:$0xff]  ;;  %v2979_v4 = vrot.slane %v2899_v19, 1 }
 0x38f   : > { %v2897_v13 = vld [vmem:[#allocation3 + $0xe8] sm:$0xfe]  ;;  %6583 = vmatpush1.bf16.msra.mxu1 %v6582_v33  ;;  %3638 = vmatprep.mubr.f32.mxu1 %v9416_v39  ;;  %v2896_v36 = vld [vmem:[#allocation3 + $0xe0] sm:$0xfe]  ;;  %v3224_v60 = vld [vmem:[#allocation10 + $0x310] sm:$0xff]  ;;  %v2976_v22 = vrot.slane %v2898_v53, 1 }
 0x390   : > { %v3479_v2 = vld [vmem:[#allocation10 + $0xb08] sm:$0xff]  ;;  %v2978_v38 = vrot.slane %v2897_v13, 1  ;;  %6585 = vmatprep.subr.bf16.mxu1 %v6584_v3  ;;  %v3228_v29 = vld [vmem:[#allocation10 + $0x330] sm:$0xff]  ;;  %3745 = vmatprep.mubr.f32.mxu0 %v9422_v24  ;;  %v9427_v52 = vsel %vm2932_vm11, %v2969_v9, %v2970_v26  ;;  %v3233_v8 = vld [vmem:[#allocation10 + $0x358] sm:$0xff]  ;;  %v2975_v45 = vrot.slane %v2896_v36, 1  ;;  %v3065_v57 = vrot.slane %v9413_v25, 2 }
 0x391   : > { %v3483_v40 = vld [vmem:[#allocation10 + $0xb28] sm:$0xff]  ;;  %6519 = vmatpush1.bf16.msra.mxu0 %v6518_v31  ;;  %v3237_v61 = vld [vmem:[#allocation10 + $0x378] sm:$0xff]  ;;  %3639 = vmatmul.mubr.f32.gmra.mrb[46].mxu1 %v9418_v6  ;;  %v3000_v7 = vld [vmem:[#allocation3 + $0x18] sm:$0x3]  ;;  %v6590_v16 = vpack.c.bf16 %v3228_v29, %v3224_v60 }
 0x392   : > { %6521 = vmatprep.subr.bf16.mxu0 %v6520_v37  ;;  %v6524_v47 = vpack.c.bf16 %v3483_v40, %v3479_v2  ;;  %3746 = vmatmul.mubr.f32.gmra.mrb[44].mxu0 %v9427_v52  ;;  %v3478_v34 = vld [vmem:[#allocation10 + $0xb00] sm:$0xff]  ;;  %v9433_v58 = vsel %vm2932_vm11, %v2978_v38, %v2979_v4  ;;  %v3487_v12 = vld [vmem:[#allocation10 + $0xb48] sm:$0xff]  ;;  %v9437_v42 = vsel %vm2932_vm11, %v2975_v45, %v2976_v22  ;;  %v3232_v3 = vld [vmem:[#allocation10 + $0x350] sm:$0xff]  ;;  %v3066_v5 = vrot.slane %v3000_v7, 2 }
 0x393   : > { %v3482_v23 = vld [vmem:[#allocation10 + $0xb20] sm:$0xff]  ;;  %6587 = vmatpush1.bf16.msra.mxu1 %v6586_v20  ;;  %v3491_v33 = vld [vmem:[#allocation10 + $0xb68] sm:$0xff]  ;;  %v6592_v49 = vpack.c.bf16 %v3237_v61, %v3233_v8  ;;  %v3236_v41 = vld [vmem:[#allocation10 + $0x370] sm:$0xff]  ;;  %3751 = vmatprep.mubr.f32.mxu0 %v9433_v58 }
 0x394   : > { %v7349_v51 = vld [vmem:[#allocation3 + $0x8] sm:$0xff]  ;;  %6589 = vmatprep.subr.bf16.mxu1 %v6588_v18  ;;  %v6526_v48 = vpack.c.bf16 %v3482_v23, %v3478_v34  ;;  %v3241_v0 = vld [vmem:[#allocation10 + $0x398] sm:$0xff]  ;;  %v6528_v31 = vpack.c.bf16 %v3491_v33, %v3487_v12  ;;  %v9442_v19 = vsel %vm3061_vm12, %v3065_v57, %v3066_v5  ;;  %v6594_v53 = vpack.c.bf16 %v3236_v41, %v3232_v3  ;;  %v3240_v13 = vld [vmem:[#allocation10 + $0x390] sm:$0xff] }
 0x395   : > { %3935 = vmatprep.mubr.f32.mxu1 %v7349_v51  ;;  %6523 = vmatpush1.bf16.msra.mxu0 %v6522_v44  ;;  %v3245_v59 = vld [vmem:[#allocation10 + $0x3b8] sm:$0xff]  ;;  %v3486_v32 = vld [vmem:[#allocation10 + $0xb40] sm:$0xff]  ;;  %v3495_v25 = vld [vmem:[#allocation10 + $0xb88] sm:$0xff] }
 0x396   : > { %6525 = vmatprep.subr.bf16.mxu0 %v6524_v47  ;;  %v3490_v9 = vld [vmem:[#allocation10 + $0xb60] sm:$0xff]  ;;  %3752 = vmatmul.mubr.f32.gmra.mrb[46].mxu0 %v9437_v42  ;;  %v3499_v37 = vld [vmem:[#allocation10 + $0xba8] sm:$0xff]  ;;  %v6596_v26 = vpack.c.bf16 %v3245_v59, %v3241_v0  ;;  %v3244_v20 = vld [vmem:[#allocation10 + $0x3b0] sm:$0xff] }
 0x397   : > { %6591 = vmatpush1.bf16.msra.mxu1 %v6590_v16  ;;  %3822 = vmatprep.mubr.f32.mxu0 %v9442_v19  ;;  %v6530_v2 = vpack.c.bf16 %v3490_v9, %v3486_v32  ;;  %v3249_v40 = vld [vmem:[#allocation10 + $0x3d8] sm:$0xff]  ;;  %v6532_v36 = vpack.c.bf16 %v3499_v37, %v3495_v25  ;;  %v3494_v18 = vld [vmem:[#allocation10 + $0xb80] sm:$0xff]  ;;  %v6598_v29 = vpack.c.bf16 %v3244_v20, %v3240_v13  ;;  %v3503_v4 = vld [vmem:[#allocation10 + $0xbc8] sm:$0xff] }
 0x398   : > { %6593 = vmatprep.subr.bf16.mxu1 %v6592_v49  ;;  %v3253_v38 = vld [vmem:[#allocation10 + $0x3f8] sm:$0xff]  ;;  %v3498_v60 = vld [vmem:[#allocation10 + $0xba0] sm:$0xff]  ;;  %v3507_v44 = vld [vmem:[#allocation10 + $0xbe8] sm:$0xff] }
 0x399   : > { %6527 = vmatpush1.bf16.msra.mxu0 %v6526_v48  ;;  %v6600_v8 = vpack.c.bf16 %v3253_v38, %v3249_v40  ;;  %v3248_v61 = vld [vmem:[#allocation10 + $0x3d0] sm:$0xff]  ;;  %v6534_v22 = vpack.c.bf16 %v3498_v60, %v3494_v18  ;;  %v3257_v7 = vld [vmem:[#allocation10 + $0x418] sm:$0xff]  ;;  %v6536_v34 = vpack.c.bf16 %v3507_v44, %v3503_v4  ;;  %v3502_v23 = vld [vmem:[#allocation10 + $0xbc0] sm:$0xff] }
 0x39a   : > { %6529 = vmatprep.subr.bf16.mxu0 %v6528_v31  ;;  %v3252_v45 = vld [vmem:[#allocation10 + $0x3f0] sm:$0xff]  ;;  %v3261_v47 = vld [vmem:[#allocation10 + $0x438] sm:$0xff]  ;;  %v3506_v57 = vld [vmem:[#allocation10 + $0xbe0] sm:$0xff] }
 0x39b   : > { %6595 = vmatpush1.bf16.msra.mxu1 %v6594_v53  ;;  %v6602_v16 = vpack.c.bf16 %v3252_v45, %v3248_v61  ;;  %v2997_v12 = vld [vmem:[#allocation3] sm:$0xfc]  ;;  %v6604_v33 = vpack.c.bf16 %v3261_v47, %v3257_v7  ;;  %v3256_v51 = vld [vmem:[#allocation10 + $0x410] sm:$0xff]  ;;  %v3002_v3 = vld [vmem:[#allocation3 + $0x28] sm:$0xfc]  ;;  %v6538_v41 = vpack.c.bf16 %v3506_v57, %v3502_v23 }
 0x39c   : > { %6597 = vmatprep.subr.bf16.mxu1 %v6596_v26  ;;  %v3260_v49 = vld [vmem:[#allocation10 + $0x430] sm:$0xff]  ;;  %v3265_v48 = vld [vmem:[#allocation10 + $0x458] sm:$0xff]  ;;  %v2999_v59 = vld [vmem:[#allocation3 + $0x10] sm:$0x3]  ;;  %v3062_v32 = vrot.slane %v2997_v12, 2  ;;  %v3071_v25 = vrot.slane %v3002_v3, 2 }
 0x39d   : > { %6531 = vmatpush1.bf16.msra.mxu0 %v6530_v2  ;;  %v3004_v5 = vld [vmem:[#allocation3 + $0x38] sm:$0x3]  ;;  %v3269_v0 = vld [vmem:[#allocation10 + $0x478] sm:$0xff]  ;;  %v6606_v31 = vpack.c.bf16 %v3260_v49, %v3256_v51  ;;  %v3003_v53 = vld [vmem:[#allocation3 + $0x30] sm:$0x3]  ;;  %v3063_v40 = vrot.slane %v2999_v59, 2 }
 0x39e   : > { %6533 = vmatprep.subr.bf16.mxu0 %v6532_v36  ;;  %v3001_v9 = vld [vmem:[#allocation3 + $0x20] sm:$0xfc]  ;;  %v3072_v37 = vrot.slane %v3004_v5, 2  ;;  %v6608_v26 = vpack.c.bf16 %v3269_v0, %v3265_v48  ;;  %v3264_v13 = vld [vmem:[#allocation10 + $0x450] sm:$0xff]  ;;  %v3006_v38 = vld [vmem:[#allocation3 + $0x48] sm:$0xfc] }
 0x39f   : > { %6599 = vmatpush1.bf16.msra.mxu1 %v6598_v29  ;;  %v3268_v20 = vld [vmem:[#allocation10 + $0x470] sm:$0xff]  ;;  %v3273_v36 = vld [vmem:[#allocation10 + $0x498] sm:$0xff]  ;;  %v7351_v29 = vld [vmem:[#allocation3 + $0x28] sm:$0xff]  ;;  %v9446_v4 = vsel %vm3061_vm12, %v3062_v32, %v3063_v40  ;;  %v3069_v61 = vrot.slane %v3003_v53, 2  ;;  %v3077_v47 = vrot.slane %v3006_v38, 2 }
 0x3a0   : > { %6601 = vmatprep.subr.bf16.mxu1 %v6600_v8  ;;  %v3008_v2 = vld [vmem:[#allocation3 + $0x58] sm:$0x3]  ;;  %v3277_v18 = vld [vmem:[#allocation10 + $0x4b8] sm:$0xff]  ;;  %v6610_v44 = vpack.c.bf16 %v3268_v20, %v3264_v13  ;;  %v3068_v8 = vrot.slane %v3001_v9, 2  ;;  %v9450_v7 = vsel %vm3061_vm12, %v3071_v25, %v3072_v37  ;;  %v3011_v20 = vld [vmem:[#allocation3 + $0x70] sm:$0x3] }
 0x3a1   : > { %6535 = vmatpush1.bf16.msra.mxu0 %v6534_v22  ;;  %v7350_v60 = vld [vmem:[#allocation3] sm:$0xff]  ;;  %v3272_v45 = vld [vmem:[#allocation10 + $0x490] sm:$0xff]  ;;  %v3007_v22 = vld [vmem:[#allocation3 + $0x50] sm:$0x3]  ;;  %v6612_v23 = vpack.c.bf16 %v3277_v18, %v3273_v36 }
 0x3a2   : > { %6537 = vmatprep.subr.bf16.mxu0 %v6536_v34  ;;  %v3078_v34 = vrot.slane %v3008_v2, 2  ;;  %v3276_v57 = vld [vmem:[#allocation10 + $0x4b0] sm:$0xff]  ;;  %v3281_v12 = vld [vmem:[#allocation10 + $0x4d8] sm:$0xff]  ;;  %v9454_v5 = vsel %vm3061_vm12, %v3068_v8, %v3069_v61  ;;  %v3075_v59 = vrot.slane %v3007_v22, 2  ;;  %v3014_v2 = vld [vmem:[#allocation3 + $0x88] sm:$0xfc] }
 0x3a3   : > { %6603 = vmatpush1.bf16.msra.mxu1 %v6602_v16  ;;  %v3005_v16 = vld [vmem:[#allocation3 + $0x40] sm:$0xfc]  ;;  %v3012_v51 = vld [vmem:[#allocation3 + $0x78] sm:$0x3]  ;;  %v6614_v48 = vpack.c.bf16 %v3276_v57, %v3272_v45  ;;  %v7355_v18 = vld [vmem:[#allocation3 + $0x68] sm:$0xff]  ;;  %v3081_v8 = vrot.slane %v3011_v20, 2 }
 0x3a4   : > { %6605 = vmatprep.subr.bf16.mxu1 %v6604_v33  ;;  %v3010_v33 = vld [vmem:[#allocation3 + $0x68] sm:$0xfc]  ;;  %v3285_v49 = vld [vmem:[#allocation10 + $0x4f8] sm:$0xff]  ;;  %v3074_v0 = vrot.slane %v3005_v16, 2  ;;  %v3284_v32 = vld [vmem:[#allocation10 + $0x4f0] sm:$0xff]  ;;  %v9458_v53 = vsel %vm3061_vm12, %v3077_v47, %v3078_v34  ;;  %v3084_v37 = vrot.slane %v3012_v51, 2 }
 0x3a5   : > { %6539 = vmatpush1.bf16.msra.mxu0 %v6538_v41  ;;  %v7352_v3 = vld [vmem:[#allocation3 + $0x20] sm:$0xff]  ;;  %v7353_v41 = vld [vmem:[#allocation3 + $0x48] sm:$0xff]  ;;  %v3083_v25 = vrot.slane %v3010_v33, 2  ;;  %v3016_v40 = vld [vmem:[#allocation3 + $0x98] sm:$0x3]  ;;  %v3089_v34 = vrot.slane %v3014_v2, 2 }
 0x3a6   : > { %3936 = vmatmul.mubr.f32.vlgmr.msra.gmra.mrb[48].mxu1 %v7350_v60  ;;  %v3289_v9 = vld [vmem:[#allocation10 + $0x518] sm:$0xff]  ;;  %v9462_v60 = vsel %vm3061_vm12, %v3074_v0, %v3075_v59  ;;  %v3288_v61 = vld [vmem:[#allocation10 + $0x510] sm:$0xff]  ;;  %v3018_v33 = vld [vmem:[#allocation3 + $0xa8] sm:$0xfc] }
 0x3a7   : > { %3941 = vmatprep.mubr.f32.mxu1 %v7351_v29  ;;  %6607 = vmatpush1.bf16.msra.mxu1 %v6606_v31  ;;  %v3280_v31 = vld [vmem:[#allocation10 + $0x4d0] sm:$0xff]  ;;  %v3009_v13 = vld [vmem:[#allocation3 + $0x60] sm:$0xfc]  ;;  %v9466_v47 = vsel %vm3061_vm12, %v3083_v25, %v3084_v37 }
 0x3a8   : > { %3823 = vmatmul.mubr.f32.vlgmr.msra.gmra.mrb[32].mxu0 %v9446_v4  ;;  %6609 = vmatprep.subr.bf16.mxu1 %v6608_v26  ;;  %v6616_v26 = vpack.c.bf16 %v3285_v49, %v3281_v12  ;;  %v3293_v38 = vld [vmem:[#allocation10 + $0x538] sm:$0xff]  ;;  %v6618_v29 = vpack.c.bf16 %v3284_v32, %v3280_v31  ;;  %v3292_v45 = vld [vmem:[#allocation10 + $0x530] sm:$0xff]  ;;  %v3015_v12 = vld [vmem:[#allocation3 + $0x90] sm:$0x3] }
 0x3a9   : > { %3828 = vmatprep.mubr.f32.mxu0 %v9450_v7  ;;  %v7354_v36 = vld [vmem:[#allocation3 + $0x40] sm:$0xff]  ;;  %v6620_v57 = vpack.c.bf16 %v3293_v38, %v3289_v9  ;;  %v3020_v51 = vld [vmem:[#allocation3 + $0xb8] sm:$0x3]  ;;  %v6622_v0 = vpack.c.bf16 %v3292_v45, %v3288_v61  ;;  %v3087_v31 = vrot.slane %v3015_v12, 2  ;;  %v3022_v38 = vld [vmem:[#allocation3 + $0xc8] sm:$0xfc] }
 0x3aa   : > { %3942 = vmatmul.mubr.f32.gmra.mrb[50].mxu1 %v7352_v3  ;;  %v3297_v22 = vld [vmem:[#allocation10 + $0x558] sm:$0xff]  ;;  %v3296_v32 = vld [vmem:[#allocation10 + $0x550] sm:$0xff] }
 0x3ab   : > { %3947 = vmatprep.mubr.f32.mxu1 %v7353_v41  ;;  %6611 = vmatpush1.bf16.msra.mxu1 %v6610_v44  ;;  %v3080_v44 = vrot.slane %v3009_v13, 2  ;;  %v3013_v16 = vld [vmem:[#allocation3 + $0x80] sm:$0xfc]  ;;  %v7357_v41 = vld [vmem:[#allocation3 + $0x88] sm:$0xff]  ;;  %v3300_v9 = vld [vmem:[#allocation10 + $0x570] sm:$0xff]  ;;  %v3096_v13 = vrot.slane %v3020_v51, 2 }
 0x3ac   : > { %3829 = vmatmul.mubr.f32.gmra.mrb[34].mxu0 %v9454_v5  ;;  %6613 = vmatprep.subr.bf16.mxu1 %v6612_v23  ;;  %v3090_v23 = vrot.slane %v3016_v40, 2  ;;  %v3301_v49 = vld [vmem:[#allocation10 + $0x578] sm:$0xff]  ;;  %v3086_v59 = vrot.slane %v3013_v16, 2  ;;  %v3019_v40 = vld [vmem:[#allocation3 + $0xb0] sm:$0x3]  ;;  %v3101_v16 = vrot.slane %v3022_v38, 2 }
 0x3ad   : > { %3834 = vmatprep.mubr.f32.mxu0 %v9458_v53  ;;  %v7356_v3 = vld [vmem:[#allocation3 + $0x60] sm:$0xff]  ;;  %v6624_v20 = vpack.c.bf16 %v3301_v49, %v3297_v22  ;;  %v3093_v45 = vrot.slane %v3019_v40, 2  ;;  %v3308_v22 = vld [vmem:[#allocation10 + $0x5b0] sm:$0xff]  ;;  %v3023_v51 = vld [vmem:[#allocation3 + $0xd0] sm:$0x3] }
 0x3ae   : > { %3948 = vmatmul.mubr.f32.gmra.mrb[52].mxu1 %v7354_v36  ;;  %v3305_v25 = vld [vmem:[#allocation10 + $0x598] sm:$0xff]  ;;  %v9474_v37 = vsel %vm3061_vm12, %v3089_v34, %v3090_v23  ;;  %v3024_v36 = vld [vmem:[#allocation3 + $0xd8] sm:$0x3]  ;;  %v3026_v49 = vld [vmem:[#allocation3 + $0xe8] sm:$0xfc] }
 0x3af   : > { %3953 = vmatprep.mubr.f32.mxu1 %v7355_v18  ;;  %6615 = vmatpush1.bf16.msra.mxu1 %v6614_v48  ;;  %v9470_v48 = vsel %vm3061_vm12, %v3080_v44, %v3081_v8  ;;  %v3017_v2 = vld [vmem:[#allocation3 + $0xa0] sm:$0xfc]  ;;  %v9479_v44 = vsel %vm3061_vm12, %v3086_v59, %v3087_v31  ;;  %v6626_v8 = vpack.c.bf16 %v3300_v9, %v3296_v32  ;;  %v3304_v34 = vld [vmem:[#allocation10 + $0x590] sm:$0xff]  ;;  %v3102_v12 = vrot.slane %v3024_v36, 2 }
 0x3b0   : > { %3835 = vmatmul.mubr.f32.gmra.mrb[36].mxu0 %v9462_v60  ;;  %6617 = vmatprep.subr.bf16.mxu1 %v6616_v26  ;;  %v3095_v26 = vrot.slane %v3018_v33, 2  ;;  %v3309_v18 = vld [vmem:[#allocation10 + $0x5b8] sm:$0xff]  ;;  %v3092_v61 = vrot.slane %v3017_v2, 2  ;;  %v6630_v59 = vpack.c.bf16 %v3308_v22, %v3304_v34  ;;  %v3099_v32 = vrot.slane %v3023_v51, 2  ;;  %v3312_v9 = vld [vmem:[#allocation10 + $0x5d0] sm:$0xff] }
 0x3b1   : > { %3840 = vmatprep.mubr.f32.mxu0 %v9466_v47  ;;  %v3313_v23 = vld [vmem:[#allocation10 + $0x5d8] sm:$0xff]  ;;  %v6628_v33 = vpack.c.bf16 %v3309_v18, %v3305_v25  ;;  %v3316_v25 = vld [vmem:[#allocation10 + $0x5f0] sm:$0xff] }
 0x3b2   : > { %3954 = vmatmul.mubr.f32.gmra.mrb[54].mxu1 %v7356_v3  ;;  %v3028_v3 = vld [vmem:[#allocation3 + $0xf8] sm:$0x3]  ;;  %v3025_v2 = vld [vmem:[#allocation3 + $0xe0] sm:$0xfc]  ;;  %v6634_v18 = vpack.c.bf16 %v3316_v25, %v3312_v9 }
 0x3b3   : > { %3959 = vmatprep.mubr.f32.mxu1 %v7357_v41  ;;  %6619 = vmatpush1.bf16.msra.mxu1 %v6618_v29  ;;  %v7358_v29 = vld [vmem:[#allocation3 + $0x80] sm:$0xff]  ;;  %v3320_v34 = vld [vmem:[#allocation10 + $0x610] sm:$0xff] }
 0x3b4   : > { %3841 = vmatmul.mubr.f32.gmra.mrb[38].mxu0 %v9470_v48  ;;  %6621 = vmatprep.subr.bf16.mxu1 %v6620_v57  ;;  %v9483_v57 = vsel %vm3061_vm12, %v3095_v26, %v3096_v13  ;;  %v3317_v41 = vld [vmem:[#allocation10 + $0x5f8] sm:$0xff]  ;;  %v9493_v26 = vsel %vm3061_vm12, %v3101_v16, %v3102_v12  ;;  %v3107_v13 = vrot.slane %v3026_v49, 2  ;;  %v3324_v22 = vld [vmem:[#allocation10 + $0x630] sm:$0xff] }
 0x3b5   : > { %3846 = vmatprep.mubr.f32.mxu0 %v9474_v37  ;;  %v3321_v40 = vld [vmem:[#allocation10 + $0x618] sm:$0xff]  ;;  %v6638_v16 = vpack.c.bf16 %v3324_v22, %v3320_v34  ;;  %v3344_v25 = vld [vmem:[#allocation10 + $0x6d0] sm:$0xff] }
 0x3b6   : > { %3960 = vmatmul.mubr.f32.gmra.mrb[56].mxu1 %v7358_v29  ;;  %v3325_v38 = vld [vmem:[#allocation10 + $0x638] sm:$0xff]  ;;  %v3104_v29 = vrot.slane %v3025_v2, 2  ;;  %v3360_v34 = vld [vmem:[#allocation10 + $0x750] sm:$0xff] }
 0x3b7   : > { %3965 = vmatprep.mubr.f32.mxu1 %v9277_v10  ;;  %6623 = vmatpush1.bf16.msra.mxu1 %v6622_v0  ;;  %v3021_v10 = vld [vmem:[#allocation3 + $0xc0] sm:$0xfc]  ;;  %v9489_v0 = vsel %vm3061_vm12, %v3092_v61, %v3093_v45  ;;  %v6636_v45 = vpack.c.bf16 %v3325_v38, %v3321_v40  ;;  %v3352_v40 = vld [vmem:[#allocation10 + $0x710] sm:$0xff] }
 0x3b8   : > { %3847 = vmatmul.mubr.f32.gmra.mrb[40].mxu0 %v9479_v44  ;;  %6625 = vmatprep.subr.bf16.mxu1 %v6624_v20  ;;  %v3098_v31 = vrot.slane %v3021_v10, 2  ;;  %v3108_v20 = vrot.slane %v3028_v3, 2  ;;  %v3332_v10 = vld [vmem:[#allocation10 + $0x670] sm:$0xff]  ;;  %v3337_v51 = vld [vmem:[#allocation10 + $0x698] sm:$0xff] }
 0x3b9   : > { %3852 = vmatprep.mubr.f32.mxu0 %v9483_v57  ;;  %v3341_v49 = vld [vmem:[#allocation10 + $0x6b8] sm:$0xff]  ;;  %v3356_v38 = vld [vmem:[#allocation10 + $0x730] sm:$0xff] }
 0x3ba   : > { %3966 = vmatmul.mubr.f32.gmra.mrb[58].mxu1 %v9279_v11  ;;  %v6632_v11 = vpack.c.bf16 %v3317_v41, %v3313_v23  ;;  %v9499_v36 = vsel %vm3061_vm12, %v3098_v31, %v3099_v32  ;;  %v9503_v61 = vsel %vm3061_vm12, %v3107_v13, %v3108_v20  ;;  %v6644_v41 = vpack.c.bf16 %v3341_v49, %v3337_v51  ;;  %v3345_v31 = vld [vmem:[#allocation10 + $0x6d8] sm:$0xff]  ;;  %v3348_v13 = vld [vmem:[#allocation10 + $0x6f0] sm:$0xff] }
 0x3bb   : > { %3971 = vmatprep.mubr.f32.mxu1 %v9339_v30  ;;  %6627 = vmatpush1.bf16.msra.mxu1 %v6626_v8  ;;  %v3027_v30 = vld [vmem:[#allocation3 + $0xf0] sm:$0x3]  ;;  %v3353_v20 = vld [vmem:[#allocation10 + $0x718] sm:$0xff]  ;;  %v6650_v2 = vpack.c.bf16 %v3348_v13, %v3344_v25  ;;  %v3364_v22 = vld [vmem:[#allocation10 + $0x770] sm:$0xff] }
 0x3bc   : > { %3853 = vmatmul.mubr.f32.gmra.mrb[42].mxu0 %v9489_v0  ;;  %6629 = vmatprep.subr.bf16.mxu1 %v6628_v33  ;;  %v3105_v8 = vrot.slane %v3027_v30, 2  ;;  %v3328_v33 = vld [vmem:[#allocation10 + $0x650] sm:$0xff]  ;;  %v3377_v51 = vld [vmem:[#allocation10 + $0x7d8] sm:$0xff] }
 0x3bd   : > { %3858 = vmatprep.mubr.f32.mxu0 %v9493_v26  ;;  %v6642_v3 = vpack.c.bf16 %v3332_v10, %v3328_v33  ;;  %v3368_v33 = vld [vmem:[#allocation10 + $0x790] sm:$0xff]  ;;  %v3381_v49 = vld [vmem:[#allocation10 + $0x7f8] sm:$0xff] }
 0x3be   : > { %3972 = vmatmul.mubr.f32.gmra.mrb[60].mxu1 %v9341_v35  ;;  %v3329_v35 = vld [vmem:[#allocation10 + $0x658] sm:$0xff]  ;;  %v9509_v23 = vsel %vm3061_vm12, %v3104_v29, %v3105_v8  ;;  %v6654_v8 = vpack.c.bf16 %v3356_v38, %v3352_v40  ;;  %v3372_v10 = vld [vmem:[#allocation10 + $0x7b0] sm:$0xff] }
 0x3bf   : > { %3977 = vmatprep.mubr.f32.mxu1 %v9416_v39  ;;  %6631 = vmatpush1.bf16.msra.mxu1 %v6630_v59  ;;  %v3333_v39 = vld [vmem:[#allocation10 + $0x678] sm:$0xff]  ;;  %v3340_v59 = vld [vmem:[#allocation10 + $0x6b0] sm:$0xff] }
 0x3c0   : > { %3859 = vmatmul.mubr.f32.gmra.mrb[44].mxu0 %v9499_v36  ;;  %6633 = vmatprep.subr.bf16.mxu1 %v6632_v11  ;;  %v6640_v12 = vpack.c.bf16 %v3333_v39, %v3329_v35  ;;  %v3357_v11 = vld [vmem:[#allocation10 + $0x738] sm:$0xff] }
 0x3c1   : > { %3864 = vmatprep.mubr.f32.mxu0 %v9503_v61  ;;  %v6652_v30 = vpack.c.bf16 %v3357_v11, %v3353_v20  ;;  %v3365_v29 = vld [vmem:[#allocation10 + $0x778] sm:$0xff]  ;;  %v3384_v20 = vld [vmem:[#allocation10 + $0x810] sm:$0xff] }
 0x3c2   : > { %3978 = vmatmul.mubr.f32.gmra.mrb[62].mxu1 %v9418_v6  ;;  %v3336_v6 = vld [vmem:[#allocation10 + $0x690] sm:$0xff]  ;;  %v3369_v35 = vld [vmem:[#allocation10 + $0x798] sm:$0xff] }
 0x3c3   : > { %6635 = vmatpush1.bf16.msra.mxu1 %v6634_v18  ;;  %4048 = vmatprep.mubr.f32.mxu1 %v9116_v15  ;;  %v3349_v15 = vld [vmem:[#allocation10 + $0x6f8] sm:$0xff]  ;;  %v6646_v32 = vpack.c.bf16 %v3340_v59, %v3336_v6  ;;  %v6662_v6 = vpack.c.bf16 %v3372_v10, %v3368_v33  ;;  %v6664_v59 = vpack.c.bf16 %v3381_v49, %v3377_v51  ;;  %v3388_v11 = vld [vmem:[#allocation10 + $0x830] sm:$0xff] }
 0x3c4   : > { %3865 = vmatmul.mubr.f32.gmra.mrb[46].mxu0 %v9509_v23  ;;  %6637 = vmatprep.subr.bf16.mxu1 %v6636_v45  ;;  %v6648_v9 = vpack.c.bf16 %v3349_v15, %v3345_v31  ;;  %v3361_v18 = vld [vmem:[#allocation10 + $0x758] sm:$0xff]  ;;  %v3376_v31 = vld [vmem:[#allocation10 + $0x7d0] sm:$0xff]  ;;  %v6670_v40 = vpack.c.bf16 %v3388_v11, %v3384_v20 }
 0x3c5   : > { %v6656_v45 = vpack.c.bf16 %v3365_v29, %v3361_v18  ;;  %v3373_v39 = vld [vmem:[#allocation10 + $0x7b8] sm:$0xff]  ;;  %v3380_v15 = vld [vmem:[#allocation10 + $0x7f0] sm:$0xff] }
 0x3c6   : > { %v6666_v25 = vpack.c.bf16 %v3380_v15, %v3376_v31  ;;  %v3392_v18 = vld [vmem:[#allocation10 + $0x850] sm:$0xff]  ;;  %v3417_v49 = vld [vmem:[#allocation10 + $0x918] sm:$0xff] }
 0x3c7   : > { %6639 = vmatpush1.bf16.msra.mxu1 %v6638_v16  ;;  %v6658_v16 = vpack.c.bf16 %v3364_v22, %v3360_v34  ;;  %v3396_v29 = vld [vmem:[#allocation10 + $0x870] sm:$0xff]  ;;  %v3433_v11 = vld [vmem:[#allocation10 + $0x998] sm:$0xff] }
 0x3c8   : > { %6641 = vmatprep.subr.bf16.mxu1 %v6640_v12  ;;  %v6660_v12 = vpack.c.bf16 %v3373_v39, %v3369_v35  ;;  %v6674_v34 = vpack.c.bf16 %v3396_v29, %v3392_v18  ;;  %v3400_v35 = vld [vmem:[#allocation10 + $0x890] sm:$0xff] }
 0x3c9   : > { %v3404_v39 = vld [vmem:[#allocation10 + $0x8b0] sm:$0xff] }
 0x3ca   : > { %v6678_v33 = vpack.c.bf16 %v3404_v39, %v3400_v35  ;;  %v3408_v51 = vld [vmem:[#allocation10 + $0x8d0] sm:$0xff]  ;;  %v3457_v39 = vld [vmem:[#allocation10 + $0xa58] sm:$0xff] }
 0x3cb   : > { %6643 = vmatpush1.bf16.msra.mxu1 %v6642_v3  ;;  %v3416_v31 = vld [vmem:[#allocation10 + $0x910] sm:$0xff] }
 0x3cc   : > { %6645 = vmatprep.subr.bf16.mxu1 %v6644_v41  ;;  %v3420_v15 = vld [vmem:[#allocation10 + $0x930] sm:$0xff] }
 0x3cd   : > { %v3428_v20 = vld [vmem:[#allocation10 + $0x970] sm:$0xff] }
 0x3ce   : > { %v3448_v35 = vld [vmem:[#allocation10 + $0xa10] sm:$0xff] }
 0x3cf   : > { %6647 = vmatpush1.bf16.msra.mxu1 %v6646_v32  ;;  %v3385_v32 = vld [vmem:[#allocation10 + $0x818] sm:$0xff] }
 0x3d0   : > { %6649 = vmatprep.subr.bf16.mxu1 %v6648_v9  ;;  %v3389_v9 = vld [vmem:[#allocation10 + $0x838] sm:$0xff] }
 0x3d1   : > { %v6668_v13 = vpack.c.bf16 %v3389_v9, %v3385_v32  ;;  %v3425_v32 = vld [vmem:[#allocation10 + $0x958] sm:$0xff] }
 0x3d2   : > { %v3429_v9 = vld [vmem:[#allocation10 + $0x978] sm:$0xff] }
 0x3d3   : > { %6651 = vmatpush1.bf16.msra.mxu1 %v6650_v2  ;;  %v9512_v3 = vpop.f32.mrb[32].mxu1  ;;  %v3393_v2 = vld [vmem:[#allocation10 + $0x858] sm:$0xff] }
 0x3d4   : > { %6653 = vmatprep.subr.bf16.mxu1 %v6652_v30  ;;  %v9514_v41 = vpop.f32.mrb[33].mxu1  ;;  %v3397_v30 = vld [vmem:[#allocation10 + $0x878] sm:$0xff] }
 0x3d5   : > { %v6672_v38 = vpack.c.bf16 %v3397_v30, %v3393_v2 }
 0x3d7   : > { %6655 = vmatpush1.bf16.msra.mxu1 %v6654_v8  ;;  %v3401_v8 = vld [vmem:[#allocation10 + $0x898] sm:$0xff] }
 0x3d8   : > { %6657 = vmatprep.subr.bf16.mxu1 %v6656_v45  ;;  %v3405_v45 = vld [vmem:[#allocation10 + $0x8b8] sm:$0xff] }
 0x3d9   : > { %v6676_v22 = vpack.c.bf16 %v3405_v45, %v3401_v8  ;;  %v3440_v8 = vld [vmem:[#allocation10 + $0x9d0] sm:$0xff]  ;;  %v3449_v45 = vld [vmem:[#allocation10 + $0xa18] sm:$0xff] }
 0x3db   : > { %6659 = vmatpush1.bf16.msra.mxu1 %v6658_v16  ;;  %v3409_v16 = vld [vmem:[#allocation10 + $0x8d8] sm:$0xff] }
 0x3dc   : > { %6661 = vmatprep.subr.bf16.mxu1 %v6660_v12  ;;  %v3413_v12 = vld [vmem:[#allocation10 + $0x8f8] sm:$0xff] }
 0x3dd   : > { %v6680_v10 = vpack.c.bf16 %v3413_v12, %v3409_v16 }
 0x3df   : > { %6663 = vmatpush1.bf16.msra.mxu1 %v6662_v6 }
 0x3e0   : > { %6665 = vmatprep.subr.bf16.mxu1 %v6664_v59 }
 0x3e3   : > { %6667 = vmatpush1.bf16.msra.mxu1 %v6666_v25  ;;  %v6686_v25 = vpack.c.bf16 %v3420_v15, %v3416_v31  ;;  %v3477_v31 = vld [vmem:[#allocation10 + $0xaf8] sm:$0xff] }
 0x3e4   : > { %6669 = vmatprep.subr.bf16.mxu1 %v6668_v13  ;;  %v3424_v13 = vld [vmem:[#allocation10 + $0x950] sm:$0xff] }
 0x3e5   : > { %v6690_v2 = vpack.c.bf16 %v3428_v20, %v3424_v13 }
 0x3e6   : > { %4049 = vmatmul.mubr.f32.vlgmr.msra.gmra.mrb[48].mxu1 %v9119_v1  ;;  %v3412_v1 = vld [vmem:[#allocation10 + $0x8f0] sm:$0xff] }
 0x3e7   : > { %4054 = vmatprep.mubr.f32.mxu1 %v9198_v43  ;;  %6671 = vmatpush1.bf16.msra.mxu1 %v6670_v40  ;;  %v3421_v43 = vld [vmem:[#allocation10 + $0x938] sm:$0xff]  ;;  %v3432_v40 = vld [vmem:[#allocation10 + $0x990] sm:$0xff] }
 0x3e8   : > { %6673 = vmatprep.subr.bf16.mxu1 %v6672_v38  ;;  %v9520_v6 = vpop.f32.mrb[34].mxu1  ;;  %v3441_v38 = vld [vmem:[#allocation10 + $0x9d8] sm:$0xff] }
 0x3e9   : > { %v9523_v59 = vpop.f32.mrb[35].mxu1 }
 0x3ea   : > { %4055 = vmatmul.mubr.f32.gmra.mrb[50].mxu1 %v9201_v21  ;;  %v6682_v21 = vpack.c.bf16 %v3412_v1, %v3408_v51  ;;  %v3465_v51 = vld [vmem:[#allocation10 + $0xa98] sm:$0xff] }
 0x3eb   : > { %4060 = vmatprep.mubr.f32.mxu1 %v9263_v14  ;;  %6675 = vmatpush1.bf16.msra.mxu1 %v6674_v34  ;;  %v6684_v14 = vpack.c.bf16 %v3421_v43, %v3417_v49  ;;  %v3469_v1 = vld [vmem:[#allocation10 + $0xab8] sm:$0xff] }
 0x3ec   : > { %6677 = vmatprep.subr.bf16.mxu1 %v6676_v22  ;;  %v6708_v43 = vpack.c.bf16 %v3469_v1, %v3465_v51 }
 0x3ee   : > { %4061 = vmatmul.mubr.f32.gmra.mrb[52].mxu1 %v9269_v46  ;;  %v6688_v46 = vpack.c.bf16 %v3429_v9, %v3425_v32  ;;  %v3472_v32 = vld [vmem:[#allocation10 + $0xad0] sm:$0xff] }
 0x3ef   : > { %4066 = vmatprep.mubr.f32.mxu1 %v9330_v55  ;;  %6679 = vmatpush1.bf16.msra.mxu1 %v6678_v33  ;;  %v3437_v55 = vld [vmem:[#allocation10 + $0x9b8] sm:$0xff]  ;;  %v3456_v33 = vld [vmem:[#allocation10 + $0xa50] sm:$0xff] }
 0x3f0   : > { %6681 = vmatprep.subr.bf16.mxu1 %v6680_v10  ;;  %v6692_v30 = vpack.c.bf16 %v3437_v55, %v3433_v11  ;;  %v3476_v9 = vld [vmem:[#allocation10 + $0xaf0] sm:$0xff] }
 0x3f1   : > { %v6714_v13 = vpack.c.bf16 %v3476_v9, %v3472_v32  ;;  %v3480_v11 = vld [vmem:[#allocation10 + $0xb10] sm:$0xff]  ;;  %v4654_v32 = vld [vmem:[#allocation13 + $0x258] sm:$0xff] }
 0x3f2   : > { %4067 = vmatmul.mubr.f32.gmra.mrb[54].mxu1 %v9334_v62  ;;  %v3436_v62 = vld [vmem:[#allocation10 + $0x9b0] sm:$0xff] }
 0x3f3   : > { %4072 = vmatprep.mubr.f32.mxu1 %v9384_v54  ;;  %6683 = vmatpush1.bf16.msra.mxu1 %v6682_v21  ;;  %v3445_v54 = vld [vmem:[#allocation10 + $0x9f8] sm:$0xff]  ;;  %v6694_v18 = vpack.c.bf16 %v3436_v62, %v3432_v40  ;;  %v3464_v21 = vld [vmem:[#allocation10 + $0xa90] sm:$0xff] }
 0x3f4   : > { %6685 = vmatprep.subr.bf16.mxu1 %v6684_v14  ;;  %v6696_v29 = vpack.c.bf16 %v3445_v54, %v3441_v38  ;;  %v3473_v14 = vld [vmem:[#allocation10 + $0xad8] sm:$0xff]  ;;  %v3484_v55 = vld [vmem:[#allocation10 + $0xb30] sm:$0xff] }
 0x3f5   : > { %v6712_v15 = vpack.c.bf16 %v3477_v31, %v3473_v14  ;;  %v6718_v40 = vpack.c.bf16 %v3484_v55, %v3480_v11  ;;  %v3488_v38 = vld [vmem:[#allocation10 + $0xb50] sm:$0xff]  ;;  %v4647_v31 = vld [vmem:[#allocation13 + $0x220] sm:$0xff]  ;;  %v4658_v55 = vld [vmem:[#allocation13 + $0x278] sm:$0xff] }
 0x3f6   : > { %4073 = vmatmul.mubr.f32.gmra.mrb[56].mxu1 %v9394_v63  ;;  %v3444_v63 = vld [vmem:[#allocation10 + $0x9f0] sm:$0xff] }
 0x3f7   : > { %4078 = vmatprep.mubr.f32.mxu1 %v9403_v17  ;;  %6687 = vmatpush1.bf16.msra.mxu1 %v6686_v25  ;;  %v3453_v17 = vld [vmem:[#allocation10 + $0xa38] sm:$0xff]  ;;  %v6698_v34 = vpack.c.bf16 %v3444_v63, %v3440_v8  ;;  %v3492_v54 = vld [vmem:[#allocation10 + $0xb70] sm:$0xff] }
 0x3f8   : > { %6689 = vmatprep.subr.bf16.mxu1 %v6688_v46  ;;  %v6700_v22 = vpack.c.bf16 %v3453_v17, %v3449_v45  ;;  %v3481_v25 = vld [vmem:[#allocation10 + $0xb18] sm:$0xff]  ;;  %v6722_v45 = vpack.c.bf16 %v3492_v54, %v3488_v38  ;;  %v4656_v11 = vld [vmem:[#allocation13 + $0x268] sm:$0xff] }
 0x3f9   : > { %v3485_v46 = vld [vmem:[#allocation10 + $0xb38] sm:$0xff] }
 0x3fa   : > { %4079 = vmatmul.mubr.f32.gmra.mrb[58].mxu1 %v9407_v50  ;;  %v3452_v50 = vld [vmem:[#allocation10 + $0xa30] sm:$0xff]  ;;  %v6716_v20 = vpack.c.bf16 %v3485_v46, %v3481_v25  ;;  %v3501_v8 = vld [vmem:[#allocation10 + $0xbb8] sm:$0xff] }
 0x3fb   : > { %4084 = vmatprep.mubr.f32.mxu1 %v9422_v24  ;;  %6691 = vmatpush1.bf16.msra.mxu1 %v6690_v2  ;;  %v3461_v24 = vld [vmem:[#allocation10 + $0xa78] sm:$0xff]  ;;  %v6702_v16 = vpack.c.bf16 %v3452_v50, %v3448_v35 }
 0x3fc   : > { %6693 = vmatprep.subr.bf16.mxu1 %v6692_v30  ;;  %v3489_v2 = vld [vmem:[#allocation10 + $0xb58] sm:$0xff] }
 0x3fd   : > { %v3493_v30 = vld [vmem:[#allocation10 + $0xb78] sm:$0xff] }
 0x3fe   : > { %4085 = vmatmul.mubr.f32.gmra.mrb[60].mxu1 %v9427_v52  ;;  %v6704_v52 = vpack.c.bf16 %v3461_v24, %v3457_v39  ;;  %v6720_v62 = vpack.c.bf16 %v3493_v30, %v3489_v2  ;;  %v3505_v35 = vld [vmem:[#allocation10 + $0xbd8] sm:$0xff]  ;;  %v3504_v39 = vld [vmem:[#allocation10 + $0xbd0] sm:$0xff]  ;;  %v6744_v30 = vpack.c.bf16 %v4658_v55, %v4656_v11 }
 0x3ff   : > { %4090 = vmatprep.mubr.f32.mxu1 %v9433_v58  ;;  %6695 = vmatpush1.bf16.msra.mxu1 %v6694_v18  ;;  %v3460_v58 = vld [vmem:[#allocation10 + $0xa70] sm:$0xff]  ;;  %v3509_v50 = vld [vmem:[#allocation10 + $0xbf8] sm:$0xff] }
 0x400   : > { %6697 = vmatprep.subr.bf16.mxu1 %v6696_v29  ;;  %v9536_v12 = vpop.f32.mrb[36].mxu1  ;;  %v6706_v49 = vpack.c.bf16 %v3460_v58, %v3456_v33  ;;  %v3497_v29 = vld [vmem:[#allocation10 + $0xb98] sm:$0xff]  ;;  %v3508_v24 = vld [vmem:[#allocation10 + $0xbf0] sm:$0xff]  ;;  %v4643_v58 = vld [vmem:[#allocation13 + $0x200] sm:$0xff]  ;;  %v6728_v51 = vpack.c.bf16 %v3509_v50, %v3505_v35 }
 0x401   : > { %v9538_v10 = vpop.f32.mrb[37].mxu1  ;;  %v6724_v17 = vpack.c.bf16 %v3501_v8, %v3497_v29  ;;  %v4646_v33 = vld [vmem:[#allocation13 + $0x218] sm:$0xff]  ;;  %v6730_v9 = vpack.c.bf16 %v3508_v24, %v3504_v39  ;;  %v4664_v11 = vld [vmem:[#allocation13 + $0x2a8] sm:$0xff] }
 0x402   : > { %4091 = vmatmul.mubr.f32.gmra.mrb[62].mxu1 %v9437_v42  ;;  %v3468_v42 = vld [vmem:[#allocation10 + $0xab0] sm:$0xff]  ;;  %v4666_v55 = vld [vmem:[#allocation13 + $0x2b8] sm:$0xff] }
 0x403   : > { %6699 = vmatpush1.bf16.msra.mxu1 %v6698_v34  ;;  %4161 = vmatprep.mubr.f32.mxu1 %v9442_v19  ;;  %v6710_v19 = vpack.c.bf16 %v3468_v42, %v3464_v21  ;;  %v3496_v34 = vld [vmem:[#allocation10 + $0xb90] sm:$0xff]  ;;  %v4650_v21 = vld [vmem:[#allocation13 + $0x238] sm:$0xff] }
 0x404   : > { %6701 = vmatprep.subr.bf16.mxu1 %v6700_v22  ;;  %v3500_v22 = vld [vmem:[#allocation10 + $0xbb0] sm:$0xff] }
 0x407   : > { %6703 = vmatpush1.bf16.msra.mxu1 %v6702_v16  ;;  %v6726_v16 = vpack.c.bf16 %v3500_v22, %v3496_v34 }
 0x408   : > { %6705 = vmatprep.subr.bf16.mxu1 %v6704_v52  ;;  %v4644_v52 = vld [vmem:[#allocation13 + $0x208] sm:$0xff] }
 0x409   : > { %v6732_v1 = vpack.c.bf16 %v4646_v33, %v4644_v52 }
 0x40b   : > { %6707 = vmatpush1.bf16.msra.mxu1 %v6706_v49  ;;  %v4645_v49 = vld [vmem:[#allocation13 + $0x210] sm:$0xff]  ;;  %6733 = vmatprep.subr.bf16.mxu0 %v6732_v1 }
 0x40c   : > { %6709 = vmatprep.subr.bf16.mxu1 %v6708_v43  ;;  %v4648_v43 = vld [vmem:[#allocation13 + $0x228] sm:$0xff]  ;;  %v6734_v42 = vpack.c.bf16 %v4645_v49, %v4643_v58 }
 0x40d   : > { %v6736_v14 = vpack.c.bf16 %v4650_v21, %v4648_v43  ;;  %v4662_v21 = vld [vmem:[#allocation13 + $0x298] sm:$0xff] }
 0x40e   : > { %6735 = vmatpush1.bf16.msra.mxu0 %v6734_v42  ;;  %v4659_v42 = vld [vmem:[#allocation13 + $0x280] sm:$0xff] }
 0x40f   : > { %6711 = vmatpush1.bf16.msra.mxu1 %v6710_v19  ;;  %v4649_v19 = vld [vmem:[#allocation13 + $0x230] sm:$0xff]  ;;  %6737 = vmatprep.subr.bf16.mxu0 %v6736_v14 }
 0x410   : > { %6713 = vmatprep.subr.bf16.mxu1 %v6712_v15  ;;  %v4652_v15 = vld [vmem:[#allocation13 + $0x248] sm:$0xff]  ;;  %v6738_v25 = vpack.c.bf16 %v4649_v19, %v4647_v31 }
 0x411   : > { %v6740_v46 = vpack.c.bf16 %v4654_v32, %v4652_v15  ;;  %v4661_v15 = vld [vmem:[#allocation13 + $0x290] sm:$0xff] }
 0x412   : > { %v9540_v18 = vpop.f32.mrb[38].mxu1  ;;  %6739 = vmatpush1.bf16.msra.mxu0 %v6738_v25 }
 0x413   : > { %6715 = vmatpush1.bf16.msra.mxu1 %v6714_v13  ;;  %v9542_v63 = vpop.f32.mrb[39].mxu1  ;;  %v4651_v13 = vld [vmem:[#allocation13 + $0x240] sm:$0xff]  ;;  %6741 = vmatprep.subr.bf16.mxu0 %v6740_v46 }
 0x414   : > { %6717 = vmatprep.subr.bf16.mxu1 %v6716_v20  ;;  %v4653_v20 = vld [vmem:[#allocation13 + $0x250] sm:$0xff] }
 0x415   : > { %v6742_v2 = vpack.c.bf16 %v4653_v20, %v4651_v13 }
 0x417   : > { %6719 = vmatpush1.bf16.msra.mxu1 %v6718_v40  ;;  %v4655_v40 = vld [vmem:[#allocation13 + $0x260] sm:$0xff]  ;;  %6743 = vmatpush1.bf16.msra.mxu0 %v6742_v2 }
 0x418   : > { %6721 = vmatprep.subr.bf16.mxu1 %v6720_v62  ;;  %v4657_v62 = vld [vmem:[#allocation13 + $0x270] sm:$0xff]  ;;  %6745 = vmatprep.subr.bf16.mxu0 %v6744_v30  ;;  %v4663_v2 = vld [vmem:[#allocation13 + $0x2a0] sm:$0xff] }
 0x419   : > { %v6746_v54 = vpack.c.bf16 %v4657_v62, %v4655_v40  ;;  %v6752_v40 = vpack.c.bf16 %v4666_v55, %v4664_v11  ;;  %v4665_v62 = vld [vmem:[#allocation13 + $0x2b0] sm:$0xff]  ;;  %v4688_v55 = vld [vmem:[#allocation13 + $0x368] sm:$0xff] }
 0x41b   : > { %6723 = vmatpush1.bf16.msra.mxu1 %v6722_v45  ;;  %6747 = vmatpush1.bf16.msra.mxu0 %v6746_v54 }
 0x41c   : > { %6725 = vmatprep.subr.bf16.mxu1 %v6724_v17 }
 0x41f   : > { %6727 = vmatpush1.bf16.msra.mxu1 %v6726_v16 }
 0x420   : > { %6729 = vmatprep.subr.bf16.mxu1 %v6728_v51 }
 0x423   : > { %6731 = vmatpush1.bf16.msra.mxu1 %v6730_v9 }
 0x426   : > { %4162 = vmatmul.mubr.f32.vlgmr.msra.gmra.mrb[48].mxu1 %v9446_v4  ;;  %v3622_v38 = vpop.f32.mrb[40].mxu1 }
 0x427   : > { %4167 = vmatprep.mubr.f32.mxu1 %v9450_v7  ;;  %v3624_v29 = vpop.f32.mrb[41].mxu1 }
 0x42a   : > { %4168 = vmatmul.mubr.f32.gmra.mrb[50].mxu1 %v9454_v5 }
 0x42b   : > { %4173 = vmatprep.mubr.f32.mxu1 %v9458_v53 }
 0x42e   : > { %4174 = vmatmul.mubr.f32.gmra.mrb[52].mxu1 %v9462_v60 }
 0x42f   : > { %4179 = vmatprep.mubr.f32.mxu1 %v9466_v47 }
 0x432   : > { %4180 = vmatmul.mubr.f32.gmra.mrb[54].mxu1 %v9470_v48  ;;  %v9563_v48 = vld [vmem:[#allocation12] sm:$0xf] }
 0x433   : > { %4185 = vmatprep.mubr.f32.mxu1 %v9474_v37  ;;  %v3515_v37 = vrot.slane %v9563_v48, %v8599_v27 }
 0x435   : > { %v3605_v45 = vadd.f32 %v9520_v6, %v3515_v37  ;;  %v3617_v6 = vadd.f32 %v9540_v18, %v3515_v37  ;;  %v3623_v49 = vadd.f32 %v3622_v38, %v3515_v37 }
 0x436   : > { %4186 = vmatmul.mubr.f32.gmra.mrb[56].mxu1 %v9479_v44  ;;  %v10288_v44 = vld [vmem:[#allocation38_spill] sm:$0xff] }
 0x437   : > { %4191 = vmatprep.mubr.f32.mxu1 %v9483_v57  ;;  %v3519_v57 = vrot.slane %v9563_v48, %v10288_v44 }
 0x439   : > { %v3607_v17 = vadd.f32 %v9523_v59, %v3519_v57  ;;  %v3619_v59 = vadd.f32 %v9542_v63, %v3519_v57  ;;  %v6750_v63 = vpack.c.bf16 %v4661_v15, %v4659_v42 }
 0x43a   : > { %4192 = vmatmul.mubr.f32.gmra.mrb[58].mxu1 %v9489_v0  ;;  %v3628_v4 = vpop.f32.mrb[42].mxu1  ;;  %v3599_v0 = vadd.f32 %v9512_v3, %v3515_v37  ;;  %v3611_v3 = vadd.f32 %v9536_v12, %v3515_v37  ;;  %v3625_v12 = vadd.f32 %v3624_v29, %v3519_v57  ;;  %v6754_v29 = vpack.c.bf16 %v4665_v62, %v4663_v2  ;;  %v4690_v2 = vld [vmem:[#allocation13 + $0x378] sm:$0xff]  ;;  %v4689_v62 = vld [vmem:[#allocation13 + $0x370] sm:$0xff] }
 0x43b   : > { %4197 = vmatprep.mubr.f32.mxu1 %v9493_v26  ;;  %v3630_v7 = vpop.f32.mrb[43].mxu1  ;;  %v3601_v26 = vadd.f32 %v9514_v41, %v3519_v57  ;;  %v3613_v41 = vadd.f32 %v9538_v10, %v3519_v57  ;;  %v4660_v10 = vld [vmem:[#allocation13 + $0x288] sm:$0xff]  ;;  %v3629_v32 = vadd.f32 %v3628_v4, %v3515_v37 }
 0x43c   : > { %v6748_v19 = vpack.c.bf16 %v4662_v21, %v4660_v10  ;;  %v3631_v9 = vadd.f32 %v3630_v7, %v3519_v57  ;;  %v4682_v10 = vld [vmem:[#allocation13 + $0x338] sm:$0xff] }
 0x43e   : > { %4198 = vmatmul.mubr.f32.gmra.mrb[60].mxu1 %v9499_v36  ;;  %6749 = vmatprep.subr.bf16.mxu0 %v6748_v19  ;;  %v4681_v19 = vld [vmem:[#allocation13 + $0x330] sm:$0xff] }
 0x43f   : > { %4203 = vmatprep.mubr.f32.mxu1 %v9503_v61  ;;  %6751 = vmatpush1.bf16.msra.mxu0 %v6750_v63  ;;  %v4684_v63 = vld [vmem:[#allocation13 + $0x348] sm:$0xff] }
 0x440   : > { %6753 = vmatprep.subr.bf16.mxu0 %v6752_v40  ;;  %v6776_v40 = vpack.c.bf16 %v4690_v2, %v4688_v55 }
 0x442   : > { %4204 = vmatmul.mubr.f32.gmra.mrb[62].mxu1 %v9509_v23 }
 0x443   : > { %6755 = vmatpush1.bf16.msra.mxu0 %v6754_v29 }
 0x450   : > { %v3634_v5 = vpop.f32.mrb[44].mxu1 }
 0x451   : > { %v3636_v53 = vpop.f32.mrb[45].mxu1  ;;  %v3635_v30 = vadd.f32 %v3634_v5, %v3515_v37 }
 0x452   : > { %v3637_v38 = vadd.f32 %v3636_v53, %v3519_v57  ;;  %v4667_v53 = vld [vmem:[#allocation13 + $0x2c0] sm:$0xff] }
 0x464   : > { %v9559_v60 = vpop.f32.mrb[46].mxu1 }
 0x465   : > { %v9561_v47 = vpop.f32.mrb[47].mxu1 }
 0x47b   : > { %v3824_v36 = vpop.f32.mrb[32].mxu0 }
 0x47c   : > { %v9571_v61 = vadd.f32 %v3824_v36, %v3599_v0  ;;  %v3826_v23 = vpop.f32.mrb[33].mxu0  ;;  %v3643_v36 = vadd.f32 %v9561_v47, %v3519_v57  ;;  %v4676_v57 = vld [vmem:[#allocation13 + $0x308] sm:$0xff] }
 0x47d   : > { %v9573_v8 = vadd.f32 %v3826_v23, %v3601_v26  ;;  %v3641_v26 = vadd.f32 %v9559_v60, %v3515_v37  ;;  %v4673_v37 = vld [vmem:[#allocation13 + $0x2f0] sm:$0xff] }
 0x47f   : > { %v3830_v34 = vpop.f32.mrb[34].mxu0  ;;  %v4211_v55 = vmax.f32 %v9573_v8, 0.0 }
 0x480   : > { %v9577_v22 = vadd.f32 %v3830_v34, %v3605_v45  ;;  %v3832_v35 = vpop.f32.mrb[35].mxu0  ;;  %v4670_v34 = vld [vmem:[#allocation13 + $0x2d8] sm:$0xff] }
 0x481   : > { %v9579_v50 = vadd.f32 %v3832_v35, %v3607_v17  ;;  %v4668_v17 = vld [vmem:[#allocation13 + $0x2c8] sm:$0xff] }
 0x483   : > { %v3836_v39 = vpop.f32.mrb[36].mxu0 }
 0x484   : > { %v9583_v24 = vadd.f32 %v3836_v39, %v3611_v3  ;;  %v3838_v16 = vpop.f32.mrb[37].mxu0  ;;  %v6756_v3 = vpack.c.bf16 %v4670_v34, %v4668_v17 }
 0x485   : > { %v9585_v52 = vadd.f32 %v3838_v16, %v3613_v41  ;;  %v4669_v41 = vld [vmem:[#allocation13 + $0x2d0] sm:$0xff]  ;;  %v4672_v16 = vld [vmem:[#allocation13 + $0x2e8] sm:$0xff] }
 0x486   : > { %v6758_v39 = vpack.c.bf16 %v4669_v41, %v4667_v53  ;;  %6757 = vmatprep.subr.bf16.mxu0 %v6756_v3  ;;  %v4695_v53 = vld [vmem:[#allocation13 + $0x3a0] sm:$0xff]  ;;  %v4697_v3 = vld [vmem:[#allocation13 + $0x3b0] sm:$0xff]  ;;  %v4700_v41 = vld [vmem:[#allocation13 + $0x3c8] sm:$0xff] }
 0x487   : > { %v3842_v33 = vpop.f32.mrb[38].mxu0 }
 0x488   : > { %v9589_v58 = vadd.f32 %v3842_v33, %v3617_v6  ;;  %v3844_v51 = vpop.f32.mrb[39].mxu0  ;;  %6759 = vmatpush1.bf16.msra.mxu0 %v6758_v39  ;;  %v4674_v6 = vld [vmem:[#allocation13 + $0x2f8] sm:$0xff] }
 0x489   : > { %v9591_v1 = vadd.f32 %v3844_v51, %v3619_v59  ;;  %v4671_v59 = vld [vmem:[#allocation13 + $0x2e0] sm:$0xff]  ;;  %v6760_v60 = vpack.c.bf16 %v4674_v6, %v4672_v16  ;;  %v4678_v33 = vld [vmem:[#allocation13 + $0x318] sm:$0xff]  ;;  %v6786_v16 = vpack.c.bf16 %v4697_v3, %v4695_v53 }
 0x48a   : > { %v6762_v47 = vpack.c.bf16 %v4673_v37, %v4671_v59  ;;  %v4675_v51 = vld [vmem:[#allocation13 + $0x300] sm:$0xff]  ;;  %v4702_v39 = vld [vmem:[#allocation13 + $0x3d8] sm:$0xff]  ;;  %v4704_v37 = vld [vmem:[#allocation13 + $0x3e8] sm:$0xff] }
 0x48b   : > { %v3848_v43 = vpop.f32.mrb[40].mxu0  ;;  %6761 = vmatprep.subr.bf16.mxu0 %v6760_v60  ;;  %v6788_v6 = vpack.c.bf16 %v4702_v39, %v4700_v41  ;;  %v4699_v59 = vld [vmem:[#allocation13 + $0x3c0] sm:$0xff]  ;;  %v4701_v60 = vld [vmem:[#allocation13 + $0x3d0] sm:$0xff]  ;;  %v4218_v41 = vmax.f32 %v9583_v24, 0.0 }
 0x48c   : > { %v9593_v14 = vadd.f32 %v3848_v43, %v3623_v49  ;;  %v3850_v31 = vpop.f32.mrb[41].mxu0  ;;  %6763 = vmatpush1.bf16.msra.mxu0 %v6762_v47  ;;  %v6764_v49 = vpack.c.bf16 %v4678_v33, %v4676_v57  ;;  %v4680_v43 = vld [vmem:[#allocation13 + $0x328] sm:$0xff]  ;;  %v4706_v47 = vld [vmem:[#allocation13 + $0x3f8] sm:$0xff]  ;;  %v6790_v57 = vpack.c.bf16 %v4701_v60, %v4699_v59 }
 0x48d   : > { %v9595_v18 = vadd.f32 %v3850_v31, %v3625_v12  ;;  %v4677_v12 = vld [vmem:[#allocation13 + $0x310] sm:$0xff]  ;;  %v6768_v42 = vpack.c.bf16 %v4682_v10, %v4680_v43  ;;  %v4679_v31 = vld [vmem:[#allocation13 + $0x320] sm:$0xff]  ;;  %v6792_v33 = vpack.c.bf16 %v4706_v47, %v4704_v37  ;;  %v4581_v43 = vld [vmem:[#allocation13 + $0x18] sm:$0xff] }
 0x48e   : > { %v6766_v21 = vpack.c.bf16 %v4677_v12, %v4675_v51  ;;  %6765 = vmatprep.subr.bf16.mxu0 %v6764_v49  ;;  %v6770_v15 = vpack.c.bf16 %v4681_v19, %v4679_v31  ;;  %v4703_v51 = vld [vmem:[#allocation13 + $0x3e0] sm:$0xff]  ;;  %v4705_v49 = vld [vmem:[#allocation13 + $0x3f0] sm:$0xff]  ;;  %v4579_v12 = vld [vmem:[#allocation13 + $0x8] sm:$0xff] }
 0x48f   : > { %v3854_v25 = vpop.f32.mrb[42].mxu0  ;;  %v6794_v10 = vpack.c.bf16 %v4705_v49, %v4703_v51  ;;  %v10289_v31 = vld [vmem:[#allocation37_spill] sm:$0xff]  ;;  %v4222_v49 = vmax.f32 %v9589_v58, 0.0 }
 0x490   : > { %v9597_v46 = vadd.f32 %v3854_v25, %v3629_v32  ;;  %v3856_v13 = vpop.f32.mrb[43].mxu0  ;;  %6767 = vmatpush1.bf16.msra.mxu0 %v6766_v21  ;;  %v4686_v32 = vld [vmem:[#allocation13 + $0x358] sm:$0xff]  ;;  %v6796_v21 = vpack.c.bf16 %v4581_v43, %v4579_v12  ;;  %v10290_v19 = vsub.s32 3, %v10289_v31  ;;  %v4226_v43 = vmax.f32 %v9593_v14, 0.0 }
 0x491   : > { %v9599_v20 = vadd.f32 %v3856_v13, %v3631_v9  ;;  %6769 = vmatprep.subr.bf16.mxu0 %v6768_v42  ;;  %v4683_v9 = vld [vmem:[#allocation13 + $0x340] sm:$0xff]  ;;  %v6772_v25 = vpack.c.bf16 %v4686_v32, %v4684_v63  ;;  %v4685_v13 = vld [vmem:[#allocation13 + $0x350] sm:$0xff]  ;;  %v9613_v42 = vrot.slane %v9563_v48, %v8602_v28 }
 0x492   : > { %v6774_v11 = vpack.c.bf16 %v4685_v13, %v4683_v9  ;;  %v4210_v13 = vmax.f32 %v9571_v61, 0.0 }
 0x493   : > { %v3860_v54 = vpop.f32.mrb[44].mxu0 }
 0x494   : > { %v9601_v0 = vadd.f32 %v3860_v54, %v3635_v30  ;;  %v3862_v4 = vpop.f32.mrb[45].mxu0  ;;  %6771 = vmatpush1.bf16.msra.mxu0 %v6770_v15  ;;  %v4687_v30 = vld [vmem:[#allocation13 + $0x360] sm:$0xff]  ;;  %v4694_v54 = vld [vmem:[#allocation13 + $0x398] sm:$0xff]  ;;  %v9618_v15 = vrot.slane %v9563_v48, %v10290_v19  ;;  %v4227_v19 = vmax.f32 %v9595_v18, 0.0 }
 0x495   : > { %v9603_v7 = vadd.f32 %v3862_v4, %v3637_v38  ;;  %6773 = vmatprep.subr.bf16.mxu0 %v6772_v25  ;;  %v4692_v38 = vld [vmem:[#allocation13 + $0x388] sm:$0xff]  ;;  %v6778_v29 = vpack.c.bf16 %v4689_v62, %v4687_v30 }
 0x496   : > { %v6780_v4 = vpack.c.bf16 %v4694_v54, %v4692_v38 }
 0x497   : > { %v3866_v23 = vpop.f32.mrb[46].mxu0  ;;  %v4235_v58 = vmax.f32 %v9603_v7, 0.0 }
 0x498   : > { %v9607_v45 = vadd.f32 %v3866_v23, %v3641_v26  ;;  %v3868_v5 = vpop.f32.mrb[47].mxu0  ;;  %6775 = vmatpush1.bf16.msra.mxu0 %v6774_v11  ;;  %v4691_v26 = vld [vmem:[#allocation13 + $0x380] sm:$0xff]  ;;  %v4696_v23 = vld [vmem:[#allocation13 + $0x3a8] sm:$0xff] }
 0x499   : > { %v9609_v35 = vadd.f32 %v3868_v5, %v3643_v36  ;;  %6777 = vmatprep.subr.bf16.mxu0 %v6776_v40  ;;  %v4693_v36 = vld [vmem:[#allocation13 + $0x390] sm:$0xff]  ;;  %v4698_v5 = vld [vmem:[#allocation13 + $0x3b8] sm:$0xff] }
 0x49a   : > { %v6782_v17 = vpack.c.bf16 %v4693_v36, %v4691_v26  ;;  %v6784_v34 = vpack.c.bf16 %v4698_v5, %v4696_v23  ;;  %v4215_v26 = vmax.f32 %v9579_v50, 0.0 }
 0x49c   : > { %6779 = vmatpush1.bf16.msra.mxu0 %v6778_v29  ;;  %v4214_v29 = vmax.f32 %v9577_v22, 0.0 }
 0x49d   : > { %6781 = vmatprep.subr.bf16.mxu0 %v6780_v4 }
 0x4a0   : > { %6783 = vmatpush1.bf16.msra.mxu0 %v6782_v17 }
 0x4a1   : > { %6785 = vmatprep.subr.bf16.mxu0 %v6784_v34 }
 0x4a4   : > { %6787 = vmatpush1.bf16.msra.mxu0 %v6786_v16  ;;  %v4219_v16 = vmax.f32 %v9585_v52, 0.0  ;;  %v4223_v52 = vmax.f32 %v9591_v1, 0.0 }
 0x4a5   : > { %6789 = vmatprep.subr.bf16.mxu0 %v6788_v6 }
 0x4a8   : > { %6791 = vmatpush1.bf16.msra.mxu0 %v6790_v57 }
 0x4a9   : > { %6793 = vmatprep.subr.bf16.mxu0 %v6792_v33 }
 0x4ac   : > { %6795 = vmatpush1.bf16.msra.mxu0 %v6794_v10 }
 0x4ad   : > { %6797 = vmatprep.subr.bf16.mxu0 %v6796_v21 }
 0x4f9   : > { %v4163_v63 = vpop.f32.mrb[48].mxu1 }
 0x4fa   : > { %v7100_v32 = vadd.f32 %v4163_v63, %v9613_v42  ;;  %v4165_v9 = vpop.f32.mrb[49].mxu1  ;;  %v4230_v63 = vmax.f32 %v9597_v46, 0.0 }
 0x4fb   : > { %v7101_v25 = vadd.f32 %v4165_v9, %v9618_v15  ;;  %v4234_v9 = vmax.f32 %v9601_v0, 0.0 }
 0x4fc   : > { %v4212_v11 = vmax.f32 %v7100_v32, 0.0  ;;  %v4231_v32 = vmax.f32 %v9599_v20, 0.0 }
 0x4fd   : > { %v4213_v2 = vmax.f32 %v7101_v25, 0.0  ;;  %v4169_v30 = vpop.f32.mrb[50].mxu1  ;;  %v4238_v25 = vmax.f32 %v9607_v45, 0.0 }
 0x4fe   : > { %v4242_v40 = vmax.f32 %v4210_v13, %v4212_v11  ;;  %v7102_v62 = vadd.f32 %v4169_v30, %v9613_v42  ;;  %v4171_v38 = vpop.f32.mrb[51].mxu1 }
 0x4ff   : > { %v4243_v54 = vmax.f32 %v4211_v55, %v4213_v2  ;;  %v7103_v48 = vadd.f32 %v4171_v38, %v9618_v15  ;;  %v9650_v38 = vld [vmem:[#allocation13 + $0x10] sm:$0xff] }
 0x500   : > { %v4216_v4 = vmax.f32 %v7102_v62, 0.0  ;;  %v9648_v62 = vld [vmem:[#allocation13] sm:$0xff] }
 0x501   : > { %v4274_v36 = vcombine.low %v4242_v40, %v4243_v54  ;;  %v4275_v23 = vcombine.high %v4242_v40, %v4243_v54  ;;  %v4217_v61 = vmax.f32 %v7103_v48, 0.0  ;;  %v4175_v5 = vpop.f32.mrb[52].mxu1  ;;  %v9652_v54 = vld [vmem:[#allocation13 + $0x28] sm:$0xff] }
 0x502   : > { %v4244_v17 = vmax.f32 %v4214_v29, %v4216_v4  ;;  %v7104_v8 = vadd.f32 %v4175_v5, %v9613_v42  ;;  %v4177_v34 = vpop.f32.mrb[53].mxu1  ;;  %v4239_v5 = vmax.f32 %v9609_v35, 0.0 }
 0x503   : > { %v4245_v53 = vmax.f32 %v4215_v26, %v4217_v61  ;;  %v7105_v3 = vadd.f32 %v4177_v34, %v9618_v15  ;;  %v4282_v22 = vrot.slane %v4274_v36, %v8662_v56  ;;  %v4289_v57 = vrot.slane %v4275_v23, %v8662_v56  ;;  %v9656_v36 = vld [vmem:[#allocation13 + $0x38] sm:$0xff]  ;;  %v9658_v23 = vld [vmem:[#allocation13 + $0x20] sm:$0xff]  ;;  %v9660_v61 = vld [vmem:[#allocation13 + $0x30] sm:$0xff] }
 0x504   : > { %v4220_v39 = vmax.f32 %v7104_v8, 0.0 }
 0x505   : > { %v4181_v6 = vpop.f32.mrb[54].mxu1  ;;  %v4292_v50 = vcombine.low %v4244_v17, %v4245_v53  ;;  %v4293_v59 = vcombine.high %v4244_v17, %v4245_v53  ;;  %v4221_v37 = vmax.f32 %v7105_v3, 0.0  ;;  %v4290_v10 = vcombine.high %v4282_v22, %v4282_v22 }
 0x506   : > { %v4246_v60 = vmax.f32 %v4218_v41, %v4220_v39  ;;  %v4183_v47 = vpop.f32.mrb[55].mxu1  ;;  %v7106_v24 = vadd.f32 %v4181_v6, %v9613_v42  ;;  %v6120_v21 = vrot.slane %v4282_v22, 9  ;;  %v9645_v13 = vcombine.high %v4289_v57, %v4289_v57 }
 0x507   : > { %v4300_v33 = vrot.slane %v4292_v50, %v8662_v56  ;;  %v4247_v51 = vmax.f32 %v4219_v16, %v4221_v37  ;;  %v7107_v30 = vadd.f32 %v4183_v47, %v9618_v15  ;;  %v6121_v48 = vrot.slane %v4290_v10, 9 }
 0x508   : > { %v4224_v2 = vmax.f32 %v7106_v24, 0.0  ;;  %v6122_v29 = vrot.slane %v4289_v57, 9  ;;  %v9654_v4 = vmax.f32 %v4282_v22, %v6120_v21  ;;  %v4307_v17 = vrot.slane %v4293_v59, %v8662_v56 }
 0x509   : > { %v4187_v12 = vpop.f32.mrb[56].mxu1  ;;  %v4308_v1 = vcombine.high %v4300_v33, %v4300_v33  ;;  %v4310_v11 = vcombine.low %v4246_v60, %v4247_v51  ;;  %v4311_v55 = vcombine.high %v4246_v60, %v4247_v51  ;;  %v4225_v34 = vmax.f32 %v7107_v30, 0.0 }
 0x50a   : > { %v4189_v31 = vpop.f32.mrb[57].mxu1  ;;  %v4248_v8 = vmax.f32 %v4222_v49, %v4224_v2  ;;  %v6124_v53 = vrot.slane %v4300_v33, 9  ;;  %v9673_v60 = vmax.f32 %v4290_v10, %v6121_v48  ;;  %v9675_v37 = vmax.f32 %v4289_v57, %v6122_v29 }
 0x50b   : > { %v6125_v3 = vrot.slane %v4308_v1, 9  ;;  %v4318_v41 = vrot.slane %v4310_v11, %v8662_v56  ;;  %v4325_v22 = vrot.slane %v4311_v55, %v8662_v56  ;;  %v9683_v24 = vcombine.high %v4307_v17, %v4307_v17 }
 0x50c   : > { %v4249_v21 = vmax.f32 %v4223_v52, %v4225_v34  ;;  %v7108_v11 = vadd.f32 %v4187_v12, %v9613_v42  ;;  %v7109_v55 = vadd.f32 %v4189_v31, %v9618_v15  ;;  %v6126_v2 = vrot.slane %v4307_v17, 9 }
 0x50d   : > { %v4193_v40 = vpop.f32.mrb[58].mxu1  ;;  %v9687_v10 = vmax.f32 %v4300_v33, %v6124_v53  ;;  %v9689_v57 = vmax.f32 %v4308_v1, %v6125_v3  ;;  %v4326_v30 = vcombine.high %v4318_v41, %v4318_v41  ;;  %v6128_v48 = vrot.slane %v4318_v41, 9 }
 0x50e   : > { %v4195_v26 = vpop.f32.mrb[59].mxu1  ;;  %v6130_v29 = vrot.slane %v4325_v22, 9  ;;  %v4328_v59 = vcombine.low %v4248_v8, %v4249_v21  ;;  %v4329_v16 = vcombine.high %v4248_v8, %v4249_v21  ;;  %v4228_v52 = vmax.f32 %v7108_v11, 0.0 }
 0x50f   : > { %v4229_v34 = vmax.f32 %v7109_v55, 0.0  ;;  %v7110_v12 = vadd.f32 %v4193_v40, %v9613_v42  ;;  %v4722_v1 = vrot.slane %v9673_v60, %v8602_v28  ;;  %v9704_v3 = vmax.f32 %v4307_v17, %v6126_v2 }
 0x510   : > { %v4336_v8 = vrot.slane %v4328_v59, %v8662_v56  ;;  %v4730_v40 = vrot.slane %v9689_v57, %v8602_v28  ;;  %v6129_v55 = vrot.slane %v4326_v30, 9  ;;  %v9712_v39 = vmax.f32 %v4318_v41, %v6128_v48 }
 0x511   : > { %v4199_v6 = vpop.f32.mrb[60].mxu1  ;;  %v9714_v47 = vmax.f32 %v4325_v22, %v6130_v29  ;;  %v4250_v59 = vmax.f32 %v4226_v43, %v4228_v52  ;;  %v4251_v17 = vmax.f32 %v4227_v19, %v4229_v34  ;;  %v4232_v2 = vmax.f32 %v7110_v12, 0.0 }
 0x512   : > { %v9681_v49 = vpop.f32.mrb[61].mxu1  ;;  %v4344_v51 = vcombine.high %v4336_v8, %v4336_v8  ;;  %v7111_v53 = vadd.f32 %v4195_v26, %v9618_v15  ;;  %v4890_v21 = vrot.slane %v9687_v10, %v8602_v28  ;;  %v9724_v11 = vrot.slane %v4329_v16, %v8662_v56 }
 0x513   : > { %v6132_v41 = vrot.slane %v4336_v8, 9  ;;  %v4346_v29 = vcombine.low %v4250_v59, %v4251_v17  ;;  %v4347_v33 = vcombine.high %v4250_v59, %v4251_v17  ;;  %v4252_v14 = vmax.f32 %v4230_v63, %v4232_v2 }
 0x514   : > { %v6133_v48 = vrot.slane %v4344_v51, 9  ;;  %v4233_v43 = vmax.f32 %v7111_v53, 0.0  ;;  %v9730_v19 = vcombine.high %v4325_v22, %v4325_v22  ;;  %v9732_v26 = vmax.f32 %v4326_v30, %v6129_v55 }
 0x515   : > { %v9691_v50 = vpop.f32.mrb[62].mxu1  ;;  %v4354_v46 = vrot.slane %v4346_v29, %v8662_v56  ;;  %v9742_v63 = vrot.slane %v4347_v33, %v8662_v56  ;;  %v6134_v12 = vrot.slane %v9724_v11, 9  ;;  %v9745_v22 = vmax.f32 %v4336_v8, %v6132_v41 }
 0x516   : > { %v9696_v31 = vpop.f32.mrb[63].mxu1  ;;  %v4253_v30 = vmax.f32 %v4231_v32, %v4233_v43  ;;  %v7112_v53 = vadd.f32 %v4199_v6, %v9613_v42  ;;  %v4559_v55 = vmax.f32 %v4344_v51, %v6133_v48  ;;  %v7113_v33 = vadd.f32 %v9681_v49, %v9618_v15 }
 0x517   : > { %v4362_v59 = vcombine.high %v4354_v46, %v4354_v46  ;;  %v6136_v17 = vrot.slane %v4354_v46, 9  ;;  %v6138_v2 = vrot.slane %v9742_v63, 9  ;;  %v4734_v8 = vrot.slane %v9732_v26, %v8599_v27 }
 0x518   : > { %v4364_v34 = vcombine.low %v4252_v14, %v4253_v30  ;;  %v4365_v29 = vcombine.high %v4252_v14, %v4253_v30  ;;  %v4236_v18 = vmax.f32 %v7112_v53, 0.0  ;;  %v4738_v20 = vrot.slane %v9732_v26, %v8602_v28 }
 0x519   : > { %v6137_v32 = vrot.slane %v4362_v59, 9  ;;  %v9757_v6 = vmax.f32 %v4354_v46, %v6136_v17  ;;  %v4237_v14 = vmax.f32 %v7113_v33, 0.0  ;;  %v9766_v49 = vmax.f32 %v9724_v11, %v6134_v12 }
 0x51a   : > { %v4372_v51 = vrot.slane %v4364_v34, %v8662_v56  ;;  %v9761_v41 = vrot.slane %v4365_v29, %v8662_v56  ;;  %v4254_v48 = vmax.f32 %v4234_v9, %v4236_v18  ;;  %v4906_v26 = vrot.slane %v9745_v22, %v8602_v28 }
 0x51b   : > { %v4563_v46 = vmax.f32 %v4362_v59, %v6137_v32  ;;  %v4742_v30 = vrot.slane %v4559_v55, %v8599_v27  ;;  %v9774_v34 = vmax.f32 %v9742_v63, %v6138_v2  ;;  %v4255_v9 = vmax.f32 %v4235_v58, %v4237_v14 }
 0x51c   : > { %v4380_v53 = vcombine.high %v4372_v51, %v4372_v51  ;;  %v6140_v17 = vrot.slane %v4372_v51, 9  ;;  %v7114_v18 = vadd.f32 %v9691_v50, %v9613_v42  ;;  %v7115_v12 = vadd.f32 %v9696_v31, %v9618_v15 }
 0x51d   : > { %v4750_v59 = vrot.slane %v4563_v46, %v8599_v27  ;;  %v6142_v2 = vrot.slane %v9761_v41, 9  ;;  %v4382_v32 = vcombine.low %v4254_v48, %v4255_v9  ;;  %v4383_v43 = vcombine.high %v4254_v48, %v4255_v9 }
 0x51e   : > { %v6141_v29 = vrot.slane %v4380_v53, 9  ;;  %v9786_v33 = vmax.f32 %v4372_v51, %v6140_v17  ;;  %v4240_v52 = vmax.f32 %v7114_v18, 0.0  ;;  %v4241_v0 = vmax.f32 %v7115_v12, 0.0 }
 0x51f   : > { %v4746_v7 = vrot.slane %v4559_v55, %v8602_v28  ;;  %v4754_v58 = vrot.slane %v4563_v46, %v8602_v28  ;;  %v4787_v42 = vsel %vm4779_vm13, %v4730_v40, %v4722_v1  ;;  %v4390_v15 = vrot.slane %v4382_v32, %v8662_v56 }
 0x520   : > { %v4567_v16 = vmax.f32 %v4380_v53, %v6141_v29  ;;  %v9799_v50 = vrot.slane %v4383_v43, %v8662_v56  ;;  %v4256_v31 = vmax.f32 %v4238_v25, %v4240_v52  ;;  %v4257_v55 = vmax.f32 %v4239_v5, %v4241_v0 }
 0x521   : > { %v9806_v51 = vmax.f32 %v9761_v41, %v6142_v2  ;;  %v4788_v14 = vsel %vm2686_vm5, %v4738_v20, %v4787_v42  ;;  %v10291_v1 = vrot.slane %v9673_v60, %v8599_v27  ;;  %v10292_v40 = vrot.slane %v9689_v57, %v8599_v27 }
 0x522   : > { %v4762_v48 = vrot.slane %v4567_v16, %v8602_v28  ;;  %v4398_v45 = vcombine.high %v4390_v15, %v4390_v15  ;;  %v6144_v25 = vrot.slane %v4390_v15, 9  ;;  %v6146_v35 = vrot.slane %v9799_v50, 9 }
 0x523   : > { %v4780_v43 = vsel %vm4779_vm13, %v10292_v40, %v10291_v1  ;;  %v4758_v5 = vrot.slane %v4567_v16, %v8599_v27  ;;  %v4400_v52 = vcombine.low %v4256_v31, %v4257_v55  ;;  %v4401_v46 = vcombine.high %v4256_v31, %v4257_v55 }
 0x524   : > { %v4789_v53 = vsel %vm2688_vm6, %v4746_v7, %v4788_v14  ;;  %v4781_v20 = vsel %vm2686_vm5, %v4734_v8, %v4780_v43  ;;  %v6145_v17 = vrot.slane %v4398_v45, 9  ;;  %v4570_v57 = vmax.f32 %v4390_v15, %v6144_v25 }
 0x525   : > { %v4790_v60 = vsel %vm2690_vm7, %v4754_v58, %v4789_v53  ;;  %v4782_v0 = vsel %vm2688_vm6, %v4742_v30, %v4781_v20  ;;  %v4408_v9 = vrot.slane %v4400_v52, %v8662_v56  ;;  %v9825_v18 = vrot.slane %v4401_v46, %v8662_v56 }
 0x526   : > { %v4791_v12 = vsel %vm2692_vm8, %v4762_v48, %v4790_v60  ;;  %v4783_v16 = vsel %vm2690_vm7, %v4750_v59, %v4782_v0  ;;  %v4571_v29 = vmax.f32 %v4398_v45, %v6145_v17  ;;  %v4914_v8 = vrot.slane %v9757_v6, %v8602_v28 }
 0x527   : > { %v4784_v2 = vsel %vm2692_vm8, %v4758_v5, %v4783_v16  ;;  %v4922_v32 = vrot.slane %v9786_v33, %v8602_v28  ;;  %v4416_v30 = vcombine.high %v4408_v9, %v4408_v9  ;;  %v6148_v7 = vrot.slane %v4408_v9, 9 }
 0x528   : > { %v4930_v58 = vrot.slane %v4570_v57, %v8602_v28  ;;  %v10293_v56 = vrot.slane %v9654_v4, %v8602_v28  ;;  %v4770_v42 = vrot.slane %v4571_v29, %v8602_v28  ;;  %v4766_v15 = vrot.slane %v4571_v29, %v8599_v27 }
 0x529   : > { %v10294_v31 = vrot.slane %v9712_v39, %v8602_v28  ;;  %v4918_v48 = vrot.slane %v9786_v33, %v8599_v27  ;;  %v6149_v14 = vrot.slane %v4416_v30, 9  ;;  %v4574_v1 = vmax.f32 %v4408_v9, %v6148_v7  ;;  %v4587_v7 = vld [vmem:[#allocation13 + $0x48] sm:$0xff] }
 0x52a   : > { %v4946_v59 = vsel %vm4779_vm13, %v4890_v21, %v10293_v56  ;;  %v4926_v43 = vrot.slane %v4570_v57, %v8599_v27  ;;  %v4792_v21 = vsel %vm2694_vm9, %v4770_v42, %v4791_v12  ;;  %v4785_v45 = vsel %vm2694_vm9, %v4766_v15, %v4784_v2 }
 0x52b   : > { %v4947_v55 = vsel %vm2686_vm5, %v10294_v31, %v4946_v59  ;;  %v10295_v5 = vrot.slane %v9654_v4, %v8599_v27  ;;  %v10296_v52 = vrot.slane %v9687_v10, %v8599_v27  ;;  %v4575_v46 = vmax.f32 %v4416_v30, %v6149_v14  ;;  %v4586_v14 = vld [vmem:[#allocation13 + $0x40] sm:$0xff] }
 0x52c   : > { %v4948_v40 = vsel %vm2688_vm6, %v4906_v26, %v4947_v55  ;;  %v4938_v53 = vrot.slane %v4574_v1, %v8602_v28  ;;  %v4934_v20 = vrot.slane %v4574_v1, %v8599_v27  ;;  %v10297_v60 = vrot.slane %v9712_v39, %v8599_v27  ;;  %v4588_v1 = vld [vmem:[#allocation13 + $0x50] sm:$0xff] }
 0x52d   : > { %v4949_v25 = vsel %vm2690_vm7, %v4914_v8, %v4948_v40  ;;  %v4939_v33 = vsel %vm4779_vm13, %v10296_v52, %v10295_v5  ;;  %v6150_v4 = vrot.slane %v9825_v18, 9  ;;  %v9872_v10 = vmax.f32 %v9799_v50, %v6146_v35  ;;  %v4591_v5 = vld [vmem:[#allocation13 + $0x68] sm:$0xff]  ;;  %v4593_v52 = vld [vmem:[#allocation13 + $0x78] sm:$0xff] }
 0x52e   : > { %v4950_v26 = vsel %vm2692_vm8, %v4922_v32, %v4949_v25  ;;  %v4940_v0 = vsel %vm2686_vm5, %v10297_v60, %v4939_v33  ;;  %v4778_v57 = vrot.slane %v4575_v46, %v8602_v28  ;;  %v4774_v9 = vrot.slane %v4575_v46, %v8599_v27  ;;  %v4590_v33 = vld [vmem:[#allocation13 + $0x60] sm:$0xff]  ;;  %v4595_v60 = vld [vmem:[#allocation13 + $0x88] sm:$0xff] }
 0x52f   : > { %v4951_v17 = vsel %vm2694_vm9, %v4930_v58, %v4950_v26  ;;  %v10298_v16 = vrot.slane %v9745_v22, %v8599_v27  ;;  %v4345_v39 = vcombine.high %v9724_v11, %v9724_v11  ;;  %v5130_v2 = vrot.slane %v9766_v49, %v8602_v28  ;;  %v4589_v58 = vld [vmem:[#allocation13 + $0x58] sm:$0xff] }
 0x530   : > { %v4952_v12 = vsel %vm2696_vm10, %v4938_v53, %v4951_v17  ;;  %v10299_v35 = vrot.slane %v9757_v6, %v8599_v27  ;;  %v9890_v32 = vmax.f32 %v9825_v18, %v6150_v4  ;;  %v4793_v30 = vsel %vm2696_vm10, %v4778_v57, %v4792_v21 }
 0x531   : > { %v4941_v29 = vsel %vm2688_vm6, %v10298_v16, %v4940_v0  ;;  %v4786_v22 = vsel %vm2696_vm10, %v4774_v9, %v4785_v45  ;;  %v5138_v11 = vrot.slane %v9774_v34, %v8602_v28  ;;  %v4363_v59 = vcombine.high %v9742_v63, %v9742_v63  ;;  %4860 = vmatprep.mubr.f32.mxu0 %v4793_v30  ;;  %v4597_v0 = vld [vmem:[#allocation13 + $0x98] sm:$0xff] }
 0x532   : > { %v4942_v8 = vsel %vm2690_vm7, %v10299_v35, %v4941_v29  ;;  %v5146_v42 = vrot.slane %v9806_v51, %v8602_v28  ;;  %v10300_v15 = vrot.slane %v9675_v37, %v8602_v28  ;;  %v10301_v31 = vrot.slane %v9704_v3, %v8602_v28  ;;  %4861 = vmatmul.mubr.f32.vlgmr.msra.gmra.mrb[48].mxu0 %v4786_v22 }
 0x533   : > { %v4943_v56 = vsel %vm2692_vm8, %v4918_v48, %v4942_v8  ;;  %v6131_v48 = vrot.slane %v9730_v19, 9  ;;  %v5154_v40 = vrot.slane %v9872_v10, %v8602_v28  ;;  %v10303_v45 = vpack.c.bf16 %v9650_v38, %v9648_v62  ;;  %5019 = vmatprep.mubr.f32.mxu0 %v4952_v12  ;;  %v4592_v38 = vld [vmem:[#allocation13 + $0x70] sm:$0xff] }
 0x534   : > { %v4944_v6 = vsel %vm2694_vm9, %v4926_v43, %v4943_v56  ;;  %v5170_v55 = vsel %vm4779_vm13, %v10301_v31, %v10300_v15  ;;  %v10302_v43 = vrot.slane %v9714_v47, %v8602_v28  ;;  %v6804_v25 = vpack.c.bf16 %v4589_v58, %v4587_v7  ;;  %v4594_v15 = vld [vmem:[#allocation13 + $0x80] sm:$0xff]  ;;  %v4596_v31 = vld [vmem:[#allocation13 + $0x90] sm:$0xff] }
 0x535   : > { %v9911_v63 = vsel %vm2696_vm10, %v4934_v20, %v4944_v6  ;;  %6799 = vmatpush1.bf16.msra.mxu0 %v10303_v45  ;;  %v5162_v46 = vrot.slane %v9890_v32, %v8602_v28  ;;  %v6135_v26 = vrot.slane %v4345_v39, 9  ;;  %v4381_v20 = vcombine.high %v9761_v41, %v9761_v41 }
 0x536   : > { %v5171_v21 = vsel %vm2686_vm5, %v10302_v43, %v5170_v55  ;;  %v4399_v17 = vcombine.high %v9799_v50, %v9799_v50  ;;  %v10304_v62 = vpack.c.bf16 %v9656_v36, %v9652_v54  ;;  %v10305_v57 = vrot.slane %v9683_v24, 9 }
 0x537   : > { %v5172_v53 = vsel %vm2688_vm6, %v5130_v2, %v5171_v21  ;;  %v6139_v12 = vrot.slane %v4363_v59, 9  ;;  %v6806_v16 = vpack.c.bf16 %v4588_v1, %v4586_v14  ;;  %v10306_v50 = vrot.slane %v9645_v13, 9  ;;  %v4599_v14 = vld [vmem:[#allocation13 + $0xa8] sm:$0xff] }
 0x538   : > { %6801 = vmatprep.subr.bf16.mxu0 %v10304_v62  ;;  %v5173_v4 = vsel %vm2690_vm7, %v5138_v11, %v5172_v53  ;;  %v9936_v9 = vmax.f32 %v9683_v24, %v10305_v57  ;;  %v9945_v54 = vmax.f32 %v9730_v19, %v6131_v48  ;;  %v6808_v36 = vpack.c.bf16 %v4593_v52, %v4591_v5 }
 0x539   : > { %v5174_v41 = vsel %vm2692_vm8, %v5146_v42, %v5173_v4  ;;  %v9942_v29 = vmax.f32 %v9645_v13, %v10306_v50  ;;  %v5110_v35 = vrot.slane %v9704_v3, %v8599_v27  ;;  %v10307_v24 = vpack.c.bf16 %v9660_v61, %v9658_v23  ;;  %v4605_v4 = vld [vmem:[#allocation13 + $0xd8] sm:$0xff] }
 0x53a   : > { %v5175_v2 = vsel %vm2694_vm9, %v5154_v40, %v5174_v41  ;;  %v6810_v8 = vpack.c.bf16 %v4592_v38, %v4590_v33  ;;  %v6812_v30 = vpack.c.bf16 %v4597_v0, %v4595_v60  ;;  %v5118_v13 = vrot.slane %v9714_v47, %v8599_v27  ;;  %v4603_v0 = vld [vmem:[#allocation13 + $0xc8] sm:$0xff] }
 0x53b   : > { %6803 = vmatpush1.bf16.msra.mxu0 %v10307_v24  ;;  %v9954_v22 = vsel %vm2696_vm10, %v5162_v46, %v5175_v2  ;;  %v9958_v19 = vmax.f32 %v4345_v39, %v6135_v26  ;;  %v6143_v7 = vrot.slane %v4381_v20, 9  ;;  %v6147_v58 = vrot.slane %v4399_v17, 9  ;;  %v4604_v24 = vld [vmem:[#allocation13 + $0xd0] sm:$0xff] }
 0x53c   : > { %6805 = vmatprep.subr.bf16.mxu0 %v6804_v25  ;;  %v5102_v3 = vrot.slane %v9675_v37, %v8599_v27  ;;  %v5340_v23 = vrot.slane %v9936_v9, %v8602_v28  ;;  %v5126_v61 = vrot.slane %v9766_v49, %v8599_v27  ;;  %v9966_v56 = vmax.f32 %v4363_v59, %v6139_v12 }
 0x53d   : > { %v5332_v11 = vrot.slane %v9942_v29, %v8602_v28  ;;  %v5348_v47 = vrot.slane %v9945_v54, %v8602_v28  ;;  %v5134_v39 = vrot.slane %v9774_v34, %v8599_v27  ;;  %v5142_v37 = vrot.slane %v9806_v51, %v8599_v27 }
 0x53e   : > { %v5150_v6 = vrot.slane %v9872_v10, %v8599_v27  ;;  %v5158_v49 = vrot.slane %v9890_v32, %v8599_v27  ;;  %v5163_v59 = vsel %vm4779_vm13, %v5110_v35, %v5102_v3  ;;  %v4417_v42 = vcombine.high %v9825_v18, %v9825_v18  ;;  %v4601_v10 = vld [vmem:[#allocation13 + $0xb8] sm:$0xff]  ;;  %v4602_v35 = vld [vmem:[#allocation13 + $0xc0] sm:$0xff] }
 0x53f   : > { %6807 = vmatpush1.bf16.msra.mxu0 %v6806_v16  ;;  %v5164_v34 = vsel %vm2686_vm5, %v5118_v13, %v5163_v59  ;;  %v4569_v55 = vmax.f32 %v4381_v20, %v6143_v7  ;;  %v4573_v48 = vmax.f32 %v4399_v17, %v6147_v58  ;;  %v5356_v51 = vrot.slane %v9958_v19, %v8602_v28  ;;  %v4598_v20 = vld [vmem:[#allocation13 + $0xa0] sm:$0xff]  ;;  %v4600_v17 = vld [vmem:[#allocation13 + $0xb0] sm:$0xff]  ;;  %v4609_v13 = vld [vmem:[#allocation13 + $0xf8] sm:$0xff] }
 0x540   : > { %6809 = vmatprep.subr.bf16.mxu0 %v6808_v36  ;;  %v5165_v1 = vsel %vm2688_vm6, %v5126_v61, %v5164_v34  ;;  %v6151_v32 = vrot.slane %v4417_v42, 9  ;;  %v5364_v40 = vrot.slane %v9966_v56, %v8602_v28  ;;  %v5396_v18 = vsel %vm4779_vm13, %v5340_v23, %v5332_v11  ;;  %v4606_v11 = vld [vmem:[#allocation13 + $0xe0] sm:$0xff]  ;;  %v4612_v34 = vld [vmem:[#allocation13 + $0x110] sm:$0xff] }
 0x541   : > { %v5166_v43 = vsel %vm2690_vm7, %v5134_v39, %v5165_v1  ;;  %v5372_v21 = vrot.slane %v4569_v55, %v8602_v28  ;;  %v5380_v45 = vrot.slane %v4573_v48, %v8602_v28  ;;  %v5397_v25 = vsel %vm2686_vm5, %v5348_v47, %v5396_v18  ;;  %v4608_v47 = vld [vmem:[#allocation13 + $0xf0] sm:$0xff] }
 0x542   : > { %v6814_v5 = vpack.c.bf16 %v4596_v31, %v4594_v15  ;;  %v5167_v52 = vsel %vm2692_vm8, %v5142_v37, %v5166_v43  ;;  %v4577_v33 = vmax.f32 %v4417_v42, %v6151_v32  ;;  %v5398_v46 = vsel %vm2688_vm6, %v5356_v51, %v5397_v25  ;;  %v4611_v37 = vld [vmem:[#allocation13 + $0x108] sm:$0xff]  ;;  %v4610_v31 = vld [vmem:[#allocation13 + $0x100] sm:$0xff]  ;;  %v4616_v1 = vld [vmem:[#allocation13 + $0x130] sm:$0xff] }
 0x543   : > { %6811 = vmatpush1.bf16.msra.mxu0 %v6810_v8  ;;  %v5336_v53 = vrot.slane %v9936_v9, %v8599_v27  ;;  %v6816_v26 = vpack.c.bf16 %v4601_v10, %v4599_v14  ;;  %v5168_v62 = vsel %vm2694_vm9, %v5150_v6, %v5167_v52  ;;  %v5399_v38 = vsel %vm2690_vm7, %v5364_v40, %v5398_v46  ;;  %v4613_v6 = vld [vmem:[#allocation13 + $0x118] sm:$0xff]  ;;  %v4614_v10 = vld [vmem:[#allocation13 + $0x120] sm:$0xff]  ;;  %v4619_v32 = vld [vmem:[#allocation13 + $0x148] sm:$0xff] }
 0x544   : > { %6813 = vmatprep.subr.bf16.mxu0 %v6812_v30  ;;  %v5344_v60 = vrot.slane %v9945_v54, %v8599_v27  ;;  %v10003_v57 = vsel %vm2696_vm10, %v5158_v49, %v5168_v62  ;;  %v5388_v12 = vrot.slane %v4577_v33, %v8602_v28  ;;  %v5400_v9 = vsel %vm2692_vm8, %v5372_v21, %v5399_v38  ;;  %v4607_v30 = vld [vmem:[#allocation13 + $0xe8] sm:$0xff]  ;;  %v4621_v40 = vld [vmem:[#allocation13 + $0x158] sm:$0xff]  ;;  %v4618_v21 = vld [vmem:[#allocation13 + $0x140] sm:$0xff] }
 0x545   : > { %v5328_v16 = vrot.slane %v9942_v29, %v8599_v27  ;;  %v5352_v41 = vrot.slane %v9958_v19, %v8599_v27  ;;  %v5401_v50 = vsel %vm2694_vm9, %v5380_v45, %v5400_v9  ;;  %v6818_v36 = vpack.c.bf16 %v4600_v17, %v4598_v20  ;;  %v4620_v45 = vld [vmem:[#allocation13 + $0x150] sm:$0xff]  ;;  %v4623_v25 = vld [vmem:[#allocation13 + $0x168] sm:$0xff]  ;;  %v4622_v46 = vld [vmem:[#allocation13 + $0x160] sm:$0xff] }
 0x546   : > { %v10013_v54 = vsel %vm2696_vm10, %v5388_v12, %v5401_v50  ;;  %v5360_v2 = vrot.slane %v9966_v56, %v8599_v27  ;;  %v6820_v28 = vpack.c.bf16 %v4605_v4, %v4603_v0  ;;  %v5368_v8 = vrot.slane %v4569_v55, %v8599_v27  ;;  %v4615_v55 = vld [vmem:[#allocation13 + $0x128] sm:$0xff]  ;;  %v4629_v20 = vld [vmem:[#allocation13 + $0x198] sm:$0xff]  ;;  %v4626_v38 = vld [vmem:[#allocation13 + $0x180] sm:$0xff] }
 0x547   : > { %6815 = vmatpush1.bf16.msra.mxu0 %v6814_v5  ;;  %v5389_v29 = vsel %vm4779_vm13, %v5336_v53, %v5328_v16  ;;  %v5376_v19 = vrot.slane %v4573_v48, %v8599_v27  ;;  %v5384_v58 = vrot.slane %v4577_v33, %v8599_v27  ;;  %v6822_v23 = vpack.c.bf16 %v4604_v24, %v4602_v35  ;;  %v4617_v48 = vld [vmem:[#allocation13 + $0x138] sm:$0xff]  ;;  %v4624_v53 = vld [vmem:[#allocation13 + $0x170] sm:$0xff]  ;;  %v4631_v0 = vld [vmem:[#allocation13 + $0x1a8] sm:$0xff] }
 0x548   : > { %6817 = vmatprep.subr.bf16.mxu0 %v6816_v26  ;;  %v5390_v7 = vsel %vm2686_vm5, %v5344_v60, %v5389_v29  ;;  %v6824_v56 = vpack.c.bf16 %v4609_v13, %v4607_v30  ;;  %v6826_v42 = vpack.c.bf16 %v4608_v47, %v4606_v11  ;;  %v6828_v15 = vpack.c.bf16 %v4613_v6, %v4611_v37  ;;  %v4625_v5 = vld [vmem:[#allocation13 + $0x178] sm:$0xff]  ;;  %v4627_v26 = vld [vmem:[#allocation13 + $0x188] sm:$0xff]  ;;  %v4628_v60 = vld [vmem:[#allocation13 + $0x190] sm:$0xff] }
 0x549   : > { %v5391_v3 = vsel %vm2688_vm6, %v5352_v41, %v5390_v7  ;;  %v6830_v51 = vpack.c.bf16 %v4612_v34, %v4610_v31  ;;  %v6832_v14 = vpack.c.bf16 %v4617_v48, %v4615_v55  ;;  %v6834_v18 = vpack.c.bf16 %v4616_v1, %v4614_v10  ;;  %v4633_v4 = vld [vmem:[#allocation13 + $0x1b8] sm:$0xff]  ;;  %v4630_v16 = vld [vmem:[#allocation13 + $0x1a0] sm:$0xff]  ;;  %v4632_v41 = vld [vmem:[#allocation13 + $0x1b0] sm:$0xff] }
 0x54a   : > { %v5392_v61 = vsel %vm2690_vm7, %v5360_v2, %v5391_v3  ;;  %v6836_v43 = vpack.c.bf16 %v4621_v40, %v4619_v32  ;;  %v6838_v52 = vpack.c.bf16 %v4620_v45, %v4618_v21  ;;  %v6840_v33 = vpack.c.bf16 %v4625_v5, %v4623_v25  ;;  %v4635_v50 = vld [vmem:[#allocation13 + $0x1c8] sm:$0xff]  ;;  %v4634_v35 = vld [vmem:[#allocation13 + $0x1c0] sm:$0xff]  ;;  %v4636_v24 = vld [vmem:[#allocation13 + $0x1d0] sm:$0xff] }
 0x54b   : > { %6819 = vmatpush1.bf16.msra.mxu0 %v6818_v36  ;;  %v5393_v39 = vsel %vm2692_vm8, %v5368_v8, %v5392_v61  ;;  %v6842_v17 = vpack.c.bf16 %v4624_v53, %v4622_v46  ;;  %v6844_v62 = vpack.c.bf16 %v4629_v20, %v4627_v26  ;;  %v6846_v12 = vpack.c.bf16 %v4628_v60, %v4626_v38  ;;  %v4637_v36 = vld [vmem:[#allocation13 + $0x1d8] sm:$0xff]  ;;  %v4639_v8 = vld [vmem:[#allocation13 + $0x1e8] sm:$0xff]  ;;  %v4640_v7 = vld [vmem:[#allocation13 + $0x1f0] sm:$0xff] }
 0x54c   : > { %6821 = vmatprep.subr.bf16.mxu0 %v6820_v28  ;;  %v5394_v49 = vsel %vm2694_vm9, %v5376_v19, %v5393_v39  ;;  %v6848_v9 = vpack.c.bf16 %v4633_v4, %v4631_v0  ;;  %v6850_v2 = vpack.c.bf16 %v4632_v41, %v4630_v16  ;;  %v6852_v28 = vpack.c.bf16 %v4637_v36, %v4635_v50  ;;  %v4641_v29 = vld [vmem:[#allocation13 + $0x1f8] sm:$0xff]  ;;  %v4638_v19 = vld [vmem:[#allocation13 + $0x1e0] sm:$0xff]  ;;  %v5029_v11 = vld [vmem:[#allocation13 + $0x410] sm:$0xff] }
 0x54d   : > { %v10027_v59 = vsel %vm2696_vm10, %v5384_v58, %v5394_v49  ;;  %v6854_v30 = vpack.c.bf16 %v4636_v24, %v4634_v35  ;;  %v6856_v13 = vpack.c.bf16 %v4641_v29, %v4639_v8  ;;  %v5028_v58 = vld [vmem:[#allocation13 + $0x408] sm:$0xff]  ;;  %v5030_v3 = vld [vmem:[#allocation13 + $0x418] sm:$0xff]  ;;  %v5031_v49 = vld [vmem:[#allocation13 + $0x420] sm:$0xff] }
 0x54e   : > { %v6860_v61 = vpack.c.bf16 %v5030_v3, %v5028_v58  ;;  %v5032_v47 = vld [vmem:[#allocation13 + $0x428] sm:$0xff]  ;;  %v5034_v39 = vld [vmem:[#allocation13 + $0x438] sm:$0xff]  ;;  %v5035_v34 = vld [vmem:[#allocation13 + $0x440] sm:$0xff] }
 0x54f   : > { %6823 = vmatpush1.bf16.msra.mxu0 %v6822_v23  ;;  %v6858_v23 = vpack.c.bf16 %v4640_v7, %v4638_v19  ;;  %v6864_v6 = vpack.c.bf16 %v5034_v39, %v5032_v47  ;;  %v5038_v31 = vld [vmem:[#allocation13 + $0x458] sm:$0xff]  ;;  %v5037_v55 = vld [vmem:[#allocation13 + $0x450] sm:$0xff]  ;;  %v5510_v48 = vld [vmem:[#allocation16 + $0x80] sm:$0xff] }
 0x550   : > { %6825 = vmatprep.subr.bf16.mxu0 %v6824_v56  ;;  %v5027_v56 = vld [vmem:[#allocation13 + $0x400] sm:$0xff]  ;;  %v5495_v32 = vld [vmem:[#allocation16 + $0x8] sm:$0xff]  ;;  %v5512_v40 = vld [vmem:[#allocation16 + $0x90] sm:$0xff] }
 0x551   : > { %v6862_v37 = vpack.c.bf16 %v5029_v11, %v5027_v56  ;;  %v5496_v25 = vld [vmem:[#allocation16 + $0x10] sm:$0xff]  ;;  %v5497_v5 = vld [vmem:[#allocation16 + $0x18] sm:$0xff]  ;;  %v5515_v46 = vld [vmem:[#allocation16 + $0xa8] sm:$0xff] }
 0x552   : > { %v6994_v53 = vpack.c.bf16 %v5497_v5, %v5496_v25  ;;  %v5039_v26 = vld [vmem:[#allocation13 + $0x460] sm:$0xff]  ;;  %v5041_v60 = vld [vmem:[#allocation13 + $0x470] sm:$0xff] }
 0x553   : > { %6827 = vmatpush1.bf16.msra.mxu0 %v6826_v42  ;;  %v5033_v42 = vld [vmem:[#allocation13 + $0x430] sm:$0xff]  ;;  %v5517_v4 = vld [vmem:[#allocation16 + $0xb8] sm:$0xff]  ;;  %v6874_v41 = vpack.c.bf16 %v5041_v60, %v5039_v26  ;;  %v5518_v8 = vld [vmem:[#allocation16 + $0xc0] sm:$0xff] }
 0x554   : > { %6829 = vmatprep.subr.bf16.mxu0 %v6828_v15  ;;  %v5036_v15 = vld [vmem:[#allocation13 + $0x448] sm:$0xff]  ;;  %v6866_v10 = vpack.c.bf16 %v5033_v42, %v5031_v49  ;;  %v5516_v0 = vld [vmem:[#allocation16 + $0xb0] sm:$0xff]  ;;  %v5043_v50 = vld [vmem:[#allocation13 + $0x480] sm:$0xff] }
 0x555   : > { %v7000_v36 = vpack.c.bf16 %v5517_v4, %v5516_v0  ;;  %v5045_v24 = vld [vmem:[#allocation13 + $0x490] sm:$0xff]  ;;  %v5047_v58 = vld [vmem:[#allocation13 + $0x4a0] sm:$0xff] }
 0x556   : > { %v5519_v29 = vld [vmem:[#allocation16 + $0xc8] sm:$0xff]  ;;  %v6878_v7 = vpack.c.bf16 %v5045_v24, %v5043_v50  ;;  %v5520_v47 = vld [vmem:[#allocation16 + $0xd0] sm:$0xff]  ;;  %v5521_v39 = vld [vmem:[#allocation16 + $0xd8] sm:$0xff] }
 0x557   : > { %6831 = vmatpush1.bf16.msra.mxu0 %v6830_v51  ;;  %v5511_v51 = vld [vmem:[#allocation16 + $0x88] sm:$0xff]  ;;  %v7004_v3 = vpack.c.bf16 %v5519_v29, %v5518_v8  ;;  %v5055_v5 = vld [vmem:[#allocation13 + $0x4e0] sm:$0xff] }
 0x558   : > { %6833 = vmatprep.subr.bf16.mxu0 %v6832_v14  ;;  %v5494_v14 = vld [vmem:[#allocation16] sm:$0xff]  ;;  %v6988_v1 = vpack.c.bf16 %v5511_v51, %v5510_v48  ;;  %v5049_v11 = vld [vmem:[#allocation13 + $0x4b0] sm:$0xff] }
 0x559   : > { %v6990_v21 = vpack.c.bf16 %v5495_v32, %v5494_v14  ;;  %v6882_v42 = vpack.c.bf16 %v5049_v11, %v5047_v58  ;;  %v5053_v51 = vld [vmem:[#allocation13 + $0x4d0] sm:$0xff]  ;;  %v5522_v14 = vld [vmem:[#allocation16 + $0xe0] sm:$0xff]  ;;  %v5058_v32 = vld [vmem:[#allocation13 + $0x4f8] sm:$0xff] }
 0x55a   : > { %6989 = vmatprep.subr.bf16.mxu1 %v6988_v1  ;;  %v5056_v1 = vld [vmem:[#allocation13 + $0x4e8] sm:$0xff]  ;;  %v5059_v26 = vld [vmem:[#allocation13 + $0x500] sm:$0xff]  ;;  %v5065_v4 = vld [vmem:[#allocation13 + $0x530] sm:$0xff] }
 0x55b   : > { %6835 = vmatpush1.bf16.msra.mxu0 %v6834_v18  ;;  %v5513_v18 = vld [vmem:[#allocation16 + $0x98] sm:$0xff]  ;;  %6991 = vmatpush3.bf16.msra.mxu1 %v6990_v21  ;;  %v5506_v21 = vld [vmem:[#allocation16 + $0x60] sm:$0xff]  ;;  %v6888_v25 = vpack.c.bf16 %v5058_v32, %v5056_v1  ;;  %v5073_v29 = vld [vmem:[#allocation13 + $0x570] sm:$0xff] }
 0x55c   : > { %6837 = vmatprep.subr.bf16.mxu0 %v6836_v43  ;;  %v6868_v43 = vpack.c.bf16 %v5038_v31, %v5036_v15  ;;  %v6992_v45 = vpack.c.bf16 %v5513_v18, %v5512_v40  ;;  %v5051_v15 = vld [vmem:[#allocation13 + $0x4c0] sm:$0xff]  ;;  %v7008_v31 = vpack.c.bf16 %v5521_v39, %v5520_v47  ;;  %v5081_v39 = vld [vmem:[#allocation13 + $0x5b0] sm:$0xff]  ;;  %v5254_v1 = vld [vmem:[#allocation13 + $0x608] sm:$0xff] }
 0x55d   : > { %v6886_v18 = vpack.c.bf16 %v5053_v51, %v5051_v15  ;;  %v5063_v0 = vld [vmem:[#allocation13 + $0x520] sm:$0xff]  ;;  %v5256_v32 = vld [vmem:[#allocation13 + $0x618] sm:$0xff] }
 0x55e   : > { %6993 = vmatprep.subr.bf16.mxu1 %v6992_v45  ;;  %v5507_v45 = vld [vmem:[#allocation16 + $0x68] sm:$0xff]  ;;  %v5067_v50 = vld [vmem:[#allocation13 + $0x540] sm:$0xff] }
 0x55f   : > { %6839 = vmatpush1.bf16.msra.mxu0 %v6838_v52  ;;  %v5040_v52 = vld [vmem:[#allocation13 + $0x468] sm:$0xff]  ;;  %6995 = vmatpush3.bf16.msra.mxu1 %v6994_v53  ;;  %v5071_v8 = vld [vmem:[#allocation13 + $0x560] sm:$0xff] }
 0x560   : > { %6841 = vmatprep.subr.bf16.mxu0 %v6840_v33  ;;  %v5042_v33 = vld [vmem:[#allocation13 + $0x478] sm:$0xff]  ;;  %v5075_v58 = vld [vmem:[#allocation13 + $0x580] sm:$0xff] }
 0x561   : > { %v6872_v38 = vpack.c.bf16 %v5042_v33, %v5040_v52  ;;  %v5060_v52 = vld [vmem:[#allocation13 + $0x508] sm:$0xff]  ;;  %v5062_v33 = vld [vmem:[#allocation13 + $0x518] sm:$0xff]  ;;  %v5079_v47 = vld [vmem:[#allocation13 + $0x5a0] sm:$0xff] }
 0x562   : > { %v5083_v15 = vld [vmem:[#allocation13 + $0x5c0] sm:$0xff] }
 0x563   : > { %6843 = vmatpush1.bf16.msra.mxu0 %v6842_v17  ;;  %v5498_v17 = vld [vmem:[#allocation16 + $0x20] sm:$0xff] }
 0x564   : > { %6845 = vmatprep.subr.bf16.mxu0 %v6844_v62  ;;  %v5499_v62 = vld [vmem:[#allocation16 + $0x28] sm:$0xff] }
 0x565   : > { %v6998_v16 = vpack.c.bf16 %v5499_v62, %v5498_v17  ;;  %v5064_v17 = vld [vmem:[#allocation13 + $0x528] sm:$0xff]  ;;  %v5066_v62 = vld [vmem:[#allocation13 + $0x538] sm:$0xff] }
 0x566   : > { %v6896_v60 = vpack.c.bf16 %v5066_v62, %v5064_v17  ;;  %v5263_v17 = vld [vmem:[#allocation13 + $0x650] sm:$0xff]  ;;  %v5266_v62 = vld [vmem:[#allocation13 + $0x668] sm:$0xff] }
 0x567   : > { %6847 = vmatpush1.bf16.msra.mxu0 %v6846_v12  ;;  %v5044_v12 = vld [vmem:[#allocation13 + $0x488] sm:$0xff] }
 0x568   : > { %6849 = vmatprep.subr.bf16.mxu0 %v6848_v9  ;;  %v5046_v9 = vld [vmem:[#allocation13 + $0x498] sm:$0xff] }
 0x569   : > { %v6876_v35 = vpack.c.bf16 %v5046_v9, %v5044_v12  ;;  %v5068_v12 = vld [vmem:[#allocation13 + $0x548] sm:$0xff]  ;;  %v5070_v9 = vld [vmem:[#allocation13 + $0x558] sm:$0xff] }
 0x56b   : > { %6851 = vmatpush1.bf16.msra.mxu0 %v6850_v2  ;;  %v5500_v2 = vld [vmem:[#allocation16 + $0x30] sm:$0xff] }
 0x56c   : > { %6853 = vmatprep.subr.bf16.mxu0 %v6852_v28  ;;  %v5501_v28 = vld [vmem:[#allocation16 + $0x38] sm:$0xff] }
 0x56d   : > { %v7002_v19 = vpack.c.bf16 %v5501_v28, %v5500_v2  ;;  %v5072_v2 = vld [vmem:[#allocation13 + $0x568] sm:$0xff]  ;;  %v5074_v28 = vld [vmem:[#allocation13 + $0x578] sm:$0xff] }
 0x56e   : > { %v6904_v24 = vpack.c.bf16 %v5074_v28, %v5072_v2  ;;  %v5276_v2 = vld [vmem:[#allocation13 + $0x6b8] sm:$0xff] }
 0x56f   : > { %6855 = vmatpush1.bf16.msra.mxu0 %v6854_v30  ;;  %v5048_v30 = vld [vmem:[#allocation13 + $0x4a8] sm:$0xff] }
 0x570   : > { %6857 = vmatprep.subr.bf16.mxu0 %v6856_v13  ;;  %v5050_v13 = vld [vmem:[#allocation13 + $0x4b8] sm:$0xff] }
 0x571   : > { %v6880_v56 = vpack.c.bf16 %v5050_v13, %v5048_v30  ;;  %v5076_v30 = vld [vmem:[#allocation13 + $0x588] sm:$0xff]  ;;  %v5078_v13 = vld [vmem:[#allocation13 + $0x598] sm:$0xff] }
 0x573   : > { %6859 = vmatpush1.bf16.msra.mxu0 %v6858_v23  ;;  %v5502_v23 = vld [vmem:[#allocation16 + $0x40] sm:$0xff] }
 0x574   : > { %6861 = vmatprep.subr.bf16.mxu0 %v6860_v61  ;;  %v5503_v61 = vld [vmem:[#allocation16 + $0x48] sm:$0xff] }
 0x575   : > { %v7006_v49 = vpack.c.bf16 %v5503_v61, %v5502_v23  ;;  %v5080_v23 = vld [vmem:[#allocation13 + $0x5a8] sm:$0xff]  ;;  %v5082_v61 = vld [vmem:[#allocation13 + $0x5b8] sm:$0xff] }
 0x576   : > { %5020 = vmatmul.mubr.f32.vlgmr.msra.gmra.mrb[48].mxu0 %v9911_v63  ;;  %v5514_v63 = vld [vmem:[#allocation16 + $0xa0] sm:$0xff]  ;;  %v6912_v11 = vpack.c.bf16 %v5082_v61, %v5080_v23  ;;  %v5284_v23 = vld [vmem:[#allocation13 + $0x6f8] sm:$0xff] }
 0x577   : > { %6863 = vmatpush1.bf16.msra.mxu0 %v6862_v37  ;;  %5243 = vmatprep.mubr.f32.mxu0 %v9954_v22  ;;  %v6870_v22 = vpack.c.bf16 %v5037_v55, %v5035_v34  ;;  %v6996_v20 = vpack.c.bf16 %v5515_v46, %v5514_v63  ;;  %v5052_v37 = vld [vmem:[#allocation13 + $0x4c8] sm:$0xff]  ;;  %v5504_v34 = vld [vmem:[#allocation16 + $0x50] sm:$0xff]  ;;  %v5505_v55 = vld [vmem:[#allocation16 + $0x58] sm:$0xff]  ;;  %v7014_v46 = vpack.c.bf16 %v5507_v45, %v5506_v21 }
 0x578   : > { %6865 = vmatprep.subr.bf16.mxu0 %v6864_v6  ;;  %v5054_v6 = vld [vmem:[#allocation13 + $0x4d8] sm:$0xff]  ;;  %v7010_v40 = vpack.c.bf16 %v5505_v55, %v5504_v34  ;;  %v5057_v63 = vld [vmem:[#allocation13 + $0x4f0] sm:$0xff]  ;;  %v5088_v34 = vld [vmem:[#allocation13 + $0x5e8] sm:$0xff] }
 0x579   : > { %6997 = vmatprep.subr.bf16.mxu1 %v6996_v20  ;;  %v6884_v48 = vpack.c.bf16 %v5054_v6, %v5052_v37  ;;  %v6890_v53 = vpack.c.bf16 %v5057_v63, %v5055_v5  ;;  %v5061_v20 = vld [vmem:[#allocation13 + $0x510] sm:$0xff]  ;;  %v5084_v37 = vld [vmem:[#allocation13 + $0x5c8] sm:$0xff]  ;;  %v5086_v6 = vld [vmem:[#allocation13 + $0x5d8] sm:$0xff] }
 0x57a   : > { %6999 = vmatpush3.bf16.msra.mxu1 %v6998_v16  ;;  %v6898_v16 = vpack.c.bf16 %v5065_v4, %v5063_v0  ;;  %v5090_v55 = vld [vmem:[#allocation13 + $0x5f8] sm:$0xff]  ;;  %v5255_v21 = vld [vmem:[#allocation13 + $0x610] sm:$0xff]  ;;  %v5258_v45 = vld [vmem:[#allocation13 + $0x628] sm:$0xff] }
 0x57b   : > { %6867 = vmatpush1.bf16.msra.mxu0 %v6866_v10  ;;  %7001 = vmatprep.subr.bf16.mxu1 %v7000_v36  ;;  %v5523_v10 = vld [vmem:[#allocation16 + $0xe8] sm:$0xff]  ;;  %v6920_v51 = vpack.c.bf16 %v5090_v55, %v5088_v34  ;;  %v5265_v4 = vld [vmem:[#allocation13 + $0x660] sm:$0xff]  ;;  %v5292_v34 = vld [vmem:[#allocation13 + $0x738] sm:$0xff] }
 0x57c   : > { %6869 = vmatprep.subr.bf16.mxu0 %v6868_v43  ;;  %v7012_v43 = vpack.c.bf16 %v5523_v10, %v5522_v14  ;;  %v5069_v36 = vld [vmem:[#allocation13 + $0x550] sm:$0xff]  ;;  %v5087_v14 = vld [vmem:[#allocation13 + $0x5e0] sm:$0xff] }
 0x57d   : > { %v5089_v10 = vld [vmem:[#allocation13 + $0x5f0] sm:$0xff] }
 0x57e   : > { %7003 = vmatpush3.bf16.msra.mxu1 %v7002_v19  ;;  %v6906_v19 = vpack.c.bf16 %v5073_v29, %v5071_v8  ;;  %v5275_v8 = vld [vmem:[#allocation13 + $0x6b0] sm:$0xff]  ;;  %v5278_v29 = vld [vmem:[#allocation13 + $0x6c8] sm:$0xff] }
 0x57f   : > { %6871 = vmatpush1.bf16.msra.mxu0 %v6870_v22  ;;  %7005 = vmatprep.subr.bf16.mxu1 %v7004_v3  ;;  %v6892_v22 = vpack.c.bf16 %v5062_v33, %v5060_v52  ;;  %v5077_v3 = vld [vmem:[#allocation13 + $0x590] sm:$0xff]  ;;  %v5257_v52 = vld [vmem:[#allocation13 + $0x620] sm:$0xff] }
 0x580   : > { %6873 = vmatprep.subr.bf16.mxu0 %v6872_v38  ;;  %v6894_v38 = vpack.c.bf16 %v5061_v20, %v5059_v26  ;;  %v5259_v33 = vld [vmem:[#allocation13 + $0x630] sm:$0xff]  ;;  %v5261_v20 = vld [vmem:[#allocation13 + $0x640] sm:$0xff] }
 0x582   : > { %7007 = vmatpush3.bf16.msra.mxu1 %v7006_v49  ;;  %v6914_v49 = vpack.c.bf16 %v5081_v39, %v5079_v47  ;;  %v5283_v47 = vld [vmem:[#allocation13 + $0x6f0] sm:$0xff]  ;;  %v5286_v39 = vld [vmem:[#allocation13 + $0x708] sm:$0xff] }
 0x583   : > { %6875 = vmatpush1.bf16.msra.mxu0 %v6874_v41  ;;  %7009 = vmatprep.subr.bf16.mxu1 %v7008_v31  ;;  %v6900_v41 = vpack.c.bf16 %v5070_v9, %v5068_v12  ;;  %v5085_v31 = vld [vmem:[#allocation13 + $0x5d0] sm:$0xff]  ;;  %v5270_v9 = vld [vmem:[#allocation13 + $0x688] sm:$0xff] }
 0x584   : > { %6877 = vmatprep.subr.bf16.mxu0 %v6876_v35  ;;  %v6902_v35 = vpack.c.bf16 %v5069_v36, %v5067_v50  ;;  %v5267_v12 = vld [vmem:[#allocation13 + $0x670] sm:$0xff]  ;;  %v5274_v36 = vld [vmem:[#allocation13 + $0x6a8] sm:$0xff] }
 0x585   : > { %v5271_v50 = vld [vmem:[#allocation13 + $0x690] sm:$0xff] }
 0x586   : > { %7011 = vmatpush3.bf16.msra.mxu1 %v7010_v40  ;;  %v6922_v40 = vpack.c.bf16 %v5089_v10, %v5087_v14  ;;  %v5291_v14 = vld [vmem:[#allocation13 + $0x730] sm:$0xff]  ;;  %v5294_v10 = vld [vmem:[#allocation13 + $0x748] sm:$0xff] }
 0x587   : > { %6879 = vmatpush1.bf16.msra.mxu0 %v6878_v7  ;;  %7013 = vmatprep.subr.bf16.mxu1 %v7012_v43  ;;  %v6908_v7 = vpack.c.bf16 %v5078_v13, %v5076_v30  ;;  %v5253_v43 = vld [vmem:[#allocation13 + $0x600] sm:$0xff]  ;;  %v5280_v30 = vld [vmem:[#allocation13 + $0x6d8] sm:$0xff] }
 0x588   : > { %6881 = vmatprep.subr.bf16.mxu0 %v6880_v56  ;;  %v6910_v56 = vpack.c.bf16 %v5077_v3, %v5075_v58  ;;  %v6926_v5 = vpack.c.bf16 %v5255_v21, %v5253_v43  ;;  %v5279_v58 = vld [vmem:[#allocation13 + $0x6d0] sm:$0xff]  ;;  %v5282_v3 = vld [vmem:[#allocation13 + $0x6e8] sm:$0xff] }
 0x589   : > { %v5295_v43 = vld [vmem:[#allocation13 + $0x750] sm:$0xff]  ;;  %v5298_v21 = vld [vmem:[#allocation13 + $0x768] sm:$0xff] }
 0x58a   : > { %7015 = vmatpush3.bf16.msra.mxu1 %v7014_v46  ;;  %v5262_v46 = vld [vmem:[#allocation13 + $0x648] sm:$0xff] }
 0x58b   : > { %6883 = vmatpush1.bf16.msra.mxu0 %v6882_v42  ;;  %v6916_v42 = vpack.c.bf16 %v5086_v6, %v5084_v37  ;;  %v5288_v37 = vld [vmem:[#allocation13 + $0x718] sm:$0xff] }
 0x58c   : > { %6885 = vmatprep.subr.bf16.mxu0 %v6884_v48  ;;  %v6918_v48 = vpack.c.bf16 %v5085_v31, %v5083_v15  ;;  %v5287_v15 = vld [vmem:[#allocation13 + $0x710] sm:$0xff]  ;;  %v5290_v31 = vld [vmem:[#allocation13 + $0x728] sm:$0xff] }
 0x58f   : > { %6887 = vmatpush1.bf16.msra.mxu0 %v6886_v18  ;;  %v6924_v18 = vpack.c.bf16 %v5256_v32, %v5254_v1  ;;  %v5296_v1 = vld [vmem:[#allocation13 + $0x758] sm:$0xff] }
 0x590   : > { %6889 = vmatprep.subr.bf16.mxu0 %v6888_v25  ;;  %v5260_v25 = vld [vmem:[#allocation13 + $0x638] sm:$0xff] }
 0x591   : > { %v6928_v63 = vpack.c.bf16 %v5260_v25, %v5258_v45  ;;  %v5300_v45 = vld [vmem:[#allocation13 + $0x778] sm:$0xff] }
 0x593   : > { %6891 = vmatpush1.bf16.msra.mxu0 %v6890_v53  ;;  %v5264_v53 = vld [vmem:[#allocation13 + $0x658] sm:$0xff] }
 0x594   : > { %6893 = vmatprep.subr.bf16.mxu0 %v6892_v22  ;;  %v6930_v22 = vpack.c.bf16 %v5259_v33, %v5257_v52  ;;  %v6932_v26 = vpack.c.bf16 %v5264_v53, %v5262_v46  ;;  %v5299_v52 = vld [vmem:[#allocation13 + $0x770] sm:$0xff]  ;;  %v5302_v33 = vld [vmem:[#allocation13 + $0x788] sm:$0xff]  ;;  %v5304_v46 = vld [vmem:[#allocation13 + $0x798] sm:$0xff] }
 0x597   : > { %6895 = vmatpush1.bf16.msra.mxu0 %v6894_v38  ;;  %v5268_v38 = vld [vmem:[#allocation13 + $0x678] sm:$0xff] }
 0x598   : > { %6897 = vmatprep.subr.bf16.mxu0 %v6896_v60  ;;  %v6934_v60 = vpack.c.bf16 %v5263_v17, %v5261_v20  ;;  %v6936_v0 = vpack.c.bf16 %v5268_v38, %v5266_v62  ;;  %v5303_v20 = vld [vmem:[#allocation13 + $0x790] sm:$0xff]  ;;  %v5306_v17 = vld [vmem:[#allocation13 + $0x7a8] sm:$0xff]  ;;  %v5308_v62 = vld [vmem:[#allocation13 + $0x7b8] sm:$0xff] }
 0x59b   : > { %6899 = vmatpush1.bf16.msra.mxu0 %v6898_v16  ;;  %v5272_v16 = vld [vmem:[#allocation13 + $0x698] sm:$0xff] }
 0x59c   : > { %6901 = vmatprep.subr.bf16.mxu0 %v6900_v41  ;;  %v6940_v41 = vpack.c.bf16 %v5272_v16, %v5270_v9  ;;  %v5312_v9 = vld [vmem:[#allocation13 + $0x7d8] sm:$0xff] }
 0x59f   : > { %6903 = vmatpush1.bf16.msra.mxu0 %v6902_v35  ;;  %v6944_v35 = vpack.c.bf16 %v5276_v2, %v5274_v36  ;;  %v5316_v36 = vld [vmem:[#allocation13 + $0x7f8] sm:$0xff] }
 0x5a0   : > { %6905 = vmatprep.subr.bf16.mxu0 %v6904_v24  ;;  %v5273_v24 = vld [vmem:[#allocation13 + $0x6a0] sm:$0xff] }
 0x5a1   : > { %v6946_v13 = vpack.c.bf16 %v5275_v8, %v5273_v24  ;;  %v5315_v24 = vld [vmem:[#allocation13 + $0x7f0] sm:$0xff] }
 0x5a3   : > { %6907 = vmatpush1.bf16.msra.mxu0 %v6906_v19  ;;  %v6948_v19 = vpack.c.bf16 %v5280_v30, %v5278_v29  ;;  %v5524_v29 = vld [vmem:[#allocation16 + $0xf0] sm:$0xff]  ;;  %v5525_v30 = vld [vmem:[#allocation16 + $0xf8] sm:$0xff] }
 0x5a4   : > { %6909 = vmatprep.subr.bf16.mxu0 %v6908_v7  ;;  %v5277_v7 = vld [vmem:[#allocation13 + $0x6c0] sm:$0xff] }
 0x5a5   : > { %v6950_v61 = vpack.c.bf16 %v5279_v58, %v5277_v7  ;;  %v5509_v7 = vld [vmem:[#allocation16 + $0x78] sm:$0xff] }
 0x5a7   : > { %6911 = vmatpush1.bf16.msra.mxu0 %v6910_v56  ;;  %v6952_v56 = vpack.c.bf16 %v5284_v23, %v5282_v3  ;;  %v7840_v3 = vmov 0.0|0.0   ;;  %v5478_v23 = vld [vmem:[#allocation15] sm:$0x3] }
 0x5a8   : > { %6913 = vmatprep.subr.bf16.mxu0 %v6912_v11  ;;  %v5281_v11 = vld [vmem:[#allocation13 + $0x6e0] sm:$0xff] }
 0x5a9   : > { %v6954_v6 = vpack.c.bf16 %v5283_v47, %v5281_v11 }
 0x5ab   : > { %6915 = vmatpush1.bf16.msra.mxu0 %v6914_v49  ;;  %v6956_v49 = vpack.c.bf16 %v5288_v37, %v5286_v39  ;;  %v5605_v37 = vld [vmem:[#allocation19 + $0x8] sm:$0xff] }
 0x5ac   : > { %6917 = vmatprep.subr.bf16.mxu0 %v6916_v42  ;;  %v5285_v42 = vld [vmem:[#allocation13 + $0x700] sm:$0xff] }
 0x5ad   : > { %v6958_v55 = vpack.c.bf16 %v5287_v15, %v5285_v42 }
 0x5af   : > { %6919 = vmatpush1.bf16.msra.mxu0 %v6918_v48  ;;  %v6960_v48 = vpack.c.bf16 %v5292_v34, %v5290_v31  ;;  %v5606_v31 = vld [vmem:[#allocation19 + $0x10] sm:$0xff]  ;;  %v5607_v34 = vld [vmem:[#allocation19 + $0x18] sm:$0xff] }
 0x5b0   : > { %6921 = vmatprep.subr.bf16.mxu0 %v6920_v51  ;;  %v5289_v51 = vld [vmem:[#allocation13 + $0x720] sm:$0xff] }
 0x5b1   : > { %v6962_v32 = vpack.c.bf16 %v5291_v14, %v5289_v51  ;;  %v5610_v51 = vld [vmem:[#allocation19 + $0x30] sm:$0xff]  ;;  %v5611_v14 = vld [vmem:[#allocation19 + $0x38] sm:$0xff] }
 0x5b3   : > { %6923 = vmatpush1.bf16.msra.mxu0 %v6922_v40  ;;  %v6964_v40 = vpack.c.bf16 %v5296_v1, %v5294_v10  ;;  %v7030_v10 = vpack.c.bf16 %v5611_v14, %v5610_v51  ;;  %v5612_v1 = vld [vmem:[#allocation19 + $0x40] sm:$0xff] }
 0x5b4   : > { %6925 = vmatprep.subr.bf16.mxu0 %v6924_v18  ;;  %v5293_v18 = vld [vmem:[#allocation13 + $0x740] sm:$0xff] }
 0x5b5   : > { %v6966_v25 = vpack.c.bf16 %v5295_v43, %v5293_v18  ;;  %v5614_v18 = vld [vmem:[#allocation19 + $0x50] sm:$0xff]  ;;  %v5615_v43 = vld [vmem:[#allocation19 + $0x58] sm:$0xff] }
 0x5b6   : > { %5244 = vmatmul.mubr.f32.vlgmr.msra.gmra.mrb[48].mxu0 %v10003_v57  ;;  %v6938_v57 = vpack.c.bf16 %v5267_v12, %v5265_v4  ;;  %v5307_v4 = vld [vmem:[#allocation13 + $0x7b0] sm:$0xff]  ;;  %v5310_v12 = vld [vmem:[#allocation13 + $0x7c8] sm:$0xff] }
 0x5b7   : > { %6927 = vmatpush1.bf16.msra.mxu0 %v6926_v5  ;;  %5469 = vmatprep.mubr.f32.mxu0 %v10013_v54  ;;  %v5269_v54 = vld [vmem:[#allocation13 + $0x680] sm:$0xff]  ;;  %v6968_v5 = vpack.c.bf16 %v5300_v45, %v5298_v21  ;;  %v7036_v21 = vpack.c.bf16 %v5615_v43, %v5614_v18 }
 0x5b8   : > { %6929 = vmatprep.subr.bf16.mxu0 %v6928_v63  ;;  %v6942_v28 = vpack.c.bf16 %v5271_v50, %v5269_v54  ;;  %v5297_v63 = vld [vmem:[#allocation13 + $0x760] sm:$0xff]  ;;  %v5311_v54 = vld [vmem:[#allocation13 + $0x7d0] sm:$0xff]  ;;  %v5314_v50 = vld [vmem:[#allocation13 + $0x7e8] sm:$0xff] }
 0x5b9   : > { %v6970_v53 = vpack.c.bf16 %v5299_v52, %v5297_v63  ;;  %v5616_v45 = vld [vmem:[#allocation19 + $0x60] sm:$0xff]  ;;  %v5619_v52 = vld [vmem:[#allocation19 + $0x78] sm:$0xff] }
 0x5bb   : > { %6931 = vmatpush1.bf16.msra.mxu0 %v6930_v22  ;;  %v6972_v22 = vpack.c.bf16 %v5304_v46, %v5302_v33  ;;  %v10308_v33 = vmov 0.0  }
 0x5bc   : > { %6933 = vmatprep.subr.bf16.mxu0 %v6932_v26  ;;  %v5301_v26 = vld [vmem:[#allocation13 + $0x780] sm:$0xff] }
 0x5bd   : > { %v6974_v38 = vpack.c.bf16 %v5303_v20, %v5301_v26 }
 0x5bf   : > { %6935 = vmatpush1.bf16.msra.mxu0 %v6934_v60  ;;  %v6976_v60 = vpack.c.bf16 %v5308_v62, %v5306_v17  ;;  %v5698_v17 = vld [vmem:[#allocation22] sm:$0xff]  ;;  %v5699_v62 = vld [vmem:[#allocation22 + $0x8] sm:$0xff] }
 0x5c0   : > { %6937 = vmatprep.subr.bf16.mxu0 %v6936_v0  ;;  %v5305_v0 = vld [vmem:[#allocation13 + $0x7a0] sm:$0xff] }
 0x5c1   : > { %v6978_v16 = vpack.c.bf16 %v5307_v4, %v5305_v0  ;;  %v5700_v4 = vld [vmem:[#allocation22 + $0x10] sm:$0xff] }
 0x5c3   : > { %6939 = vmatpush1.bf16.msra.mxu0 %v6938_v57  ;;  %v6980_v57 = vpack.c.bf16 %v5312_v9, %v5310_v12  ;;  %v5701_v12 = vld [vmem:[#allocation22 + $0x18] sm:$0xff] }
 0x5c4   : > { %6941 = vmatprep.subr.bf16.mxu0 %v6940_v41  ;;  %v5309_v41 = vld [vmem:[#allocation13 + $0x7c0] sm:$0xff]  ;;  %v7048_v9 = vpack.c.bf16 %v5701_v12, %v5700_v4 }
 0x5c5   : > { %v6982_v2 = vpack.c.bf16 %v5311_v54, %v5309_v41  ;;  %v5704_v54 = vld [vmem:[#allocation22 + $0x30] sm:$0xff] }
 0x5c7   : > { %6943 = vmatpush1.bf16.msra.mxu0 %v6942_v28  ;;  %v6984_v28 = vpack.c.bf16 %v5316_v36, %v5314_v50  ;;  %v5705_v50 = vld [vmem:[#allocation22 + $0x38] sm:$0xff] }
 0x5c8   : > { %6945 = vmatprep.subr.bf16.mxu0 %v6944_v35  ;;  %v5313_v35 = vld [vmem:[#allocation13 + $0x7e0] sm:$0xff]  ;;  %v7054_v36 = vpack.c.bf16 %v5705_v50, %v5704_v54 }
 0x5c9   : > { %v6986_v8 = vpack.c.bf16 %v5315_v24, %v5313_v35  ;;  %v5708_v24 = vld [vmem:[#allocation22 + $0x50] sm:$0xff] }
 0x5cb   : > { %6947 = vmatpush1.bf16.msra.mxu0 %v6946_v13  ;;  %v5508_v13 = vld [vmem:[#allocation16 + $0x70] sm:$0xff] }
 0x5cc   : > { %6949 = vmatprep.subr.bf16.mxu0 %v6948_v19  ;;  %v7016_v19 = vpack.c.bf16 %v5525_v30, %v5524_v29  ;;  %v7018_v58 = vpack.c.bf16 %v5509_v7, %v5508_v13  ;;  %v5710_v30 = vld [vmem:[#allocation22 + $0x60] sm:$0xff]  ;;  %v5711_v13 = vld [vmem:[#allocation22 + $0x68] sm:$0xff]  ;;  %v5712_v7 = vld [vmem:[#allocation22 + $0x70] sm:$0xff] }
 0x5ce   : > { %7017 = vmatprep.subr.bf16.mxu1 %v7016_v19  ;;  %v7063_v19 = vpack.c.bf16 %v5711_v13, %v5710_v30 }
 0x5cf   : > { %6951 = vmatpush1.bf16.msra.mxu0 %v6950_v61  ;;  %7019 = vmatpush3.bf16.msra.mxu1 %v7018_v58  ;;  %v5483_v61 = vrot.slane %v5478_v23, %v8599_v27  ;;  %v5608_v27 = vld [vmem:[#allocation19 + $0x20] sm:$0xff] }
 0x5d0   : > { %6953 = vmatprep.subr.bf16.mxu0 %v6952_v56  ;;  %7020 = vmatprep.subr.bf16.mxu1 %v7840_v3  ;;  %v5487_v56 = vrot.slane %v5478_v23, %v10288_v44  ;;  %v5713_v58 = vld [vmem:[#allocation22 + $0x78] sm:$0xff] }
 0x5d1   : > { %v7066_v23 = vpack.c.bf16 %v5713_v58, %v5712_v7 }
 0x5d3   : > { %6955 = vmatpush1.bf16.msra.mxu0 %v6954_v6 }
 0x5d4   : > { %6957 = vmatprep.subr.bf16.mxu0 %v6956_v49 }
 0x5d7   : > { %6959 = vmatpush1.bf16.msra.mxu0 %v6958_v55  ;;  %v7024_v55 = vpack.c.bf16 %v5607_v34, %v5606_v31 }
 0x5d8   : > { %6961 = vmatprep.subr.bf16.mxu0 %v6960_v48  ;;  %v5609_v48 = vld [vmem:[#allocation19 + $0x28] sm:$0xff] }
 0x5d9   : > { %v7027_v44 = vpack.c.bf16 %v5609_v48, %v5608_v27 }
 0x5db   : > { %6963 = vmatpush1.bf16.msra.mxu0 %v6962_v32  ;;  %v5613_v32 = vld [vmem:[#allocation19 + $0x48] sm:$0xff] }
 0x5dc   : > { %6965 = vmatprep.subr.bf16.mxu0 %v6964_v40  ;;  %v7033_v40 = vpack.c.bf16 %v5613_v32, %v5612_v1 }
 0x5df   : > { %6967 = vmatpush1.bf16.msra.mxu0 %v6966_v25  ;;  %v5617_v25 = vld [vmem:[#allocation19 + $0x68] sm:$0xff] }
 0x5e0   : > { %6969 = vmatprep.subr.bf16.mxu0 %v6968_v5  ;;  %v5618_v5 = vld [vmem:[#allocation19 + $0x70] sm:$0xff]  ;;  %v7039_v63 = vpack.c.bf16 %v5617_v25, %v5616_v45 }
 0x5e1   : > { %v7042_v46 = vpack.c.bf16 %v5619_v52, %v5618_v5 }
 0x5e3   : > { %6971 = vmatpush1.bf16.msra.mxu0 %v6970_v53 }
 0x5e4   : > { %6973 = vmatprep.subr.bf16.mxu0 %v6972_v22  ;;  %v6152_v22 = vld [vmem:[#allocation18] ss:$0 sm:$0xff] }
 0x5e7   : > { %6975 = vmatpush1.bf16.msra.mxu0 %v6974_v38 }
 0x5e8   : > { %6977 = vmatprep.subr.bf16.mxu0 %v6976_v60  ;;  %v7045_v60 = vpack.c.bf16 %v5699_v62, %v5698_v17 }
 0x5eb   : > { %6979 = vmatpush1.bf16.msra.mxu0 %v6978_v16  ;;  %v5702_v16 = vld [vmem:[#allocation22 + $0x20] sm:$0xff] }
 0x5ec   : > { %6981 = vmatprep.subr.bf16.mxu0 %v6980_v57  ;;  %v5703_v57 = vld [vmem:[#allocation22 + $0x28] sm:$0xff] }
 0x5ed   : > { %v7051_v41 = vpack.c.bf16 %v5703_v57, %v5702_v16 }
 0x5ef   : > { %6983 = vmatpush1.bf16.msra.mxu0 %v6982_v2  ;;  %v5706_v2 = vld [vmem:[#allocation22 + $0x40] sm:$0xff] }
 0x5f0   : > { %6985 = vmatprep.subr.bf16.mxu0 %v6984_v28  ;;  %v5707_v28 = vld [vmem:[#allocation22 + $0x48] sm:$0xff] }
 0x5f1   : > { %v7057_v35 = vpack.c.bf16 %v5707_v28, %v5706_v2 }
 0x5f3   : > { %6987 = vmatpush1.bf16.msra.mxu0 %v6986_v8  ;;  %v5709_v8 = vld [vmem:[#allocation22 + $0x58] sm:$0xff] }
 0x5f4   : > { %v7060_v29 = vpack.c.bf16 %v5709_v8, %v5708_v24 }
 0x5f6   : > { %5470 = vmatmul.mubr.f32.vlgmr.msra.gmra.mrb[48].mxu0 %v10027_v59  ;;  %v5604_v59 = vld [vmem:[#allocation19] sm:$0xff] }
 0x5f7   : > { %v7021_v42 = vpack.c.bf16 %v5605_v37, %v5604_v59  ;;  %v6154_v59 = vld [vmem:[#allocation24] ss:$0 sm:$0xff] }
 0x6c9   : > { %v5471_v11 = vpop.f32.mrb[48].mxu0 }
 0x6ca   : > { %v5490_v47 = vadd.f32 %v5483_v61, %v5471_v11  ;;  %v5473_v39 = vpop.f32.mrb[49].mxu0  ;;  %v6153_v61 = vld [vmem:[#allocation21] ss:$0 sm:$0xff] }
 0x6cb   : > { %v5491_v6 = vadd.f32 %v5487_v56, %v5473_v39 }
 0x6cc   : > { %v5492_v15 = vmax.f32 %v5490_v47, 0.0 }
 0x6cd   : > { %v5493_v49 = vmax.f32 %v5491_v6, 0.0 }
 0x6cf   : > { %5597 = vmatprep.mubr.f32.mxu1 %v5493_v49 }
 0x6d0   : > { %5598 = vmatmul.mubr.f32.vlgmr.msra.gmra.mrb[64].mxu1 %v5492_v15 }
 0x6d1   : > { %7022 = vmatpush3.bf16.msra.mxu1 %v7021_v42  ;;  %6262 = vmatprep.mubr.msk.f32.mxu1 %vm7841_vm14, %v10308_v33 }
 0x6d2   : > { %7023 = vmatprep.subr.bf16.mxu1 %v7840_v3 }
 0x6d5   : > { %7025 = vmatpush3.bf16.msra.mxu1 %v7024_v55 }
 0x6d6   : > { %7026 = vmatprep.subr.bf16.mxu1 %v7840_v3 }
 0x6d9   : > { %7028 = vmatpush3.bf16.msra.mxu1 %v7027_v44 }
 0x6da   : > { %7029 = vmatprep.subr.bf16.mxu1 %v7840_v3 }
 0x6dd   : > { %7031 = vmatpush3.bf16.msra.mxu1 %v7030_v10 }
 0x6de   : > { %7032 = vmatprep.subr.bf16.mxu1 %v7840_v3 }
 0x6e1   : > { %7034 = vmatpush3.bf16.msra.mxu1 %v7033_v40 }
 0x6e2   : > { %7035 = vmatprep.subr.bf16.mxu1 %v7840_v3 }
 0x6e5   : > { %7037 = vmatpush3.bf16.msra.mxu1 %v7036_v21 }
 0x6e6   : > { %7038 = vmatprep.subr.bf16.mxu1 %v7840_v3 }
 0x6e9   : > { %7040 = vmatpush3.bf16.msra.mxu1 %v7039_v63 }
 0x6ea   : > { %7041 = vmatprep.subr.bf16.mxu1 %v7840_v3 }
 0x6ed   : > { %7043 = vmatpush3.bf16.msra.mxu1 %v7042_v46 }
 0x6ee   : > { %7044 = vmatprep.subr.bf16.mxu1 %v7840_v3 }
 0x7a3   : > { %v6193_v53 = vpop.f32.mrb[64].mxu1 }
 0x7a4   : > { %v6194_v26 = vpop.f32.mrb[65].mxu1 }
 0x7a5   : > { %v6195_v20 = vadd.f32 %v6194_v26, %v6193_v53 }
 0x7a7   : > { %v5600_v38 = vadd.f32 %v6195_v20, %v6152_v22 }
 0x7a9   : > { %v5603_v0 = vmax.f32 %v5600_v38, 0.0 }
 0x7ab   : > { %6263 = vmatmul.mubr.f32.vlgmr.msra.gmra.mrb[66].mxu1 %v5603_v0 }
 0x7ac   : > { %7046 = vmatpush3.bf16.msra.mxu1 %v7045_v60  ;;  %6297 = vmatprep.mubr.msk.f32.mxu1 %vm7841_vm14, %v10308_v33 }
 0x7ad   : > { %7047 = vmatprep.subr.bf16.mxu1 %v7840_v3 }
 0x7b0   : > { %7049 = vmatpush3.bf16.msra.mxu1 %v7048_v9 }
 0x7b1   : > { %7050 = vmatprep.subr.bf16.mxu1 %v7840_v3 }
 0x7b4   : > { %7052 = vmatpush3.bf16.msra.mxu1 %v7051_v41 }
 0x7b5   : > { %7053 = vmatprep.subr.bf16.mxu1 %v7840_v3 }
 0x7b8   : > { %7055 = vmatpush3.bf16.msra.mxu1 %v7054_v36 }
 0x7b9   : > { %7056 = vmatprep.subr.bf16.mxu1 %v7840_v3 }
 0x7bc   : > { %7058 = vmatpush3.bf16.msra.mxu1 %v7057_v35 }
 0x7bd   : > { %7059 = vmatprep.subr.bf16.mxu1 %v7840_v3 }
 0x7c0   : > { %7061 = vmatpush3.bf16.msra.mxu1 %v7060_v29 }
 0x7c1   : > { %7062 = vmatprep.subr.bf16.mxu1 %v7840_v3 }
 0x7c4   : > { %7064 = vmatpush3.bf16.msra.mxu1 %v7063_v19 }
 0x7c5   : > { %7065 = vmatprep.subr.bf16.mxu1 %v7840_v3 }
 0x7c8   : > { %7067 = vmatpush3.bf16.msra.mxu1 %v7066_v23 }
 0x87e   : > { %v5693_v56 = vpop.f32.mrb[66].mxu1 }
 0x87f   : > { %v5694_v11 = vadd.f32 %v6153_v61, %v5693_v56  ;;  %v6264_v47 = vpop.f32.mrb[67].mxu1 }
 0x881   : > { %v5697_v39 = vmax.f32 %v5694_v11, 0.0 }
 0x883   : > { %6298 = vmatmul.mubr.f32.vlgmr.msra.gmra.mrb[68].mxu1 %v5697_v39 }
 0x956   : > { %v5787_v37 = vpop.f32.mrb[68].mxu1 }
 0x957   : > { %v5788_v6 = vadd.f32 %v6154_v59, %v5787_v37  ;;  %v6299_v3 = vpop.f32.mrb[69].mxu1 }
 0x959   : > { %5791 = vst [vmem:[%s621_s16] sm:$0xff] %v5788_v6 }
 0x95a   : > { %7738 = shalt.err (!%p7735_p7)
}
 0x95b   : > { %s7739_s0 = scalar_lea.hbm %s10061_s17, 128  ;;  %s7743_s25 = scalar_lea.hbm %s10309_s29, 256 }
 0x95c   : > { %p7740_p6 = scmp.ne.s32.totalorder %s10061_s17, %s7739_s0  ;;  %p7744_p1 = scmp.lt.u32.totalorder %s10061_s17, %s10309_s29 }
 0x95d   : > { %p7745_p13 = scmp.lt.u32.totalorder %s7743_s25, %s7739_s0  ;;  %p7747_p2 = scmp.lt.u32.totalorder %s7739_s0, %s10061_s17 }
 0x95e   : > { %p7741_p9 = pnand %p7740_p6, %p10310_p8 }
 0x95f   : > { %p7746_p0 = por %p7745_p13, %p7744_p1 }
 0x960   : > { %p7742_p12 = pneg %p7741_p9 }
 0x961   : > { %p7748_p4 = por %p7747_p2, %p7746_p0 }
 0x963   : > { %p7749_p10 = pnand %p7748_p4, %p7742_p12 }
 0x965   : > { %7752 = shalt.err (!%p7749_p10)
}
 0x966   : > { %7220 = dma.vmem_to_hbm [thread:$0]  (%p10310_p8), %s10063_s30, 128, %s10061_s17, %s5793_s1  }
 0x967 PF: > { %s10311_s2 = sld [smem:[#allocation34_spill]]  ;;  %p10312_p11 = scmp.ne.s32.totalorder %s10180_s14, 0 }
 0x968   : > { %p10313_p3 = scmp.ge.s32.totalorder %s7815_s28, 2 }
 0x96a   : > { %p7264_p5 = pnand %p10313_p3, %p10312_p11 }
 0x96d   : > { %s5818_s22 = sand.u32 1, %s10311_s2  }
 0x96e   : > { %s5819_s24 = scalar_lea.sflag [#allocation6], %s5818_s22 }
 0x96f   : > { %7798 = dma.done.wait (!%p7264_p5), %s5819_s24, 128  }
 0x970   : > { %7800 = vsyncadd (!%p7264_p5), %s5819_s24, 4294967168  ;;  %p32_p7 = scmp.ge.s32.totalorder %s8236_s21, 4   ;;  %s10314_s25 = smov %s7807_s26 }
 0x971   : > { %s10315_s26 = smov %s7811_s27  ;;  %s10316_s27 = smov %s8247_s19 }
 0x972   : > { %s10317_s28 = smov %s8236_s21  ;;  %34 = sbr.rel (!%p32_p7) target bundleno = 16 (0x10), region = 183 }
 0x979   :  { %5824 = vsyncpa [#allocation5], 1 }
 0x97a   :  { %5826 = vsyncpa [#allocation5 + $0x1], 1 }
 0x97b   :  { %5827 = vsyncpa [#allocation8], 1 }
 0x97c   :  { %5828 = vsyncpa [#allocation11], 1 }
 0x97d   :  { %5829 = vsyncpa [#allocation14], 1 }
 0x97e   :  { %5830 = vsyncpa [#allocation17], 1 }
 0x97f   :  { %5831 = vsyncpa [#allocation20], 1 }
 0x980   :  { %5832 = vsyncpa [#allocation23], 1 }
 0x981   :  { %5833 = vsyncpa [#allocation6], 1 }
 0x982   :  { %5835 = vsyncpa [#allocation6 + $0x1], 1 }

</bundles_post_ra>
